<compile_context>
chip_gen: v7x
topology: tpu7x:2x2x1
jax: 0.10.0
libtpu: 0.0.40
codegen_flags: <defaults>
</compile_context>

<pallas_src>
import functools

import jax
import jax.numpy as jnp
from jax.experimental import pallas as pl
from jax.experimental.pallas import tpu as pltpu

EPS = 1e-5
LANE = 128
TILE_M_MAX = 512                  # rows per grid step (multiple of 16 for bf16 packing)
_VMEM_LIMIT = 32 * 1024 * 1024    # safe on v5e/v6e/v7x


def _round_up(x, m):
    return -(-x // m) * m


# ---------------------------------------------------------------------------
# Pallas kernels
# ---------------------------------------------------------------------------
def _conv_stats_res_kernel(p_ref, wcat_ref, z_ref, res_ref, st_ref):
    """Stage-1 tile: [z | res] = p @ [w1 | wid], plus per-channel sum/sumsq for z."""
    cp = z_ref.shape[1]
    full = jnp.dot(p_ref[...], wcat_ref[...],
                   preferred_element_type=jnp.float32)                 # MXU, [TM, 2*Cp]
    z = full[:, :cp]                                                   # lane-tile aligned split
    z_ref[...] = z
    res_ref[...] = full[:, cp:]
    st_ref[0:1, :] = jnp.sum(z, axis=0, keepdims=True)
    st_ref[1:2, :] = jnp.sum(z * z, axis=0, keepdims=True)
    st_ref[2:8, :] = jnp.zeros((6, cp), jnp.float32)


def _conv_stats_kernel(p_ref, w_ref, z_ref, st_ref):
    """Stage-2 tile: z = p @ w2 plus per-channel sum/sumsq partials."""
    z = jnp.dot(p_ref[...], w_ref[...], preferred_element_type=jnp.float32)
    z_ref[...] = z
    cp = z.shape[1]
    st_ref[0:1, :] = jnp.sum(z, axis=0, keepdims=True)
    st_ref[1:2, :] = jnp.sum(z * z, axis=0, keepdims=True)
    st_ref[2:8, :] = jnp.zeros((6, cp), jnp.float32)


def _bn_relu_kernel(z_ref, sc_ref, sh_ref, o_ref):
    y = jnp.maximum(z_ref[...] * sc_ref[...] + sh_ref[...], 0.0)
    o_ref[...] = y.astype(o_ref.dtype)


def _bn_relu_add_kernel(z_ref, sc_ref, sh_ref, res_ref, o_ref):
    y = jnp.maximum(z_ref[...] * sc_ref[...] + sh_ref[...], 0.0)
    o_ref[...] = jnp.maximum(y + res_ref[...], 0.0).astype(o_ref.dtype)


# ---------------------------------------------------------------------------
# pallas_call wrappers
# ---------------------------------------------------------------------------
def _cparams():
    return pltpu.CompilerParams(
        dimension_semantics=("parallel",),
        vmem_limit_bytes=_VMEM_LIMIT)


def _conv_stats_res(patches, wcat_mat, cp, tm):
    mp, k = patches.shape
    g = mp // tm
    cost = pl.CostEstimate(
        flops=2 * mp * k * (2 * cp),
        transcendentals=0,
        bytes_accessed=(patches.size + wcat_mat.size) * 2
        + 2 * mp * cp * 4 + g * 8 * cp * 4)
    return pl.pallas_call(
        _conv_stats_res_kernel,
        grid=(g,),
        in_specs=[pl.BlockSpec((tm, k), lambda i: (i, 0)),
                  pl.BlockSpec((k, 2 * cp), lambda i: (0, 0))],        # resident weights
        out_specs=(pl.BlockSpec((tm, cp), lambda i: (i, 0)),
                   pl.BlockSpec((tm, cp), lambda i: (i, 0)),
                   pl.BlockSpec((8, cp), lambda i: (i, 0))),
        out_shape=(jax.ShapeDtypeStruct((mp, cp), jnp.float32),
                   jax.ShapeDtypeStruct((mp, cp), jnp.float32),
                   jax.ShapeDtypeStruct((g * 8, cp), jnp.float32)),
        compiler_params=_cparams(),
        cost_estimate=cost,
    )(patches, wcat_mat)


def _conv_stats(patches, w_mat, tm):
    mp, k = patches.shape
    cp = w_mat.shape[1]
    g = mp // tm
    cost = pl.CostEstimate(
        flops=2 * mp * k * cp,
        transcendentals=0,
        bytes_accessed=(patches.size + w_mat.size) * 2 + mp * cp * 4 + g * 8 * cp * 4)
    return pl.pallas_call(
        _conv_stats_kernel,
        grid=(g,),
        in_specs=[pl.BlockSpec((tm, k), lambda i: (i, 0)),
                  pl.BlockSpec((k, cp), lambda i: (0, 0))],
        out_specs=(pl.BlockSpec((tm, cp), lambda i: (i, 0)),
                   pl.BlockSpec((8, cp), lambda i: (i, 0))),
        out_shape=(jax.ShapeDtypeStruct((mp, cp), jnp.float32),
                   jax.ShapeDtypeStruct((g * 8, cp), jnp.float32)),
        compiler_params=_cparams(),
        cost_estimate=cost,
    )(patches, w_mat)


def _bn_relu(z, scale, shift, tm, out_dtype):
    mp, cp = z.shape
    g = mp // tm
    return pl.pallas_call(
        _bn_relu_kernel,
        grid=(g,),
        in_specs=[pl.BlockSpec((tm, cp), lambda i: (i, 0)),
                  pl.BlockSpec((1, cp), lambda i: (0, 0)),
                  pl.BlockSpec((1, cp), lambda i: (0, 0))],
        out_specs=pl.BlockSpec((tm, cp), lambda i: (i, 0)),
        out_shape=jax.ShapeDtypeStruct((mp, cp), out_dtype),
        compiler_params=_cparams(),
    )(z, scale, shift)


def _bn_relu_add(z, scale, shift, res, tm, out_dtype):
    mp, cp = z.shape
    g = mp // tm
    return pl.pallas_call(
        _bn_relu_add_kernel,
        grid=(g,),
        in_specs=[pl.BlockSpec((tm, cp), lambda i: (i, 0)),
                  pl.BlockSpec((1, cp), lambda i: (0, 0)),
                  pl.BlockSpec((1, cp), lambda i: (0, 0)),
                  pl.BlockSpec((tm, cp), lambda i: (i, 0))],
        out_specs=pl.BlockSpec((tm, cp), lambda i: (i, 0)),
        out_shape=jax.ShapeDtypeStruct((mp, cp), out_dtype),
        compiler_params=_cparams(),
    )(z, scale, shift, res)


# ---------------------------------------------------------------------------
# Glue: im2col, tile sizing, stats finalization, parameters, forward
# ---------------------------------------------------------------------------
def _im2col(x_nhwc, stride):
    """3x3, padding=1 patches. Returns [N*Ho*Wo, 9*C] ordered (kh, kw, c)."""
    N, H, W, C = x_nhwc.shape
    xp = jnp.pad(x_nhwc, ((0, 0), (1, 1), (1, 1), (0, 0)))
    Ho = (H - 1) // stride + 1
    Wo = (W - 1) // stride + 1
    cols = []
    for kh in range(3):
        for kw in range(3):
            cols.append(
                xp[:, kh:kh + (Ho - 1) * stride + 1:stride,
                      kw:kw + (Wo - 1) * stride + 1:stride, :])
    patches = jnp.concatenate(cols, axis=-1)            # [N, Ho, Wo, 9*C]
    return patches.reshape(N * Ho * Wo, 9 * C), (N, Ho, Wo)


def _pick_tile_m(m, k_max, cp):
    """Largest power-of-two row tile whose double-buffered step fits the VMEM budget."""
    # per-row bytes: patches (bf16) + z,res f32 + out write, x2 for double-buffering
    per_row = 2 * (k_max * 2 + 3 * cp * 4)
    tm = TILE_M_MAX
    while tm > 64 and tm * per_row > (_VMEM_LIMIT // 2):
        tm //= 2
    if m < tm:
        tm = max(16, _round_up(m, 16))
    return tm


def _pad_cols(a, cp):
    return jnp.pad(a, ((0, 0), (0, cp - a.shape[1])))


def _finalize_stats(stats, count, gamma, beta):
    """sum/sumsq partials [G*8, Cp] -> BN scale/shift vectors [1, Cp] (f32)."""
    cp = stats.shape[-1]
    st = stats.reshape(-1, 8, cp)
    ssum = jnp.sum(st[:, 0, :], axis=0)
    ssq = jnp.sum(st[:, 1, :], axis=0)
    mean = ssum / count
    var = jnp.maximum(ssq / count - mean * mean, 0.0)    # clamp cancellation
    inv = jax.lax.rsqrt(var + EPS)
    scale = gamma.reshape(-1) * inv
    shift = beta.reshape(-1) - mean * scale
    return (scale.reshape(1, cp).astype(jnp.float32),
            shift.reshape(1, cp).astype(jnp.float32))


def init_params(key, cin, cout):
    k1, k2, k3 = jax.random.split(key, 3)
    # Conv weights stored as [3, 3, Cin, Cout] (== PyTorch [Cout, Cin, 3, 3] permuted).
    return {
        "w1": 0.1 * jax.random.normal(k1, (3, 3, cin, cout), jnp.float32),
        "w2": 0.1 * jax.random.normal(k2, (3, 3, cout, cout), jnp.float32),
        "wid": 0.1 * jax.random.normal(k3, (3, 3, cin, cout), jnp.float32),
        "g1": jnp.ones((1, cout), jnp.float32),
        "b1": jnp.zeros((1, cout), jnp.float32),
        "g2": jnp.ones((1, cout), jnp.float32),
        "b2": jnp.zeros((1, cout), jnp.float32),
    }


def conv_block_forward(x_nchw, params, stride=1):
    """ConvBlock forward. x_nchw: [N, Cin, H, W] float32 -> [N, Cout, Ho, Wo] float32."""
    cin, cout = params["w1"].shape[2], params["w1"].shape[3]
    cp = _round_up(cout, LANE)

    x = jnp.transpose(x_nchw, (0, 2, 3, 1)).astype(jnp.bfloat16)       # NHWC bf16 operand
    px, (n, ho, wo) = _im2col(x, stride)                               # [M, 9*Cin] bf16
    m = n * ho * wo
    tm = _pick_tile_m(m, max(9 * cin, 9 * cout), cp)
    mp = _round_up(m, tm)
    px = jnp.pad(px, ((0, mp - m), (0, 0)))                            # zero rows: no stat impact

    w1m = _pad_cols(params["w1"].reshape(9 * cin, cout), cp)
    widm = _pad_cols(params["wid"].reshape(9 * cin, cout), cp)
    wcat = jnp.concatenate([w1m, widm], axis=1).astype(jnp.bfloat16)   # [9*Cin, 2*Cp]
    w2m = _pad_cols(params["w2"].reshape(9 * cout, cout), cp).astype(jnp.bfloat16)
    g1 = _pad_cols(params["g1"].reshape(1, cout), cp)
    b1 = _pad_cols(params["b1"].reshape(1, cout), cp)
    g2 = _pad_cols(params["g2"].reshape(1, cout), cp)
    b2 = _pad_cols(params["b2"].reshape(1, cout), cp)

    # Stage 1: fused conv1 + identity-conv matmul (px read once) + BN partial stats.
    z1, res, st1 = _conv_stats_res(px, wcat, cp, tm)
    sc1, sh1 = _finalize_stats(st1, m, g1, b1)
    y1 = _bn_relu(z1, sc1, sh1, tm, jnp.bfloat16)                      # [Mp, Cp] bf16

    # Stage 2: conv2 matmul + BN partial stats, then normalize + residual add + ReLU.
    y1v = y1[:m, :cout].reshape(n, ho, wo, cout)
    p2, _ = _im2col(y1v, 1)                                            # [M, 9*Cout] bf16
    p2 = jnp.pad(p2, ((0, mp - m), (0, 0)))
    z2, st2 = _conv_stats(p2, w2m, tm)
    sc2, sh2 = _finalize_stats(st2, m, g2, b2)
    out = _bn_relu_add(z2, sc2, sh2, res, tm, jnp.float32)             # [Mp, Cp] f32

    out = out[:m, :cout].reshape(n, ho, wo, cout)
    return jnp.transpose(out, (0, 3, 1, 2))                            # back to NCHW


# ---------------------------------------------------------------------------
# Pure-JAX reference (bf16 matmul operands mirrored, for a tight correctness check)
# ---------------------------------------------------------------------------
def _ref_forward(x_nchw, params, stride=1):
    def conv(x, w, s):
        return jax.lax.conv_general_dilated(
            x.astype(jnp.bfloat16), w.astype(jnp.bfloat16),
            window_strides=(s, s), padding=((1, 1), (1, 1)),
            dimension_numbers=("NCHW", "HWIO", "NCHW"),
            preferred_element_type=jnp.float32)

    def bn_relu(z, g, b):
        mean = jnp.mean(z, axis=(0, 2, 3), keepdims=True)
        var = jnp.mean((z - mean) ** 2, axis=(0, 2, 3), keepdims=True)
        g = g.reshape(1, -1, 1, 1)
        b = b.reshape(1, -1, 1, 1)
        return jnp.maximum((z - mean) * jax.lax.rsqrt(var + EPS) * g + b, 0.0)

    y = bn_relu(conv(x_nchw, params["w1"], stride), params["g1"], params["b1"])
    y = y.astype(jnp.bfloat16).astype(jnp.float32)     # mirror kernel's bf16 y1
    y = bn_relu(conv(y, params["w2"], 1), params["g2"], params["b2"])
    res = conv(x_nchw, params["wid"], stride)
    return jnp.maximum(y + res, 0.0)


if __name__ == "__main__":
    key = jax.random.PRNGKey(0)
    kx, kp = jax.random.split(key)

    N, Cin, H, W = 2, 4, 16, 16
    Cout, stride = 8, 1

    x = jax.random.normal(kx, (N, Cin, H, W), jnp.float32)
    params = init_params(kp, Cin, Cout)

    fwd = jax.jit(functools.partial(conv_block_forward, stride=stride))
    out = jax.block_until_ready(fwd(x, params))
    ref = jax.block_until_ready(_ref_forward(x, params, stride=stride))

    assert out.shape == (N, Cout, H, W), out.shape
    assert bool(jnp.all(jnp.isfinite(out)))
    err = float(jnp.max(jnp.abs(out - ref)))
    assert bool(jnp.allclose(out, ref, atol=1e-2, rtol=1e-2)), err

    print("KERNEL_OK")
</pallas_src>

<mosaic_0001>
module attributes {stable_mosaic.version = 11 : i64} {
  func.func @_bn_relu_kernel(%arg0: i32, %arg1: memref<512x128xf32, #tpu.memory_space<vmem>>, %arg2: memref<1x128xf32, #tpu.memory_space<vmem>>, %arg3: memref<1x128xf32, #tpu.memory_space<vmem>>, %arg4: memref<512x128xbf16, #tpu.memory_space<vmem>>) attributes {dimension_semantics = [#tpu.dimension_semantics<parallel>], iteration_bounds = array<i64: 1>, scalar_prefetch = 0 : i64, scratch_operands = 0 : i64, tpu.core_type = #tpu.core_type<tc>, window_params = [{transform_indices = @transform_0, window_bounds = array<i64: 512, 128>}, {pipeline_mode = #tpu.pipeline_mode<synchronous>, transform_indices = @transform_1, window_bounds = array<i64: 1, 128>}, {pipeline_mode = #tpu.pipeline_mode<synchronous>, transform_indices = @transform_2, window_bounds = array<i64: 1, 128>}, {transform_indices = @transform_3, window_bounds = array<i64: 512, 128>}]} {
    %c0 = arith.constant 0 : index
    %c0_0 = arith.constant 0 : index
    %0 = vector.load %arg1[%c0, %c0_0] : memref<512x128xf32, #tpu.memory_space<vmem>>, vector<512x128xf32>
    %c0_1 = arith.constant 0 : index
    %c0_2 = arith.constant 0 : index
    %1 = vector.load %arg2[%c0_1, %c0_2] : memref<1x128xf32, #tpu.memory_space<vmem>>, vector<1x128xf32>
    %2 = vector.broadcast %1 : vector<1x128xf32> to vector<512x128xf32>
    %3 = arith.mulf %0, %2 : vector<512x128xf32>
    %c0_3 = arith.constant 0 : index
    %c0_4 = arith.constant 0 : index
    %4 = vector.load %arg3[%c0_3, %c0_4] : memref<1x128xf32, #tpu.memory_space<vmem>>, vector<1x128xf32>
    %5 = vector.broadcast %4 : vector<1x128xf32> to vector<512x128xf32>
    %6 = arith.addf %3, %5 : vector<512x128xf32>
    %cst = arith.constant 0.000000e+00 : f32
    %7 = vector.broadcast %cst : f32 to vector<512x128xf32>
    %8 = arith.maximumf %6, %7 : vector<512x128xf32>
    %9 = arith.truncf %8 : vector<512x128xf32> to vector<512x128xbf16>
    %c0_5 = arith.constant 0 : index
    %c0_6 = arith.constant 0 : index
    %10 = vector.load %arg4[%c0_5, %c0_6] : memref<512x128xbf16, #tpu.memory_space<vmem>>, vector<512x128xbf16>
    tpu.vector_store %arg4[%c0_5, %c0_6], %9 {strides = array<i32>} : memref<512x128xbf16, #tpu.memory_space<vmem>>, vector<512x128xbf16>,
    return
  }
  func.func @transform_0(%arg0: i32) -> (i32, i32) {
    %c0_i32 = arith.constant 0 : i32
    %c0_i32_0 = arith.constant 0 : i32
    return %arg0, %c0_i32 : i32, i32
  }
  func.func @transform_1(%arg0: i32) -> (i32, i32) {
    %c0_i32 = arith.constant 0 : i32
    %c0_i32_0 = arith.constant 0 : i32
    %c0_i32_1 = arith.constant 0 : i32
    return %c0_i32, %c0_i32_0 : i32, i32
  }
  func.func @transform_2(%arg0: i32) -> (i32, i32) {
    %c0_i32 = arith.constant 0 : i32
    %c0_i32_0 = arith.constant 0 : i32
    %c0_i32_1 = arith.constant 0 : i32
    return %c0_i32, %c0_i32_0 : i32, i32
  }
  func.func @transform_3(%arg0: i32) -> (i32, i32) {
    %c0_i32 = arith.constant 0 : i32
    %c0_i32_0 = arith.constant 0 : i32
    return %arg0, %c0_i32 : i32, i32
  }
}

module attributes {stable_mosaic.version = 11 : i64} {
  func.func @_conv_stats_res_kernel(%arg0: i32, %arg1: memref<512x36xbf16, #tpu.memory_space<vmem>>, %arg2: memref<36x256xbf16, #tpu.memory_space<vmem>>, %arg3: memref<512x128xf32, #tpu.memory_space<vmem>>, %arg4: memref<512x128xf32, #tpu.memory_space<vmem>>, %arg5: memref<8x128xf32, #tpu.memory_space<vmem>>) attributes {dimension_semantics = [#tpu.dimension_semantics<parallel>], iteration_bounds = array<i64: 1>, scalar_prefetch = 0 : i64, scratch_operands = 0 : i64, tpu.core_type = #tpu.core_type<tc>, window_params = [{transform_indices = @transform_0, window_bounds = array<i64: 512, 36>}, {pipeline_mode = #tpu.pipeline_mode<synchronous>, transform_indices = @transform_1, window_bounds = array<i64: 36, 256>}, {transform_indices = @transform_2, window_bounds = array<i64: 512, 128>}, {transform_indices = @transform_3, window_bounds = array<i64: 512, 128>}, {transform_indices = @transform_4, window_bounds = array<i64: 8, 128>}]} {
    %c0 = arith.constant 0 : index
    %c0_0 = arith.constant 0 : index
    %0 = vector.load %arg1[%c0, %c0_0] : memref<512x36xbf16, #tpu.memory_space<vmem>>, vector<512x36xbf16>
    %c0_1 = arith.constant 0 : index
    %c0_2 = arith.constant 0 : index
    %1 = vector.load %arg2[%c0_1, %c0_2] : memref<36x256xbf16, #tpu.memory_space<vmem>>, vector<36x256xbf16>
    %cst = arith.constant dense<0.000000e+00> : vector<512x256xf32>
    %2 = tpu.matmul %0, %1, %cst {dimension_numbers = #tpu.dot_dimension_numbers<[1], [0], [0], [1], [0, 0, 1, 1], [], []>} : vector<512x36xbf16>, vector<36x256xbf16>, vector<512x256xf32> -> vector<512x256xf32>
    %3 = vector.extract_strided_slice %2 {offsets = [0, 0], sizes = [512, 128], strides = [1, 1]} : vector<512x256xf32> to vector<512x128xf32>
    %c0_3 = arith.constant 0 : index
    %c0_4 = arith.constant 0 : index
    %4 = vector.load %arg3[%c0_3, %c0_4] : memref<512x128xf32, #tpu.memory_space<vmem>>, vector<512x128xf32>
    tpu.vector_store %arg3[%c0_3, %c0_4], %3 {strides = array<i32>} : memref<512x128xf32, #tpu.memory_space<vmem>>, vector<512x128xf32>,
    %5 = vector.extract_strided_slice %2 {offsets = [0, 128], sizes = [512, 128], strides = [1, 1]} : vector<512x256xf32> to vector<512x128xf32>
    %c0_5 = arith.constant 0 : index
    %c0_6 = arith.constant 0 : index
    %6 = vector.load %arg4[%c0_5, %c0_6] : memref<512x128xf32, #tpu.memory_space<vmem>>, vector<512x128xf32>
    tpu.vector_store %arg4[%c0_5, %c0_6], %5 {strides = array<i32>} : memref<512x128xf32, #tpu.memory_space<vmem>>, vector<512x128xf32>,
    %cst_7 = arith.constant dense<0.000000e+00> : vector<128xf32>
    %7 = vector.multi_reduction <add>, %3, %cst_7 [0] : vector<512x128xf32> to vector<128xf32>
    %8 = vector.shape_cast %7 : vector<128xf32> to vector<1x128xf32>
    %c0_8 = arith.constant 0 : index
    %c0_9 = arith.constant 0 : index
    %9 = vector.load %arg5[%c0_8, %c0_9] : memref<8x128xf32, #tpu.memory_space<vmem>>, vector<1x128xf32>
    tpu.vector_store %arg5[%c0_8, %c0_9], %8 {strides = array<i32>} : memref<8x128xf32, #tpu.memory_space<vmem>>, vector<1x128xf32>,
    %10 = arith.mulf %3, %3 : vector<512x128xf32>
    %cst_10 = arith.constant dense<0.000000e+00> : vector<128xf32>
    %11 = vector.multi_reduction <add>, %10, %cst_10 [0] : vector<512x128xf32> to vector<128xf32>
    %12 = vector.shape_cast %11 : vector<128xf32> to vector<1x128xf32>
    %c1 = arith.constant 1 : index
    %c0_11 = arith.constant 0 : index
    %13 = vector.load %arg5[%c1, %c0_11] : memref<8x128xf32, #tpu.memory_space<vmem>>, vector<1x128xf32>
    tpu.vector_store %arg5[%c1, %c0_11], %12 {strides = array<i32>} : memref<8x128xf32, #tpu.memory_space<vmem>>, vector<1x128xf32>,
    %cst_12 = arith.constant 0.000000e+00 : f32
    %14 = vector.broadcast %cst_12 : f32 to vector<6x128xf32>
    %c2 = arith.constant 2 : index
    %c0_13 = arith.constant 0 : index
    %15 = vector.load %arg5[%c2, %c0_13] : memref<8x128xf32, #tpu.memory_space<vmem>>, vector<6x128xf32>
    tpu.vector_store %arg5[%c2, %c0_13], %14 {strides = array<i32>} : memref<8x128xf32, #tpu.memory_space<vmem>>, vector<6x128xf32>,
    return
  }
  func.func @transform_0(%arg0: i32) -> (i32, i32) {
    %c0_i32 = arith.constant 0 : i32
    %c0_i32_0 = arith.constant 0 : i32
    return %arg0, %c0_i32 : i32, i32
  }
  func.func @transform_1(%arg0: i32) -> (i32, i32) {
    %c0_i32 = arith.constant 0 : i32
    %c0_i32_0 = arith.constant 0 : i32
    %c0_i32_1 = arith.constant 0 : i32
    return %c0_i32, %c0_i32_0 : i32, i32
  }
  func.func @transform_2(%arg0: i32) -> (i32, i32) {
    %c0_i32 = arith.constant 0 : i32
    %c0_i32_0 = arith.constant 0 : i32
    return %arg0, %c0_i32 : i32, i32
  }
  func.func @transform_3(%arg0: i32) -> (i32, i32) {
    %c0_i32 = arith.constant 0 : i32
    %c0_i32_0 = arith.constant 0 : i32
    return %arg0, %c0_i32 : i32, i32
  }
  func.func @transform_4(%arg0: i32) -> (i32, i32) {
    %c0_i32 = arith.constant 0 : i32
    %c0_i32_0 = arith.constant 0 : i32
    return %arg0, %c0_i32 : i32, i32
  }
}

module attributes {stable_mosaic.version = 11 : i64} {
  func.func @_conv_stats_kernel(%arg0: i32, %arg1: memref<512x72xbf16, #tpu.memory_space<vmem>>, %arg2: memref<72x128xbf16, #tpu.memory_space<vmem>>, %arg3: memref<512x128xf32, #tpu.memory_space<vmem>>, %arg4: memref<8x128xf32, #tpu.memory_space<vmem>>) attributes {dimension_semantics = [#tpu.dimension_semantics<parallel>], iteration_bounds = array<i64: 1>, scalar_prefetch = 0 : i64, scratch_operands = 0 : i64, tpu.core_type = #tpu.core_type<tc>, window_params = [{transform_indices = @transform_0, window_bounds = array<i64: 512, 72>}, {pipeline_mode = #tpu.pipeline_mode<synchronous>, transform_indices = @transform_1, window_bounds = array<i64: 72, 128>}, {transform_indices = @transform_2, window_bounds = array<i64: 512, 128>}, {transform_indices = @transform_3, window_bounds = array<i64: 8, 128>}]} {
    %c0 = arith.constant 0 : index
    %c0_0 = arith.constant 0 : index
    %0 = vector.load %arg1[%c0, %c0_0] : memref<512x72xbf16, #tpu.memory_space<vmem>>, vector<512x72xbf16>
    %c0_1 = arith.constant 0 : index
    %c0_2 = arith.constant 0 : index
    %1 = vector.load %arg2[%c0_1, %c0_2] : memref<72x128xbf16, #tpu.memory_space<vmem>>, vector<72x128xbf16>
    %cst = arith.constant dense<0.000000e+00> : vector<512x128xf32>
    %2 = tpu.matmul %0, %1, %cst {dimension_numbers = #tpu.dot_dimension_numbers<[1], [0], [0], [1], [0, 0, 1, 1], [], []>} : vector<512x72xbf16>, vector<72x128xbf16>, vector<512x128xf32> -> vector<512x128xf32>
    %c0_3 = arith.constant 0 : index
    %c0_4 = arith.constant 0 : index
    %3 = vector.load %arg3[%c0_3, %c0_4] : memref<512x128xf32, #tpu.memory_space<vmem>>, vector<512x128xf32>
    tpu.vector_store %arg3[%c0_3, %c0_4], %2 {strides = array<i32>} : memref<512x128xf32, #tpu.memory_space<vmem>>, vector<512x128xf32>,
    %cst_5 = arith.constant dense<0.000000e+00> : vector<128xf32>
    %4 = vector.multi_reduction <add>, %2, %cst_5 [0] : vector<512x128xf32> to vector<128xf32>
    %5 = vector.shape_cast %4 : vector<128xf32> to vector<1x128xf32>
    %c0_6 = arith.constant 0 : index
    %c0_7 = arith.constant 0 : index
    %6 = vector.load %arg4[%c0_6, %c0_7] : memref<8x128xf32, #tpu.memory_space<vmem>>, vector<1x128xf32>
    tpu.vector_store %arg4[%c0_6, %c0_7], %5 {strides = array<i32>} : memref<8x128xf32, #tpu.memory_space<vmem>>, vector<1x128xf32>,
    %7 = arith.mulf %2, %2 : vector<512x128xf32>
    %cst_8 = arith.constant dense<0.000000e+00> : vector<128xf32>
    %8 = vector.multi_reduction <add>, %7, %cst_8 [0] : vector<512x128xf32> to vector<128xf32>
    %9 = vector.shape_cast %8 : vector<128xf32> to vector<1x128xf32>
    %c1 = arith.constant 1 : index
    %c0_9 = arith.constant 0 : index
    %10 = vector.load %arg4[%c1, %c0_9] : memref<8x128xf32, #tpu.memory_space<vmem>>, vector<1x128xf32>
    tpu.vector_store %arg4[%c1, %c0_9], %9 {strides = array<i32>} : memref<8x128xf32, #tpu.memory_space<vmem>>, vector<1x128xf32>,
    %cst_10 = arith.constant 0.000000e+00 : f32
    %11 = vector.broadcast %cst_10 : f32 to vector<6x128xf32>
    %c2 = arith.constant 2 : index
    %c0_11 = arith.constant 0 : index
    %12 = vector.load %arg4[%c2, %c0_11] : memref<8x128xf32, #tpu.memory_space<vmem>>, vector<6x128xf32>
    tpu.vector_store %arg4[%c2, %c0_11], %11 {strides = array<i32>} : memref<8x128xf32, #tpu.memory_space<vmem>>, vector<6x128xf32>,
    return
  }
  func.func @transform_0(%arg0: i32) -> (i32, i32) {
    %c0_i32 = arith.constant 0 : i32
    %c0_i32_0 = arith.constant 0 : i32
    return %arg0, %c0_i32 : i32, i32
  }
  func.func @transform_1(%arg0: i32) -> (i32, i32) {
    %c0_i32 = arith.constant 0 : i32
    %c0_i32_0 = arith.constant 0 : i32
    %c0_i32_1 = arith.constant 0 : i32
    return %c0_i32, %c0_i32_0 : i32, i32
  }
  func.func @transform_2(%arg0: i32) -> (i32, i32) {
    %c0_i32 = arith.constant 0 : i32
    %c0_i32_0 = arith.constant 0 : i32
    return %arg0, %c0_i32 : i32, i32
  }
  func.func @transform_3(%arg0: i32) -> (i32, i32) {
    %c0_i32 = arith.constant 0 : i32
    %c0_i32_0 = arith.constant 0 : i32
    return %arg0, %c0_i32 : i32, i32
  }
}

module attributes {stable_mosaic.version = 11 : i64} {
  func.func @_bn_relu_add_kernel(%arg0: i32, %arg1: memref<512x128xf32, #tpu.memory_space<vmem>>, %arg2: memref<1x128xf32, #tpu.memory_space<vmem>>, %arg3: memref<1x128xf32, #tpu.memory_space<vmem>>, %arg4: memref<512x128xf32, #tpu.memory_space<vmem>>, %arg5: memref<512x128xf32, #tpu.memory_space<vmem>>) attributes {dimension_semantics = [#tpu.dimension_semantics<parallel>], iteration_bounds = array<i64: 1>, scalar_prefetch = 0 : i64, scratch_operands = 0 : i64, tpu.core_type = #tpu.core_type<tc>, window_params = [{transform_indices = @transform_0, window_bounds = array<i64: 512, 128>}, {pipeline_mode = #tpu.pipeline_mode<synchronous>, transform_indices = @transform_1, window_bounds = array<i64: 1, 128>}, {pipeline_mode = #tpu.pipeline_mode<synchronous>, transform_indices = @transform_2, window_bounds = array<i64: 1, 128>}, {transform_indices = @transform_3, window_bounds = array<i64: 512, 128>}, {transform_indices = @transform_4, window_bounds = array<i64: 512, 128>}]} {
    %c0 = arith.constant 0 : index
    %c0_0 = arith.constant 0 : index
    %0 = vector.load %arg1[%c0, %c0_0] : memref<512x128xf32, #tpu.memory_space<vmem>>, vector<512x128xf32>
    %c0_1 = arith.constant 0 : index
    %c0_2 = arith.constant 0 : index
    %1 = vector.load %arg2[%c0_1, %c0_2] : memref<1x128xf32, #tpu.memory_space<vmem>>, vector<1x128xf32>
    %2 = vector.broadcast %1 : vector<1x128xf32> to vector<512x128xf32>
    %3 = arith.mulf %0, %2 : vector<512x128xf32>
    %c0_3 = arith.constant 0 : index
    %c0_4 = arith.constant 0 : index
    %4 = vector.load %arg3[%c0_3, %c0_4] : memref<1x128xf32, #tpu.memory_space<vmem>>, vector<1x128xf32>
    %5 = vector.broadcast %4 : vector<1x128xf32> to vector<512x128xf32>
    %6 = arith.addf %3, %5 : vector<512x128xf32>
    %cst = arith.constant 0.000000e+00 : f32
    %7 = vector.broadcast %cst : f32 to vector<512x128xf32>
    %8 = arith.maximumf %6, %7 : vector<512x128xf32>
    %c0_5 = arith.constant 0 : index
    %c0_6 = arith.constant 0 : index
    %9 = vector.load %arg4[%c0_5, %c0_6] : memref<512x128xf32, #tpu.memory_space<vmem>>, vector<512x128xf32>
    %10 = arith.addf %8, %9 : vector<512x128xf32>
    %cst_7 = arith.constant 0.000000e+00 : f32
    %11 = vector.broadcast %cst_7 : f32 to vector<512x128xf32>
    %12 = arith.maximumf %10, %11 : vector<512x128xf32>
    %c0_8 = arith.constant 0 : index
    %c0_9 = arith.constant 0 : index
    %13 = vector.load %arg5[%c0_8, %c0_9] : memref<512x128xf32, #tpu.memory_space<vmem>>, vector<512x128xf32>
    tpu.vector_store %arg5[%c0_8, %c0_9], %12 {strides = array<i32>} : memref<512x128xf32, #tpu.memory_space<vmem>>, vector<512x128xf32>,
    return
  }
  func.func @transform_0(%arg0: i32) -> (i32, i32) {
    %c0_i32 = arith.constant 0 : i32
    %c0_i32_0 = arith.constant 0 : i32
    return %arg0, %c0_i32 : i32, i32
  }
  func.func @transform_1(%arg0: i32) -> (i32, i32) {
    %c0_i32 = arith.constant 0 : i32
    %c0_i32_0 = arith.constant 0 : i32
    %c0_i32_1 = arith.constant 0 : i32
    return %c0_i32, %c0_i32_0 : i32, i32
  }
  func.func @transform_2(%arg0: i32) -> (i32, i32) {
    %c0_i32 = arith.constant 0 : i32
    %c0_i32_0 = arith.constant 0 : i32
    %c0_i32_1 = arith.constant 0 : i32
    return %c0_i32, %c0_i32_0 : i32, i32
  }
  func.func @transform_3(%arg0: i32) -> (i32, i32) {
    %c0_i32 = arith.constant 0 : i32
    %c0_i32_0 = arith.constant 0 : i32
    return %arg0, %c0_i32 : i32, i32
  }
  func.func @transform_4(%arg0: i32) -> (i32, i32) {
    %c0_i32 = arith.constant 0 : i32
    %c0_i32_0 = arith.constant 0 : i32
    return %arg0, %c0_i32 : i32, i32
  }
}

</mosaic_0001>

<bundles_post_ra>
// kernel: conv_block_forward.5
= control target key start
LH: loop header
LB: loop body
LE: loop exit
PB: predicated region body
PF: predicated region fallthrough
CT: control target
= control target key end

     0   :  { %s1375_s0 = inlined_call_operand.vmem [shape: f32[512,128], index: 0, kind: input, shape index: {}]   ;;  %s1376_s1 = inlined_call_operand.vmem [shape: f32[1,128], index: 1, kind: input, shape index: {}]   ;;  %s1377_s2 = inlined_call_operand.vmem [shape: f32[1,128], index: 2, kind: input, shape index: {}]   ;;  %s1378_s3 = inlined_call_operand.vmem [shape: bf16[512,128], index: 3, kind: output, shape index: {}]  }
   0x1   :  { %v14_v0 = vld [vmem:[%s1375_s0] sm:$0xff]  ;;  %v15_v1 = vld [vmem:[%s1375_s0 + $0x8] sm:$0xff]  ;;  %v16_v6 = vld [vmem:[%s1375_s0 + $0x10] sm:$0xff] }
   0x2   :  { %v958_v2 = vld [vmem:[%s1376_s1] ss:$0 sm:$0xff]  ;;  %v17_v7 = vld [vmem:[%s1375_s0 + $0x18] sm:$0xff]  ;;  %v19_v11 = vld [vmem:[%s1375_s0 + $0x28] sm:$0xff] }
   0x3   :  { %v85_v3 = vmul.f32 %v958_v2, %v14_v0  ;;  %v86_v4 = vmul.f32 %v958_v2, %v15_v1  ;;  %v965_v5 = vld [vmem:[%s1377_s2] ss:$0 sm:$0xff]  ;;  %v87_v8 = vmul.f32 %v958_v2, %v16_v6  ;;  %v88_v9 = vmul.f32 %v958_v2, %v17_v7  ;;  %v20_v12 = vld [vmem:[%s1375_s0 + $0x30] sm:$0xff]  ;;  %v21_v17 = vld [vmem:[%s1375_s0 + $0x38] sm:$0xff] }
   0x4   :  { %v18_v10 = vld [vmem:[%s1375_s0 + $0x20] sm:$0xff]  ;;  %v90_v16 = vmul.f32 %v958_v2, %v19_v11  ;;  %v91_v20 = vmul.f32 %v958_v2, %v20_v12  ;;  %v92_v21 = vmul.f32 %v958_v2, %v21_v17  ;;  %v23_v27 = vld [vmem:[%s1375_s0 + $0x48] sm:$0xff]  ;;  %v24_v32 = vld [vmem:[%s1375_s0 + $0x50] sm:$0xff] }
   0x5   :  { %v156_v13 = vadd.f32 %v965_v5, %v85_v3  ;;  %v157_v14 = vadd.f32 %v965_v5, %v86_v4  ;;  %v89_v15 = vmul.f32 %v958_v2, %v18_v10  ;;  %v158_v18 = vadd.f32 %v965_v5, %v87_v8  ;;  %v22_v22 = vld [vmem:[%s1375_s0 + $0x40] sm:$0xff]  ;;  %v25_v33 = vld [vmem:[%s1375_s0 + $0x58] sm:$0xff]  ;;  %v27_v39 = vld [vmem:[%s1375_s0 + $0x68] sm:$0xff] }
   0x6   :  { %v159_v19 = vadd.f32 %v965_v5, %v88_v9  ;;  %v161_v26 = vadd.f32 %v965_v5, %v90_v16  ;;  %v162_v30 = vadd.f32 %v965_v5, %v91_v20  ;;  %v163_v31 = vadd.f32 %v965_v5, %v92_v21  ;;  %v26_v38 = vld [vmem:[%s1375_s0 + $0x60] sm:$0xff]  ;;  %v28_v44 = vld [vmem:[%s1375_s0 + $0x70] sm:$0xff]  ;;  %v29_v49 = vld [vmem:[%s1375_s0 + $0x78] sm:$0xff] }
   0x7   :  { %v220_v23 = vmax.f32 %v156_v13, 0.0  ;;  %v221_v24 = vmax.f32 %v157_v14, 0.0  ;;  %v160_v25 = vadd.f32 %v965_v5, %v89_v15  ;;  %v222_v28 = vmax.f32 %v158_v18, 0.0  ;;  %v30_v54 = vld [vmem:[%s1375_s0 + $0x80] sm:$0xff]  ;;  %v31_v63 = vld [vmem:[%s1375_s0 + $0x88] sm:$0xff]  ;;  %v32_v6 = vld [vmem:[%s1375_s0 + $0x90] sm:$0xff] }
   0x8   :  { %v223_v29 = vmax.f32 %v159_v19, 0.0  ;;  %v225_v36 = vmax.f32 %v161_v26, 0.0  ;;  %v93_v37 = vmul.f32 %v958_v2, %v22_v22  ;;  %v226_v41 = vmax.f32 %v162_v30, 0.0  ;;  %v33_v7 = vld [vmem:[%s1375_s0 + $0x98] sm:$0xff]  ;;  %v34_v12 = vld [vmem:[%s1375_s0 + $0xa0] sm:$0xff]  ;;  %v35_v13 = vld [vmem:[%s1375_s0 + $0xa8] sm:$0xff] }
   0x9   :  { %v741_v34 = vpack.c.bf16 %v221_v24, %v220_v23  ;;  %v224_v35 = vmax.f32 %v160_v25, 0.0  ;;  %v227_v42 = vmax.f32 %v163_v31, 0.0  ;;  %v94_v43 = vmul.f32 %v958_v2, %v23_v27  ;;  %v36_v18 = vld [vmem:[%s1375_s0 + $0xb0] sm:$0xff]  ;;  %v37_v23 = vld [vmem:[%s1375_s0 + $0xb8] sm:$0xff] }
   0xa   :  { %v746_v40 = vpack.c.bf16 %v223_v29, %v222_v28  ;;  %v164_v46 = vadd.f32 %v965_v5, %v93_v37  ;;  %v95_v47 = vmul.f32 %v958_v2, %v24_v32  ;;  %v96_v48 = vmul.f32 %v958_v2, %v25_v33  ;;  %v38_v28 = vld [vmem:[%s1375_s0 + $0xc0] sm:$0xff]  ;;  %v39_v37 = vld [vmem:[%s1375_s0 + $0xc8] sm:$0xff] }
   0xb   :  { %742 = vst [vmem:[%s1378_s3] sm:$0xff] %v741_v34   ;;  %v751_v45 = vpack.c.bf16 %v225_v36, %v224_v35  ;;  %v756_v50 = vpack.c.bf16 %v227_v42, %v226_v41  ;;  %v165_v51 = vadd.f32 %v965_v5, %v94_v43  ;;  %v97_v52 = vmul.f32 %v958_v2, %v26_v38  ;;  %v40_v42 = vld [vmem:[%s1375_s0 + $0xd0] sm:$0xff]  ;;  %v41_v43 = vld [vmem:[%s1375_s0 + $0xd8] sm:$0xff] }
   0xc   :  { %898 = vst [vmem:[%s1378_s3 + $0x8] sm:$0xff] %v746_v40   ;;  %v98_v53 = vmul.f32 %v958_v2, %v27_v39  ;;  %v228_v55 = vmax.f32 %v164_v46, 0.0  ;;  %v166_v56 = vadd.f32 %v965_v5, %v95_v47  ;;  %v167_v57 = vadd.f32 %v965_v5, %v96_v48  ;;  %v42_v48 = vld [vmem:[%s1375_s0 + $0xe0] sm:$0xff] }
   0xd   :  { %899 = vst [vmem:[%s1378_s3 + $0x10] sm:$0xff] %v751_v45   ;;  %v99_v58 = vmul.f32 %v958_v2, %v28_v44  ;;  %900 = vst [vmem:[%s1378_s3 + $0x18] sm:$0xff] %v756_v50   ;;  %v229_v59 = vmax.f32 %v165_v51, 0.0  ;;  %v168_v60 = vadd.f32 %v965_v5, %v97_v52  ;;  %v100_v62 = vmul.f32 %v958_v2, %v29_v49  ;;  %v43_v49 = vld [vmem:[%s1375_s0 + $0xe8] sm:$0xff] }
   0xe   :  { %v169_v61 = vadd.f32 %v965_v5, %v98_v53  ;;  %v230_v0 = vmax.f32 %v166_v56, 0.0  ;;  %v231_v1 = vmax.f32 %v167_v57, 0.0  ;;  %v101_v4 = vmul.f32 %v958_v2, %v30_v54  ;;  %v44_v54 = vld [vmem:[%s1375_s0 + $0xf0] sm:$0xff] }
   0xf   :  { %v170_v3 = vadd.f32 %v965_v5, %v99_v58  ;;  %v761_v8 = vpack.c.bf16 %v229_v59, %v228_v55  ;;  %v232_v9 = vmax.f32 %v168_v60, 0.0  ;;  %v171_v11 = vadd.f32 %v965_v5, %v100_v62  ;;  %v45_v59 = vld [vmem:[%s1375_s0 + $0xf8] sm:$0xff] }
  0x10   :  { %v233_v10 = vmax.f32 %v169_v61, 0.0  ;;  %v766_v14 = vpack.c.bf16 %v231_v1, %v230_v0  ;;  %v102_v16 = vmul.f32 %v958_v2, %v31_v63  ;;  %v172_v17 = vadd.f32 %v965_v5, %v101_v4  ;;  %v46_v0 = vld [vmem:[%s1375_s0 + $0x100] sm:$0xff] }
  0x11   :  { %v234_v15 = vmax.f32 %v170_v3, 0.0  ;;  %901 = vst [vmem:[%s1378_s3 + $0x20] sm:$0xff] %v761_v8   ;;  %v235_v20 = vmax.f32 %v171_v11, 0.0  ;;  %v103_v21 = vmul.f32 %v958_v2, %v32_v6  ;;  %v104_v22 = vmul.f32 %v958_v2, %v33_v7  ;;  %v47_v11 = vld [vmem:[%s1375_s0 + $0x108] sm:$0xff] }
  0x12   :  { %v771_v19 = vpack.c.bf16 %v233_v10, %v232_v9  ;;  %902 = vst [vmem:[%s1378_s3 + $0x28] sm:$0xff] %v766_v14   ;;  %v173_v24 = vadd.f32 %v965_v5, %v102_v16  ;;  %v236_v25 = vmax.f32 %v172_v17, 0.0  ;;  %v105_v26 = vmul.f32 %v958_v2, %v34_v12  ;;  %v48_v16 = vld [vmem:[%s1375_s0 + $0x110] sm:$0xff]  ;;  %v49_v17 = vld [vmem:[%s1375_s0 + $0x118] sm:$0xff] }
  0x13   :  { %v106_v27 = vmul.f32 %v958_v2, %v35_v13  ;;  %v776_v29 = vpack.c.bf16 %v235_v20, %v234_v15  ;;  %v174_v30 = vadd.f32 %v965_v5, %v103_v21  ;;  %v175_v31 = vadd.f32 %v965_v5, %v104_v22  ;;  %v50_v22 = vld [vmem:[%s1375_s0 + $0x120] sm:$0xff] }
  0x14   :  { %903 = vst [vmem:[%s1378_s3 + $0x30] sm:$0xff] %v771_v19   ;;  %v107_v32 = vmul.f32 %v958_v2, %v36_v18  ;;  %v237_v33 = vmax.f32 %v173_v24, 0.0  ;;  %v176_v34 = vadd.f32 %v965_v5, %v105_v26  ;;  %v108_v36 = vmul.f32 %v958_v2, %v37_v23  ;;  %v51_v23 = vld [vmem:[%s1375_s0 + $0x128] sm:$0xff] }
  0x15   :  { %v177_v35 = vadd.f32 %v965_v5, %v106_v27  ;;  %904 = vst [vmem:[%s1378_s3 + $0x38] sm:$0xff] %v776_v29   ;;  %v238_v38 = vmax.f32 %v174_v30, 0.0  ;;  %v239_v39 = vmax.f32 %v175_v31, 0.0  ;;  %v109_v41 = vmul.f32 %v958_v2, %v38_v28  ;;  %v52_v28 = vld [vmem:[%s1375_s0 + $0x130] sm:$0xff] }
  0x16   :  { %v178_v40 = vadd.f32 %v965_v5, %v107_v32  ;;  %v781_v44 = vpack.c.bf16 %v237_v33, %v236_v25  ;;  %v240_v45 = vmax.f32 %v176_v34, 0.0  ;;  %v179_v47 = vadd.f32 %v965_v5, %v108_v36  ;;  %v53_v33 = vld [vmem:[%s1375_s0 + $0x138] sm:$0xff] }
  0x17   :  { %v241_v46 = vmax.f32 %v177_v35, 0.0  ;;  %v786_v50 = vpack.c.bf16 %v239_v39, %v238_v38  ;;  %v110_v52 = vmul.f32 %v958_v2, %v39_v37  ;;  %v180_v53 = vadd.f32 %v965_v5, %v109_v41  ;;  %v54_v38 = vld [vmem:[%s1375_s0 + $0x140] sm:$0xff] }
  0x18   :  { %v242_v51 = vmax.f32 %v178_v40, 0.0  ;;  %905 = vst [vmem:[%s1378_s3 + $0x40] sm:$0xff] %v781_v44   ;;  %v243_v56 = vmax.f32 %v179_v47, 0.0  ;;  %v111_v57 = vmul.f32 %v958_v2, %v40_v42  ;;  %v112_v58 = vmul.f32 %v958_v2, %v41_v43  ;;  %v55_v47 = vld [vmem:[%s1375_s0 + $0x148] sm:$0xff] }
  0x19   :  { %v791_v55 = vpack.c.bf16 %v241_v46, %v240_v45  ;;  %906 = vst [vmem:[%s1378_s3 + $0x48] sm:$0xff] %v786_v50   ;;  %v181_v60 = vadd.f32 %v965_v5, %v110_v52  ;;  %v244_v61 = vmax.f32 %v180_v53, 0.0  ;;  %v113_v62 = vmul.f32 %v958_v2, %v42_v48  ;;  %v56_v52 = vld [vmem:[%s1375_s0 + $0x150] sm:$0xff]  ;;  %v57_v53 = vld [vmem:[%s1375_s0 + $0x158] sm:$0xff] }
  0x1a   :  { %v114_v63 = vmul.f32 %v958_v2, %v43_v49  ;;  %v796_v1 = vpack.c.bf16 %v243_v56, %v242_v51  ;;  %v182_v3 = vadd.f32 %v965_v5, %v111_v57  ;;  %v183_v4 = vadd.f32 %v965_v5, %v112_v58  ;;  %v58_v58 = vld [vmem:[%s1375_s0 + $0x160] sm:$0xff] }
  0x1b   :  { %907 = vst [vmem:[%s1378_s3 + $0x50] sm:$0xff] %v791_v55   ;;  %v115_v6 = vmul.f32 %v958_v2, %v44_v54  ;;  %v245_v7 = vmax.f32 %v181_v60, 0.0  ;;  %v184_v8 = vadd.f32 %v965_v5, %v113_v62  ;;  %v116_v10 = vmul.f32 %v958_v2, %v45_v59  ;;  %v59_v59 = vld [vmem:[%s1375_s0 + $0x168] sm:$0xff] }
  0x1c   :  { %v185_v9 = vadd.f32 %v965_v5, %v114_v63  ;;  %908 = vst [vmem:[%s1378_s3 + $0x58] sm:$0xff] %v796_v1   ;;  %v246_v12 = vmax.f32 %v182_v3, 0.0  ;;  %v247_v13 = vmax.f32 %v183_v4, 0.0  ;;  %v117_v15 = vmul.f32 %v958_v2, %v46_v0  ;;  %v60_v0 = vld [vmem:[%s1375_s0 + $0x170] sm:$0xff] }
  0x1d   :  { %v186_v14 = vadd.f32 %v965_v5, %v115_v6  ;;  %v801_v18 = vpack.c.bf16 %v245_v7, %v244_v61  ;;  %v248_v19 = vmax.f32 %v184_v8, 0.0  ;;  %v187_v21 = vadd.f32 %v965_v5, %v116_v10  ;;  %v61_v7 = vld [vmem:[%s1375_s0 + $0x178] sm:$0xff] }
  0x1e   :  { %v249_v20 = vmax.f32 %v185_v9, 0.0  ;;  %v806_v24 = vpack.c.bf16 %v247_v13, %v246_v12  ;;  %v118_v26 = vmul.f32 %v958_v2, %v47_v11  ;;  %v188_v27 = vadd.f32 %v965_v5, %v117_v15  ;;  %v62_v12 = vld [vmem:[%s1375_s0 + $0x180] sm:$0xff] }
  0x1f   :  { %v250_v25 = vmax.f32 %v186_v14, 0.0  ;;  %909 = vst [vmem:[%s1378_s3 + $0x60] sm:$0xff] %v801_v18   ;;  %v251_v30 = vmax.f32 %v187_v21, 0.0  ;;  %v119_v31 = vmul.f32 %v958_v2, %v48_v16  ;;  %v120_v32 = vmul.f32 %v958_v2, %v49_v17  ;;  %v63_v21 = vld [vmem:[%s1375_s0 + $0x188] sm:$0xff] }
  0x20   :  { %v811_v29 = vpack.c.bf16 %v249_v20, %v248_v19  ;;  %910 = vst [vmem:[%s1378_s3 + $0x68] sm:$0xff] %v806_v24   ;;  %v189_v34 = vadd.f32 %v965_v5, %v118_v26  ;;  %v252_v35 = vmax.f32 %v188_v27, 0.0  ;;  %v121_v36 = vmul.f32 %v958_v2, %v50_v22  ;;  %v64_v26 = vld [vmem:[%s1375_s0 + $0x190] sm:$0xff]  ;;  %v65_v27 = vld [vmem:[%s1375_s0 + $0x198] sm:$0xff] }
  0x21   :  { %v122_v37 = vmul.f32 %v958_v2, %v51_v23  ;;  %v816_v39 = vpack.c.bf16 %v251_v30, %v250_v25  ;;  %v190_v40 = vadd.f32 %v965_v5, %v119_v31  ;;  %v191_v41 = vadd.f32 %v965_v5, %v120_v32  ;;  %v66_v32 = vld [vmem:[%s1375_s0 + $0x1a0] sm:$0xff] }
  0x22   :  { %911 = vst [vmem:[%s1378_s3 + $0x70] sm:$0xff] %v811_v29   ;;  %v123_v42 = vmul.f32 %v958_v2, %v52_v28  ;;  %v253_v43 = vmax.f32 %v189_v34, 0.0  ;;  %v192_v44 = vadd.f32 %v965_v5, %v121_v36  ;;  %v124_v46 = vmul.f32 %v958_v2, %v53_v33  ;;  %v67_v33 = vld [vmem:[%s1375_s0 + $0x1a8] sm:$0xff] }
  0x23   :  { %v193_v45 = vadd.f32 %v965_v5, %v122_v37  ;;  %912 = vst [vmem:[%s1378_s3 + $0x78] sm:$0xff] %v816_v39   ;;  %v254_v48 = vmax.f32 %v190_v40, 0.0  ;;  %v255_v49 = vmax.f32 %v191_v41, 0.0  ;;  %v125_v51 = vmul.f32 %v958_v2, %v54_v38  ;;  %v68_v38 = vld [vmem:[%s1375_s0 + $0x1b0] sm:$0xff] }
  0x24   :  { %v194_v50 = vadd.f32 %v965_v5, %v123_v42  ;;  %v821_v54 = vpack.c.bf16 %v253_v43, %v252_v35  ;;  %v256_v55 = vmax.f32 %v192_v44, 0.0  ;;  %v195_v57 = vadd.f32 %v965_v5, %v124_v46  ;;  %v69_v43 = vld [vmem:[%s1375_s0 + $0x1b8] sm:$0xff] }
  0x25   :  { %v257_v56 = vmax.f32 %v193_v45, 0.0  ;;  %v826_v60 = vpack.c.bf16 %v255_v49, %v254_v48  ;;  %v126_v62 = vmul.f32 %v958_v2, %v55_v47  ;;  %v196_v63 = vadd.f32 %v965_v5, %v125_v51  ;;  %v70_v48 = vld [vmem:[%s1375_s0 + $0x1c0] sm:$0xff] }
  0x26   :  { %v258_v61 = vmax.f32 %v194_v50, 0.0  ;;  %913 = vst [vmem:[%s1378_s3 + $0x80] sm:$0xff] %v821_v54   ;;  %v259_v3 = vmax.f32 %v195_v57, 0.0  ;;  %v127_v4 = vmul.f32 %v958_v2, %v56_v52  ;;  %v128_v6 = vmul.f32 %v958_v2, %v57_v53  ;;  %v71_v57 = vld [vmem:[%s1375_s0 + $0x1c8] sm:$0xff] }
  0x27   :  { %v831_v1 = vpack.c.bf16 %v257_v56, %v256_v55  ;;  %914 = vst [vmem:[%s1378_s3 + $0x88] sm:$0xff] %v826_v60   ;;  %v197_v8 = vadd.f32 %v965_v5, %v126_v62  ;;  %v260_v9 = vmax.f32 %v196_v63, 0.0  ;;  %v129_v10 = vmul.f32 %v958_v2, %v58_v58  ;;  %v72_v62 = vld [vmem:[%s1375_s0 + $0x1d0] sm:$0xff]  ;;  %v73_v63 = vld [vmem:[%s1375_s0 + $0x1d8] sm:$0xff] }
  0x28   :  { %v130_v11 = vmul.f32 %v958_v2, %v59_v59  ;;  %v836_v13 = vpack.c.bf16 %v259_v3, %v258_v61  ;;  %v198_v14 = vadd.f32 %v965_v5, %v127_v4  ;;  %v199_v15 = vadd.f32 %v965_v5, %v128_v6  ;;  %v74_v6 = vld [vmem:[%s1375_s0 + $0x1e0] sm:$0xff] }
  0x29   :  { %915 = vst [vmem:[%s1378_s3 + $0x90] sm:$0xff] %v831_v1   ;;  %v131_v16 = vmul.f32 %v958_v2, %v60_v0  ;;  %v261_v17 = vmax.f32 %v197_v8, 0.0  ;;  %v200_v18 = vadd.f32 %v965_v5, %v129_v10  ;;  %v132_v20 = vmul.f32 %v958_v2, %v61_v7  ;;  %v75_v7 = vld [vmem:[%s1375_s0 + $0x1e8] sm:$0xff] }
  0x2a   :  { %v201_v19 = vadd.f32 %v965_v5, %v130_v11  ;;  %916 = vst [vmem:[%s1378_s3 + $0x98] sm:$0xff] %v836_v13   ;;  %v262_v22 = vmax.f32 %v198_v14, 0.0  ;;  %v263_v23 = vmax.f32 %v199_v15, 0.0  ;;  %v133_v25 = vmul.f32 %v958_v2, %v62_v12  ;;  %v76_v12 = vld [vmem:[%s1375_s0 + $0x1f0] sm:$0xff] }
  0x2b   :  { %v202_v24 = vadd.f32 %v965_v5, %v131_v16  ;;  %v841_v28 = vpack.c.bf16 %v261_v17, %v260_v9  ;;  %v264_v29 = vmax.f32 %v200_v18, 0.0  ;;  %v203_v31 = vadd.f32 %v965_v5, %v132_v20  ;;  %v77_v17 = vld [vmem:[%s1375_s0 + $0x1f8] sm:$0xff] }
  0x2c   :  { %v265_v30 = vmax.f32 %v201_v19, 0.0  ;;  %v846_v34 = vpack.c.bf16 %v263_v23, %v262_v22  ;;  %v134_v36 = vmul.f32 %v958_v2, %v63_v21  ;;  %v204_v37 = vadd.f32 %v965_v5, %v133_v25 }
  0x2d   :  { %v266_v35 = vmax.f32 %v202_v24, 0.0  ;;  %917 = vst [vmem:[%s1378_s3 + $0xa0] sm:$0xff] %v841_v28   ;;  %v267_v40 = vmax.f32 %v203_v31, 0.0  ;;  %v135_v41 = vmul.f32 %v958_v2, %v64_v26  ;;  %v136_v42 = vmul.f32 %v958_v2, %v65_v27 }
  0x2e   :  { %v851_v39 = vpack.c.bf16 %v265_v30, %v264_v29  ;;  %918 = vst [vmem:[%s1378_s3 + $0xa8] sm:$0xff] %v846_v34   ;;  %v205_v44 = vadd.f32 %v965_v5, %v134_v36  ;;  %v268_v45 = vmax.f32 %v204_v37, 0.0  ;;  %v137_v46 = vmul.f32 %v958_v2, %v66_v32 }
  0x2f   :  { %v138_v47 = vmul.f32 %v958_v2, %v67_v33  ;;  %v856_v49 = vpack.c.bf16 %v267_v40, %v266_v35  ;;  %v206_v50 = vadd.f32 %v965_v5, %v135_v41  ;;  %v207_v51 = vadd.f32 %v965_v5, %v136_v42 }
  0x30   :  { %919 = vst [vmem:[%s1378_s3 + $0xb0] sm:$0xff] %v851_v39   ;;  %v139_v52 = vmul.f32 %v958_v2, %v68_v38  ;;  %v269_v53 = vmax.f32 %v205_v44, 0.0  ;;  %v208_v54 = vadd.f32 %v965_v5, %v137_v46  ;;  %v140_v56 = vmul.f32 %v958_v2, %v69_v43 }
  0x31   :  { %v209_v55 = vadd.f32 %v965_v5, %v138_v47  ;;  %920 = vst [vmem:[%s1378_s3 + $0xb8] sm:$0xff] %v856_v49   ;;  %v270_v58 = vmax.f32 %v206_v50, 0.0  ;;  %v271_v59 = vmax.f32 %v207_v51, 0.0  ;;  %v141_v61 = vmul.f32 %v958_v2, %v70_v48 }
  0x32   :  { %v210_v60 = vadd.f32 %v965_v5, %v139_v52  ;;  %v861_v0 = vpack.c.bf16 %v269_v53, %v268_v45  ;;  %v272_v1 = vmax.f32 %v208_v54, 0.0  ;;  %v211_v4 = vadd.f32 %v965_v5, %v140_v56 }
  0x33   :  { %v273_v3 = vmax.f32 %v209_v55, 0.0  ;;  %v866_v8 = vpack.c.bf16 %v271_v59, %v270_v58  ;;  %v142_v10 = vmul.f32 %v958_v2, %v71_v57  ;;  %v212_v11 = vadd.f32 %v965_v5, %v141_v61 }
  0x34   :  { %v274_v9 = vmax.f32 %v210_v60, 0.0  ;;  %921 = vst [vmem:[%s1378_s3 + $0xc0] sm:$0xff] %v861_v0   ;;  %v275_v14 = vmax.f32 %v211_v4, 0.0  ;;  %v143_v15 = vmul.f32 %v958_v2, %v72_v62  ;;  %v144_v16 = vmul.f32 %v958_v2, %v73_v63 }
  0x35   :  { %v871_v13 = vpack.c.bf16 %v273_v3, %v272_v1  ;;  %922 = vst [vmem:[%s1378_s3 + $0xc8] sm:$0xff] %v866_v8   ;;  %v213_v18 = vadd.f32 %v965_v5, %v142_v10  ;;  %v276_v19 = vmax.f32 %v212_v11, 0.0  ;;  %v145_v20 = vmul.f32 %v958_v2, %v74_v6 }
  0x36   :  { %v146_v21 = vmul.f32 %v958_v2, %v75_v7  ;;  %v876_v22 = vpack.c.bf16 %v275_v14, %v274_v9  ;;  %v214_v23 = vadd.f32 %v965_v5, %v143_v15  ;;  %v215_v24 = vadd.f32 %v965_v5, %v144_v16 }
  0x37   :  { %923 = vst [vmem:[%s1378_s3 + $0xd0] sm:$0xff] %v871_v13   ;;  %v147_v25 = vmul.f32 %v958_v2, %v76_v12  ;;  %v277_v26 = vmax.f32 %v213_v18, 0.0  ;;  %v216_v27 = vadd.f32 %v965_v5, %v145_v20  ;;  %v148_v29 = vmul.f32 %v958_v2, %v77_v17 }
  0x38   :  { %v217_v28 = vadd.f32 %v965_v5, %v146_v21  ;;  %924 = vst [vmem:[%s1378_s3 + $0xd8] sm:$0xff] %v876_v22   ;;  %v278_v30 = vmax.f32 %v214_v23, 0.0  ;;  %v279_v31 = vmax.f32 %v215_v24, 0.0 }
  0x39   :  { %v218_v32 = vadd.f32 %v965_v5, %v147_v25  ;;  %v881_v33 = vpack.c.bf16 %v277_v26, %v276_v19  ;;  %v280_v34 = vmax.f32 %v216_v27, 0.0  ;;  %v219_v36 = vadd.f32 %v965_v5, %v148_v29 }
  0x3a   :  { %v281_v35 = vmax.f32 %v217_v28, 0.0  ;;  %v886_v37 = vpack.c.bf16 %v279_v31, %v278_v30 }
  0x3b   :  { %v282_v38 = vmax.f32 %v218_v32, 0.0  ;;  %925 = vst [vmem:[%s1378_s3 + $0xe0] sm:$0xff] %v881_v33   ;;  %v283_v39 = vmax.f32 %v219_v36, 0.0 }
  0x3c   :  { %v891_v2 = vpack.c.bf16 %v281_v35, %v280_v34  ;;  %926 = vst [vmem:[%s1378_s3 + $0xe8] sm:$0xff] %v886_v37  }
  0x3d   :  { %v896_v40 = vpack.c.bf16 %v283_v39, %v282_v38 }
  0x3e   :  { %927 = vst [vmem:[%s1378_s3 + $0xf0] sm:$0xff] %v891_v2  }
  0x3f   :  { %928 = vst [vmem:[%s1378_s3 + $0xf8] sm:$0xff] %v896_v40  }

// kernel: conv_block_forward.4
= control target key start
LH: loop header
LB: loop body
LE: loop exit
PB: predicated region body
PF: predicated region fallthrough
CT: control target
= control target key end

     0   :  { %v1190_v1 = vmov 0   ;;  %vm366_vm0 = vcmask 1041408   ;;  %vm269_vm1 = vcmask 293888   ;;  %s1977_s1 = inlined_call_operand.vmem [shape: bf16[36,256], index: 1, kind: input, shape index: {}]   ;;  %s1978_s0 = inlined_call_operand.vmem [shape: bf16[512,36], index: 0, kind: input, shape index: {}]   ;;  %s1979_s2 = inlined_call_operand.vmem [shape: f32[512,128], index: 2, kind: output, shape index: {0}]   ;;  %s1980_s3 = inlined_call_operand.vmem [shape: f32[512,128], index: 3, kind: output, shape index: {1}]   ;;  %s1981_s4 = inlined_call_operand.vmem [shape: f32[8,128], index: 4, kind: output, shape index: {2}]  }
   0x1   :  { %v1150_v0 = vld [vmem:[%s1977_s1 + $0x4] ss:$8 sps:$4 sm:$0xff]   ;;  %405 = vmatprep.mubr.bf16.mxu0 %v1190_v1  ;;  %565 = vmatprep.mubr.bf16.mxu1 %v1190_v1  ;;  %v1152_v2 = vld [vmem:[%s1977_s1] ss:$8 sps:$4 sm:$0xff]   ;;  %v1153_v3 = vld [vmem:[%s1977_s1 + $0x14] ss:$8 sps:$4 sm:$0xff]  }
   0x2   :  { %373 = vmatprep.subr.bf16.mxu0 %v1150_v0  ;;  %v83_v4 = vld [vmem:[%s1977_s1 + $0x20] sm:$0x33]  ;;  %1142 = vmatprep.subr.bf16.mxu1 %v1150_v0  ;;  %v1155_v5 = vld [vmem:[%s1977_s1 + $0x10] ss:$8 sps:$4 sm:$0xff]   ;;  %v1159_v11 = vld [vmem:[%s1978_s0 + $0x8] sm:$0xff]  }
   0x3   :  { %374 = vmatpush1.bf16.msra.mxu0 %v1152_v2  ;;  %1145 = vmatpush1.bf16.msra.mxu1 %v1152_v2  ;;  %v1108_v6 = vcombine.high %v83_v4, %v83_v4  ;;  %v1107_v7 = vcombine.low %v83_v4, %v83_v4  ;;  %v1158_v9 = vld [vmem:[%s1978_s0] sm:$0xff]   ;;  %v1168_v12 = vld [vmem:[%s1978_s0 + $0x88] sm:$0xff]   ;;  %v1160_v13 = vld [vmem:[%s1978_s0 + $0x10] sm:$0xff]  }
   0x4   :  { %375 = vmatprep.subr.bf16.mxu0 %v1153_v3  ;;  %1143 = vmatprep.subr.bf16.mxu1 %v1153_v3  ;;  %v1166_v10 = vld [vmem:[%s1978_s0 + $0x80] sm:$0xff]   ;;  %v1170_v14 = vld [vmem:[%s1978_s0 + $0x90] sm:$0xff]   ;;  %v1161_v15 = vld [vmem:[%s1978_s0 + $0x18] sm:$0xff]  }
   0x5   :  { %v368_v8 = vsel %vm366_vm0, %v1107_v7, 0  ;;  %v1172_v16 = vld [vmem:[%s1978_s0 + $0x98] sm:$0xff]   ;;  %v1162_v17 = vld [vmem:[%s1978_s0 + $0x20] sm:$0xff]   ;;  %v1163_v19 = vld [vmem:[%s1978_s0 + $0x28] sm:$0xff]  }
   0x6   :  { %v1174_v18 = vld [vmem:[%s1978_s0 + $0xa0] sm:$0xff]   ;;  %v1176_v20 = vld [vmem:[%s1978_s0 + $0xa8] sm:$0xff]   ;;  %v1164_v21 = vld [vmem:[%s1978_s0 + $0x30] sm:$0xff]  }
   0x7   :  { %376 = vmatpush1.bf16.msra.mxu0 %v1155_v5  ;;  %1146 = vmatpush1.bf16.msra.mxu1 %v1155_v5  ;;  %v1178_v22 = vld [vmem:[%s1978_s0 + $0xb0] sm:$0xff]   ;;  %v1165_v23 = vld [vmem:[%s1978_s0 + $0x38] sm:$0xff]   ;;  %v1167_v25 = vld [vmem:[%s1978_s0 + $0x40] sm:$0xff]  }
   0x8   :  { %1109 = vmatprep.subr.msk.bf16.mxu0 %vm366_vm0, %v1108_v6  ;;  %1144 = vmatprep.subr.msk.bf16.mxu1 %vm366_vm0, %v1108_v6  ;;  %v1180_v24 = vld [vmem:[%s1978_s0 + $0xb8] sm:$0xff]   ;;  %v1182_v26 = vld [vmem:[%s1978_s0 + $0xc0] sm:$0xff]   ;;  %v1169_v27 = vld [vmem:[%s1978_s0 + $0x48] sm:$0xff]  }
   0x9   :  { %v1183_v28 = vld [vmem:[%s1978_s0 + $0xc8] sm:$0xff]   ;;  %v1171_v29 = vld [vmem:[%s1978_s0 + $0x50] sm:$0xff]   ;;  %v1173_v31 = vld [vmem:[%s1978_s0 + $0x58] sm:$0xff]  }
   0xa   :  { %v1184_v30 = vld [vmem:[%s1978_s0 + $0xd0] sm:$0xff]   ;;  %v1185_v32 = vld [vmem:[%s1978_s0 + $0xd8] sm:$0xff]   ;;  %v1175_v33 = vld [vmem:[%s1978_s0 + $0x60] sm:$0xff]  }
   0xb   :  { %378 = vmatpush1.bf16.msra.mxu0 %v368_v8  ;;  %1147 = vmatpush1.bf16.msra.mxu1 %v368_v8  ;;  %v1186_v34 = vld [vmem:[%s1978_s0 + $0xe0] sm:$0xff]   ;;  %v1177_v35 = vld [vmem:[%s1978_s0 + $0x68] sm:$0xff]   ;;  %v1179_v37 = vld [vmem:[%s1978_s0 + $0x70] sm:$0xff]  }
   0xc   :  { %v1187_v36 = vld [vmem:[%s1978_s0 + $0xe8] sm:$0xff]   ;;  %v1188_v38 = vld [vmem:[%s1978_s0 + $0xf0] sm:$0xff]   ;;  %v1181_v39 = vld [vmem:[%s1978_s0 + $0x78] sm:$0xff]  }
   0xd   :  { %v1189_v40 = vld [vmem:[%s1978_s0 + $0xf8] sm:$0xff]  }
   0xe   :  { %1110 = vmatmul.mubr.msk.bf16.vlgmr.msra.gmra.mrb[0].mxu0 %vm269_vm1, %v1158_v9  ;;  %1126 = vmatmul.mubr.msk.bf16.vlgmr.msra.gmra.mrb[0].mxu1 %vm269_vm1, %v1166_v10 }
   0xf   :  { %415 = vmatprep.mubr.bf16.mxu0 %v1190_v1  ;;  %575 = vmatprep.mubr.bf16.mxu1 %v1190_v1 }
  0x16   :  { %1111 = vmatmul.mubr.msk.bf16.gmra.mrb[4].mxu0 %vm269_vm1, %v1159_v11  ;;  %1127 = vmatmul.mubr.msk.bf16.gmra.mrb[4].mxu1 %vm269_vm1, %v1168_v12 }
  0x17   :  { %425 = vmatprep.mubr.bf16.mxu0 %v1190_v1  ;;  %585 = vmatprep.mubr.bf16.mxu1 %v1190_v1 }
  0x1e   :  { %1112 = vmatmul.mubr.msk.bf16.gmra.mrb[8].mxu0 %vm269_vm1, %v1160_v13  ;;  %1128 = vmatmul.mubr.msk.bf16.gmra.mrb[8].mxu1 %vm269_vm1, %v1170_v14 }
  0x1f   :  { %435 = vmatprep.mubr.bf16.mxu0 %v1190_v1  ;;  %595 = vmatprep.mubr.bf16.mxu1 %v1190_v1 }
  0x26   :  { %1113 = vmatmul.mubr.msk.bf16.gmra.mrb[12].mxu0 %vm269_vm1, %v1161_v15  ;;  %1129 = vmatmul.mubr.msk.bf16.gmra.mrb[12].mxu1 %vm269_vm1, %v1172_v16 }
  0x27   :  { %445 = vmatprep.mubr.bf16.mxu0 %v1190_v1  ;;  %605 = vmatprep.mubr.bf16.mxu1 %v1190_v1 }
  0x2e   :  { %1114 = vmatmul.mubr.msk.bf16.gmra.mrb[16].mxu0 %vm269_vm1, %v1162_v17  ;;  %1130 = vmatmul.mubr.msk.bf16.gmra.mrb[16].mxu1 %vm269_vm1, %v1174_v18 }
  0x2f   :  { %455 = vmatprep.mubr.bf16.mxu0 %v1190_v1  ;;  %615 = vmatprep.mubr.bf16.mxu1 %v1190_v1 }
  0x36   :  { %1115 = vmatmul.mubr.msk.bf16.gmra.mrb[20].mxu0 %vm269_vm1, %v1163_v19  ;;  %1131 = vmatmul.mubr.msk.bf16.gmra.mrb[20].mxu1 %vm269_vm1, %v1176_v20 }
  0x37   :  { %465 = vmatprep.mubr.bf16.mxu0 %v1190_v1  ;;  %625 = vmatprep.mubr.bf16.mxu1 %v1190_v1 }
  0x3e   :  { %1116 = vmatmul.mubr.msk.bf16.gmra.mrb[24].mxu0 %vm269_vm1, %v1164_v21  ;;  %1132 = vmatmul.mubr.msk.bf16.gmra.mrb[24].mxu1 %vm269_vm1, %v1178_v22 }
  0x3f   :  { %475 = vmatprep.mubr.bf16.mxu0 %v1190_v1  ;;  %635 = vmatprep.mubr.bf16.mxu1 %v1190_v1 }
  0x46   :  { %1117 = vmatmul.mubr.msk.bf16.gmra.mrb[28].mxu0 %vm269_vm1, %v1165_v23  ;;  %1133 = vmatmul.mubr.msk.bf16.gmra.mrb[28].mxu1 %vm269_vm1, %v1180_v24 }
  0x47   :  { %485 = vmatprep.mubr.bf16.mxu0 %v1190_v1  ;;  %645 = vmatprep.mubr.bf16.mxu1 %v1190_v1 }
  0x4e   :  { %1118 = vmatmul.mubr.msk.bf16.gmra.mrb[32].mxu0 %vm269_vm1, %v1167_v25  ;;  %1134 = vmatmul.mubr.msk.bf16.gmra.mrb[32].mxu1 %vm269_vm1, %v1182_v26 }
  0x4f   :  { %495 = vmatprep.mubr.bf16.mxu0 %v1190_v1  ;;  %655 = vmatprep.mubr.bf16.mxu1 %v1190_v1 }
  0x56   :  { %1119 = vmatmul.mubr.msk.bf16.gmra.mrb[36].mxu0 %vm269_vm1, %v1169_v27  ;;  %1135 = vmatmul.mubr.msk.bf16.gmra.mrb[36].mxu1 %vm269_vm1, %v1183_v28 }
  0x57   :  { %505 = vmatprep.mubr.bf16.mxu0 %v1190_v1  ;;  %665 = vmatprep.mubr.bf16.mxu1 %v1190_v1 }
  0x5e   :  { %1120 = vmatmul.mubr.msk.bf16.gmra.mrb[40].mxu0 %vm269_vm1, %v1171_v29  ;;  %1136 = vmatmul.mubr.msk.bf16.gmra.mrb[40].mxu1 %vm269_vm1, %v1184_v30 }
  0x5f   :  { %515 = vmatprep.mubr.bf16.mxu0 %v1190_v1  ;;  %675 = vmatprep.mubr.bf16.mxu1 %v1190_v1 }
  0x66   :  { %1121 = vmatmul.mubr.msk.bf16.gmra.mrb[44].mxu0 %vm269_vm1, %v1173_v31  ;;  %1137 = vmatmul.mubr.msk.bf16.gmra.mrb[44].mxu1 %vm269_vm1, %v1185_v32 }
  0x67   :  { %525 = vmatprep.mubr.bf16.mxu0 %v1190_v1  ;;  %685 = vmatprep.mubr.bf16.mxu1 %v1190_v1 }
  0x6e   :  { %1122 = vmatmul.mubr.msk.bf16.gmra.mrb[48].mxu0 %vm269_vm1, %v1175_v33  ;;  %1138 = vmatmul.mubr.msk.bf16.gmra.mrb[48].mxu1 %vm269_vm1, %v1186_v34 }
  0x6f   :  { %535 = vmatprep.mubr.bf16.mxu0 %v1190_v1  ;;  %695 = vmatprep.mubr.bf16.mxu1 %v1190_v1 }
  0x76   :  { %1123 = vmatmul.mubr.msk.bf16.gmra.mrb[52].mxu0 %vm269_vm1, %v1177_v35  ;;  %1139 = vmatmul.mubr.msk.bf16.gmra.mrb[52].mxu1 %vm269_vm1, %v1187_v36 }
  0x77   :  { %545 = vmatprep.mubr.bf16.mxu0 %v1190_v1  ;;  %705 = vmatprep.mubr.bf16.mxu1 %v1190_v1 }
  0x7e   :  { %1124 = vmatmul.mubr.msk.bf16.gmra.mrb[56].mxu0 %vm269_vm1, %v1179_v37  ;;  %1140 = vmatmul.mubr.msk.bf16.gmra.mrb[56].mxu1 %vm269_vm1, %v1188_v38 }
  0x7f   :  { %555 = vmatprep.mubr.bf16.mxu0 %v1190_v1  ;;  %715 = vmatprep.mubr.bf16.mxu1 %v1190_v1 }
  0x86   :  { %1125 = vmatmul.mubr.msk.bf16.gmra.mrb[60].mxu0 %vm269_vm1, %v1181_v39  ;;  %1141 = vmatmul.mubr.msk.bf16.gmra.mrb[60].mxu1 %vm269_vm1, %v1189_v40 }
  0xe1   :  { %v407_v41 = vpop.f32.mrb[0].mxu0  ;;  %v1392_v42 = vpop.f32.mrb[0].mxu1 }
  0xe2   :  { %726 = vst [vmem:[%s1979_s2] sm:$0xff] %v407_v41  ;;  %v409_v43 = vpop.f32.mrb[1].mxu0  ;;  %758 = vst [vmem:[%s1979_s2 + $0x100] sm:$0xff] %v1392_v42  ;;  %v569_v44 = vpop.f32.mrb[1].mxu1  ;;  %v924_v47 = vmul.f32 %v407_v41, %v407_v41 }
  0xe3   :  { %790 = vst [vmem:[%s1980_s3] sm:$0xff] %v409_v43  ;;  %v411_v45 = vpop.f32.mrb[2].mxu0  ;;  %822 = vst [vmem:[%s1980_s3 + $0x100] sm:$0xff] %v569_v44  ;;  %v1407_v46 = vpop.f32.mrb[2].mxu1 }
  0xe4   :  { %727 = vst [vmem:[%s1979_s2 + $0x8] sm:$0xff] %v411_v45  ;;  %v854_v48 = vadd.f32 %v411_v45, %v407_v41  ;;  %v925_v49 = vmul.f32 %v411_v45, %v411_v45  ;;  %v413_v50 = vpop.f32.mrb[3].mxu0  ;;  %759 = vst [vmem:[%s1979_s2 + $0x108] sm:$0xff] %v1407_v46  ;;  %v573_v51 = vpop.f32.mrb[3].mxu1 }
  0xe5   :  { %791 = vst [vmem:[%s1980_s3 + $0x8] sm:$0xff] %v413_v50  ;;  %823 = vst [vmem:[%s1980_s3 + $0x108] sm:$0xff] %v573_v51 }
  0xe6   :  { %v988_v52 = vadd.f32 %v925_v49, %v924_v47 }
  0xe9   :  { %v417_v53 = vpop.f32.mrb[4].mxu0  ;;  %v1422_v54 = vpop.f32.mrb[4].mxu1 }
  0xea   :  { %728 = vst [vmem:[%s1979_s2 + $0x10] sm:$0xff] %v417_v53  ;;  %v855_v55 = vadd.f32 %v854_v48, %v417_v53  ;;  %v926_v56 = vmul.f32 %v417_v53, %v417_v53  ;;  %v419_v57 = vpop.f32.mrb[5].mxu0  ;;  %760 = vst [vmem:[%s1979_s2 + $0x110] sm:$0xff] %v1422_v54  ;;  %v579_v58 = vpop.f32.mrb[5].mxu1 }
  0xeb   :  { %792 = vst [vmem:[%s1980_s3 + $0x10] sm:$0xff] %v419_v57  ;;  %v421_v59 = vpop.f32.mrb[6].mxu0  ;;  %824 = vst [vmem:[%s1980_s3 + $0x110] sm:$0xff] %v579_v58  ;;  %v1437_v60 = vpop.f32.mrb[6].mxu1 }
  0xec   :  { %v989_v61 = vadd.f32 %v988_v52, %v926_v56  ;;  %729 = vst [vmem:[%s1979_s2 + $0x18] sm:$0xff] %v421_v59  ;;  %v856_v62 = vadd.f32 %v855_v55, %v421_v59  ;;  %v927_v63 = vmul.f32 %v421_v59, %v421_v59  ;;  %v423_v0 = vpop.f32.mrb[7].mxu0  ;;  %761 = vst [vmem:[%s1979_s2 + $0x118] sm:$0xff] %v1437_v60  ;;  %v583_v1 = vpop.f32.mrb[7].mxu1 }
  0xed   :  { %793 = vst [vmem:[%s1980_s3 + $0x18] sm:$0xff] %v423_v0  ;;  %825 = vst [vmem:[%s1980_s3 + $0x118] sm:$0xff] %v583_v1 }
  0xee   :  { %v990_v2 = vadd.f32 %v989_v61, %v927_v63 }
  0xf1   :  { %v427_v3 = vpop.f32.mrb[8].mxu0  ;;  %v1452_v4 = vpop.f32.mrb[8].mxu1 }
  0xf2   :  { %730 = vst [vmem:[%s1979_s2 + $0x20] sm:$0xff] %v427_v3  ;;  %v857_v5 = vadd.f32 %v856_v62, %v427_v3  ;;  %v928_v6 = vmul.f32 %v427_v3, %v427_v3  ;;  %v429_v7 = vpop.f32.mrb[9].mxu0  ;;  %762 = vst [vmem:[%s1979_s2 + $0x120] sm:$0xff] %v1452_v4  ;;  %v589_v8 = vpop.f32.mrb[9].mxu1 }
  0xf3   :  { %794 = vst [vmem:[%s1980_s3 + $0x20] sm:$0xff] %v429_v7  ;;  %v431_v9 = vpop.f32.mrb[10].mxu0  ;;  %826 = vst [vmem:[%s1980_s3 + $0x120] sm:$0xff] %v589_v8  ;;  %v1467_v10 = vpop.f32.mrb[10].mxu1 }
  0xf4   :  { %v991_v11 = vadd.f32 %v990_v2, %v928_v6  ;;  %731 = vst [vmem:[%s1979_s2 + $0x28] sm:$0xff] %v431_v9  ;;  %v858_v12 = vadd.f32 %v857_v5, %v431_v9  ;;  %v929_v13 = vmul.f32 %v431_v9, %v431_v9  ;;  %v433_v14 = vpop.f32.mrb[11].mxu0  ;;  %763 = vst [vmem:[%s1979_s2 + $0x128] sm:$0xff] %v1467_v10  ;;  %v593_v15 = vpop.f32.mrb[11].mxu1 }
  0xf5   :  { %795 = vst [vmem:[%s1980_s3 + $0x28] sm:$0xff] %v433_v14  ;;  %827 = vst [vmem:[%s1980_s3 + $0x128] sm:$0xff] %v593_v15 }
  0xf6   :  { %v992_v16 = vadd.f32 %v991_v11, %v929_v13 }
  0xf9   :  { %v437_v17 = vpop.f32.mrb[12].mxu0  ;;  %v1482_v18 = vpop.f32.mrb[12].mxu1 }
  0xfa   :  { %732 = vst [vmem:[%s1979_s2 + $0x30] sm:$0xff] %v437_v17  ;;  %v859_v19 = vadd.f32 %v858_v12, %v437_v17  ;;  %v930_v20 = vmul.f32 %v437_v17, %v437_v17  ;;  %v439_v21 = vpop.f32.mrb[13].mxu0  ;;  %764 = vst [vmem:[%s1979_s2 + $0x130] sm:$0xff] %v1482_v18  ;;  %v599_v22 = vpop.f32.mrb[13].mxu1 }
  0xfb   :  { %796 = vst [vmem:[%s1980_s3 + $0x30] sm:$0xff] %v439_v21  ;;  %v441_v23 = vpop.f32.mrb[14].mxu0  ;;  %828 = vst [vmem:[%s1980_s3 + $0x130] sm:$0xff] %v599_v22  ;;  %v1497_v24 = vpop.f32.mrb[14].mxu1 }
  0xfc   :  { %v993_v25 = vadd.f32 %v992_v16, %v930_v20  ;;  %733 = vst [vmem:[%s1979_s2 + $0x38] sm:$0xff] %v441_v23  ;;  %v860_v26 = vadd.f32 %v859_v19, %v441_v23  ;;  %v931_v27 = vmul.f32 %v441_v23, %v441_v23  ;;  %v443_v28 = vpop.f32.mrb[15].mxu0  ;;  %765 = vst [vmem:[%s1979_s2 + $0x138] sm:$0xff] %v1497_v24  ;;  %v603_v29 = vpop.f32.mrb[15].mxu1 }
  0xfd   :  { %797 = vst [vmem:[%s1980_s3 + $0x38] sm:$0xff] %v443_v28  ;;  %829 = vst [vmem:[%s1980_s3 + $0x138] sm:$0xff] %v603_v29 }
  0xfe   :  { %v994_v30 = vadd.f32 %v993_v25, %v931_v27 }
 0x101   :  { %v447_v31 = vpop.f32.mrb[16].mxu0  ;;  %v1512_v32 = vpop.f32.mrb[16].mxu1 }
 0x102   :  { %734 = vst [vmem:[%s1979_s2 + $0x40] sm:$0xff] %v447_v31  ;;  %v861_v33 = vadd.f32 %v860_v26, %v447_v31  ;;  %v932_v34 = vmul.f32 %v447_v31, %v447_v31  ;;  %v449_v35 = vpop.f32.mrb[17].mxu0  ;;  %766 = vst [vmem:[%s1979_s2 + $0x140] sm:$0xff] %v1512_v32  ;;  %v609_v36 = vpop.f32.mrb[17].mxu1 }
 0x103   :  { %798 = vst [vmem:[%s1980_s3 + $0x40] sm:$0xff] %v449_v35  ;;  %v451_v37 = vpop.f32.mrb[18].mxu0  ;;  %830 = vst [vmem:[%s1980_s3 + $0x140] sm:$0xff] %v609_v36  ;;  %v1527_v38 = vpop.f32.mrb[18].mxu1 }
 0x104   :  { %v995_v39 = vadd.f32 %v994_v30, %v932_v34  ;;  %735 = vst [vmem:[%s1979_s2 + $0x48] sm:$0xff] %v451_v37  ;;  %v862_v40 = vadd.f32 %v861_v33, %v451_v37  ;;  %v933_v41 = vmul.f32 %v451_v37, %v451_v37  ;;  %v453_v43 = vpop.f32.mrb[19].mxu0  ;;  %767 = vst [vmem:[%s1979_s2 + $0x148] sm:$0xff] %v1527_v38  ;;  %v613_v44 = vpop.f32.mrb[19].mxu1 }
 0x105   :  { %799 = vst [vmem:[%s1980_s3 + $0x48] sm:$0xff] %v453_v43  ;;  %831 = vst [vmem:[%s1980_s3 + $0x148] sm:$0xff] %v613_v44 }
 0x106   :  { %v996_v45 = vadd.f32 %v995_v39, %v933_v41 }
 0x109   :  { %v457_v47 = vpop.f32.mrb[20].mxu0  ;;  %v1542_v48 = vpop.f32.mrb[20].mxu1 }
 0x10a   :  { %736 = vst [vmem:[%s1979_s2 + $0x50] sm:$0xff] %v457_v47  ;;  %v863_v49 = vadd.f32 %v862_v40, %v457_v47  ;;  %v934_v50 = vmul.f32 %v457_v47, %v457_v47  ;;  %v459_v51 = vpop.f32.mrb[21].mxu0  ;;  %768 = vst [vmem:[%s1979_s2 + $0x150] sm:$0xff] %v1542_v48  ;;  %v619_v52 = vpop.f32.mrb[21].mxu1 }
 0x10b   :  { %800 = vst [vmem:[%s1980_s3 + $0x50] sm:$0xff] %v459_v51  ;;  %v461_v53 = vpop.f32.mrb[22].mxu0  ;;  %832 = vst [vmem:[%s1980_s3 + $0x150] sm:$0xff] %v619_v52  ;;  %v1557_v55 = vpop.f32.mrb[22].mxu1 }
 0x10c   :  { %v997_v56 = vadd.f32 %v996_v45, %v934_v50  ;;  %737 = vst [vmem:[%s1979_s2 + $0x58] sm:$0xff] %v461_v53  ;;  %v864_v57 = vadd.f32 %v863_v49, %v461_v53  ;;  %v935_v58 = vmul.f32 %v461_v53, %v461_v53  ;;  %v463_v59 = vpop.f32.mrb[23].mxu0  ;;  %769 = vst [vmem:[%s1979_s2 + $0x158] sm:$0xff] %v1557_v55  ;;  %v623_v61 = vpop.f32.mrb[23].mxu1 }
 0x10d   :  { %801 = vst [vmem:[%s1980_s3 + $0x58] sm:$0xff] %v463_v59  ;;  %833 = vst [vmem:[%s1980_s3 + $0x158] sm:$0xff] %v623_v61 }
 0x10e   :  { %v998_v62 = vadd.f32 %v997_v56, %v935_v58 }
 0x111   :  { %v467_v63 = vpop.f32.mrb[24].mxu0  ;;  %v1572_v0 = vpop.f32.mrb[24].mxu1 }
 0x112   :  { %738 = vst [vmem:[%s1979_s2 + $0x60] sm:$0xff] %v467_v63  ;;  %v865_v1 = vadd.f32 %v864_v57, %v467_v63  ;;  %v936_v2 = vmul.f32 %v467_v63, %v467_v63  ;;  %v469_v3 = vpop.f32.mrb[25].mxu0  ;;  %770 = vst [vmem:[%s1979_s2 + $0x160] sm:$0xff] %v1572_v0  ;;  %v629_v5 = vpop.f32.mrb[25].mxu1 }
 0x113   :  { %802 = vst [vmem:[%s1980_s3 + $0x60] sm:$0xff] %v469_v3  ;;  %v471_v6 = vpop.f32.mrb[26].mxu0  ;;  %834 = vst [vmem:[%s1980_s3 + $0x160] sm:$0xff] %v629_v5  ;;  %v1587_v7 = vpop.f32.mrb[26].mxu1  ;;  %v1191_v3 = vmov 0.0  }
 0x114   :  { %v999_v8 = vadd.f32 %v998_v62, %v936_v2  ;;  %739 = vst [vmem:[%s1979_s2 + $0x68] sm:$0xff] %v471_v6  ;;  %v866_v9 = vadd.f32 %v865_v1, %v471_v6  ;;  %v937_v11 = vmul.f32 %v471_v6, %v471_v6  ;;  %v473_v12 = vpop.f32.mrb[27].mxu0  ;;  %771 = vst [vmem:[%s1979_s2 + $0x168] sm:$0xff] %v1587_v7  ;;  %v633_v13 = vpop.f32.mrb[27].mxu1 }
 0x115   :  { %803 = vst [vmem:[%s1980_s3 + $0x68] sm:$0xff] %v473_v12  ;;  %835 = vst [vmem:[%s1980_s3 + $0x168] sm:$0xff] %v633_v13 }
 0x116   :  { %v1000_v14 = vadd.f32 %v999_v8, %v937_v11  ;;  %1058 = vst [vmem:[%s1981_s4 + $0x2] sm:$0x3f] %v1191_v3 }
 0x119   :  { %v477_v15 = vpop.f32.mrb[28].mxu0  ;;  %v1602_v16 = vpop.f32.mrb[28].mxu1 }
 0x11a   :  { %740 = vst [vmem:[%s1979_s2 + $0x70] sm:$0xff] %v477_v15  ;;  %v867_v17 = vadd.f32 %v866_v9, %v477_v15  ;;  %v938_v19 = vmul.f32 %v477_v15, %v477_v15  ;;  %v479_v20 = vpop.f32.mrb[29].mxu0  ;;  %772 = vst [vmem:[%s1979_s2 + $0x170] sm:$0xff] %v1602_v16  ;;  %v639_v21 = vpop.f32.mrb[29].mxu1 }
 0x11b   :  { %804 = vst [vmem:[%s1980_s3 + $0x70] sm:$0xff] %v479_v20  ;;  %v481_v22 = vpop.f32.mrb[30].mxu0  ;;  %836 = vst [vmem:[%s1980_s3 + $0x170] sm:$0xff] %v639_v21  ;;  %v1617_v23 = vpop.f32.mrb[30].mxu1 }
 0x11c   :  { %v1001_v25 = vadd.f32 %v1000_v14, %v938_v19  ;;  %741 = vst [vmem:[%s1979_s2 + $0x78] sm:$0xff] %v481_v22  ;;  %v868_v26 = vadd.f32 %v867_v17, %v481_v22  ;;  %v939_v27 = vmul.f32 %v481_v22, %v481_v22  ;;  %v483_v28 = vpop.f32.mrb[31].mxu0  ;;  %773 = vst [vmem:[%s1979_s2 + $0x178] sm:$0xff] %v1617_v23  ;;  %v643_v29 = vpop.f32.mrb[31].mxu1 }
 0x11d   :  { %805 = vst [vmem:[%s1980_s3 + $0x78] sm:$0xff] %v483_v28  ;;  %837 = vst [vmem:[%s1980_s3 + $0x178] sm:$0xff] %v643_v29 }
 0x11e   :  { %v1002_v30 = vadd.f32 %v1001_v25, %v939_v27 }
 0x121   :  { %v487_v31 = vpop.f32.mrb[32].mxu0  ;;  %v1632_v33 = vpop.f32.mrb[32].mxu1 }
 0x122   :  { %742 = vst [vmem:[%s1979_s2 + $0x80] sm:$0xff] %v487_v31  ;;  %v869_v34 = vadd.f32 %v868_v26, %v487_v31  ;;  %v940_v35 = vmul.f32 %v487_v31, %v487_v31  ;;  %v489_v36 = vpop.f32.mrb[33].mxu0  ;;  %774 = vst [vmem:[%s1979_s2 + $0x180] sm:$0xff] %v1632_v33  ;;  %v649_v37 = vpop.f32.mrb[33].mxu1 }
 0x123   :  { %806 = vst [vmem:[%s1980_s3 + $0x80] sm:$0xff] %v489_v36  ;;  %v491_v39 = vpop.f32.mrb[34].mxu0  ;;  %838 = vst [vmem:[%s1980_s3 + $0x180] sm:$0xff] %v649_v37  ;;  %v1647_v40 = vpop.f32.mrb[34].mxu1 }
 0x124   :  { %v1003_v41 = vadd.f32 %v1002_v30, %v940_v35  ;;  %743 = vst [vmem:[%s1979_s2 + $0x88] sm:$0xff] %v491_v39  ;;  %v870_v43 = vadd.f32 %v869_v34, %v491_v39  ;;  %v941_v44 = vmul.f32 %v491_v39, %v491_v39  ;;  %v493_v45 = vpop.f32.mrb[35].mxu0  ;;  %775 = vst [vmem:[%s1979_s2 + $0x188] sm:$0xff] %v1647_v40  ;;  %v653_v47 = vpop.f32.mrb[35].mxu1 }
 0x125   :  { %807 = vst [vmem:[%s1980_s3 + $0x88] sm:$0xff] %v493_v45  ;;  %839 = vst [vmem:[%s1980_s3 + $0x188] sm:$0xff] %v653_v47 }
 0x126   :  { %v1004_v49 = vadd.f32 %v1003_v41, %v941_v44 }
 0x129   :  { %v497_v50 = vpop.f32.mrb[36].mxu0  ;;  %v1662_v51 = vpop.f32.mrb[36].mxu1 }
 0x12a   :  { %744 = vst [vmem:[%s1979_s2 + $0x90] sm:$0xff] %v497_v50  ;;  %v871_v52 = vadd.f32 %v870_v43, %v497_v50  ;;  %v942_v53 = vmul.f32 %v497_v50, %v497_v50  ;;  %v499_v56 = vpop.f32.mrb[37].mxu0  ;;  %776 = vst [vmem:[%s1979_s2 + $0x190] sm:$0xff] %v1662_v51  ;;  %v659_v57 = vpop.f32.mrb[37].mxu1 }
 0x12b   :  { %808 = vst [vmem:[%s1980_s3 + $0x90] sm:$0xff] %v499_v56  ;;  %v501_v58 = vpop.f32.mrb[38].mxu0  ;;  %840 = vst [vmem:[%s1980_s3 + $0x190] sm:$0xff] %v659_v57  ;;  %v1677_v59 = vpop.f32.mrb[38].mxu1 }
 0x12c   :  { %v1005_v61 = vadd.f32 %v1004_v49, %v942_v53  ;;  %745 = vst [vmem:[%s1979_s2 + $0x98] sm:$0xff] %v501_v58  ;;  %v872_v62 = vadd.f32 %v871_v52, %v501_v58  ;;  %v943_v63 = vmul.f32 %v501_v58, %v501_v58  ;;  %v503_v1 = vpop.f32.mrb[39].mxu0  ;;  %777 = vst [vmem:[%s1979_s2 + $0x198] sm:$0xff] %v1677_v59  ;;  %v663_v2 = vpop.f32.mrb[39].mxu1 }
 0x12d   :  { %809 = vst [vmem:[%s1980_s3 + $0x98] sm:$0xff] %v503_v1  ;;  %841 = vst [vmem:[%s1980_s3 + $0x198] sm:$0xff] %v663_v2 }
 0x12e   :  { %v1006_v5 = vadd.f32 %v1005_v61, %v943_v63 }
 0x131   :  { %v507_v6 = vpop.f32.mrb[40].mxu0  ;;  %v1695_v8 = vpop.f32.mrb[40].mxu1 }
 0x132   :  { %746 = vst [vmem:[%s1979_s2 + $0xa0] sm:$0xff] %v507_v6  ;;  %v873_v9 = vadd.f32 %v872_v62, %v507_v6  ;;  %v944_v11 = vmul.f32 %v507_v6, %v507_v6  ;;  %v509_v12 = vpop.f32.mrb[41].mxu0  ;;  %778 = vst [vmem:[%s1979_s2 + $0x1a0] sm:$0xff] %v1695_v8  ;;  %v669_v13 = vpop.f32.mrb[41].mxu1 }
 0x133   :  { %810 = vst [vmem:[%s1980_s3 + $0xa0] sm:$0xff] %v509_v12  ;;  %v511_v14 = vpop.f32.mrb[42].mxu0  ;;  %842 = vst [vmem:[%s1980_s3 + $0x1a0] sm:$0xff] %v669_v13  ;;  %v1710_v15 = vpop.f32.mrb[42].mxu1 }
 0x134   :  { %v1007_v17 = vadd.f32 %v1006_v5, %v944_v11  ;;  %747 = vst [vmem:[%s1979_s2 + $0xa8] sm:$0xff] %v511_v14  ;;  %v874_v19 = vadd.f32 %v873_v9, %v511_v14  ;;  %v945_v20 = vmul.f32 %v511_v14, %v511_v14  ;;  %v513_v21 = vpop.f32.mrb[43].mxu0  ;;  %779 = vst [vmem:[%s1979_s2 + $0x1a8] sm:$0xff] %v1710_v15  ;;  %v673_v22 = vpop.f32.mrb[43].mxu1 }
 0x135   :  { %811 = vst [vmem:[%s1980_s3 + $0xa8] sm:$0xff] %v513_v21  ;;  %843 = vst [vmem:[%s1980_s3 + $0x1a8] sm:$0xff] %v673_v22 }
 0x136   :  { %v1008_v25 = vadd.f32 %v1007_v17, %v945_v20 }
 0x139   :  { %v517_v26 = vpop.f32.mrb[44].mxu0  ;;  %v1725_v27 = vpop.f32.mrb[44].mxu1 }
 0x13a   :  { %748 = vst [vmem:[%s1979_s2 + $0xb0] sm:$0xff] %v517_v26  ;;  %v875_v28 = vadd.f32 %v874_v19, %v517_v26  ;;  %v946_v29 = vmul.f32 %v517_v26, %v517_v26  ;;  %v519_v30 = vpop.f32.mrb[45].mxu0  ;;  %780 = vst [vmem:[%s1979_s2 + $0x1b0] sm:$0xff] %v1725_v27  ;;  %v679_v31 = vpop.f32.mrb[45].mxu1 }
 0x13b   :  { %812 = vst [vmem:[%s1980_s3 + $0xb0] sm:$0xff] %v519_v30  ;;  %v521_v34 = vpop.f32.mrb[46].mxu0  ;;  %844 = vst [vmem:[%s1980_s3 + $0x1b0] sm:$0xff] %v679_v31  ;;  %v1740_v35 = vpop.f32.mrb[46].mxu1 }
 0x13c   :  { %v1009_v36 = vadd.f32 %v1008_v25, %v946_v29  ;;  %749 = vst [vmem:[%s1979_s2 + $0xb8] sm:$0xff] %v521_v34  ;;  %v876_v37 = vadd.f32 %v875_v28, %v521_v34  ;;  %v947_v39 = vmul.f32 %v521_v34, %v521_v34  ;;  %v523_v41 = vpop.f32.mrb[47].mxu0  ;;  %781 = vst [vmem:[%s1979_s2 + $0x1b8] sm:$0xff] %v1740_v35  ;;  %v683_v43 = vpop.f32.mrb[47].mxu1 }
 0x13d   :  { %813 = vst [vmem:[%s1980_s3 + $0xb8] sm:$0xff] %v523_v41  ;;  %845 = vst [vmem:[%s1980_s3 + $0x1b8] sm:$0xff] %v683_v43 }
 0x13e   :  { %v1010_v44 = vadd.f32 %v1009_v36, %v947_v39 }
 0x141   :  { %v527_v45 = vpop.f32.mrb[48].mxu0  ;;  %v1755_v47 = vpop.f32.mrb[48].mxu1 }
 0x142   :  { %750 = vst [vmem:[%s1979_s2 + $0xc0] sm:$0xff] %v527_v45  ;;  %v877_v49 = vadd.f32 %v876_v37, %v527_v45  ;;  %v948_v50 = vmul.f32 %v527_v45, %v527_v45  ;;  %v529_v52 = vpop.f32.mrb[49].mxu0  ;;  %782 = vst [vmem:[%s1979_s2 + $0x1c0] sm:$0xff] %v1755_v47  ;;  %v689_v53 = vpop.f32.mrb[49].mxu1 }
 0x143   :  { %814 = vst [vmem:[%s1980_s3 + $0xc0] sm:$0xff] %v529_v52  ;;  %v531_v56 = vpop.f32.mrb[50].mxu0  ;;  %846 = vst [vmem:[%s1980_s3 + $0x1c0] sm:$0xff] %v689_v53  ;;  %v1770_v57 = vpop.f32.mrb[50].mxu1 }
 0x144   :  { %v1011_v58 = vadd.f32 %v1010_v44, %v948_v50  ;;  %751 = vst [vmem:[%s1979_s2 + $0xc8] sm:$0xff] %v531_v56  ;;  %v878_v61 = vadd.f32 %v877_v49, %v531_v56  ;;  %v949_v62 = vmul.f32 %v531_v56, %v531_v56  ;;  %v533_v63 = vpop.f32.mrb[51].mxu0  ;;  %783 = vst [vmem:[%s1979_s2 + $0x1c8] sm:$0xff] %v1770_v57  ;;  %v693_v1 = vpop.f32.mrb[51].mxu1 }
 0x145   :  { %815 = vst [vmem:[%s1980_s3 + $0xc8] sm:$0xff] %v533_v63  ;;  %847 = vst [vmem:[%s1980_s3 + $0x1c8] sm:$0xff] %v693_v1 }
 0x146   :  { %v1012_v2 = vadd.f32 %v1011_v58, %v949_v62 }
 0x149   :  { %v537_v3 = vpop.f32.mrb[52].mxu0  ;;  %v1785_v5 = vpop.f32.mrb[52].mxu1 }
 0x14a   :  { %752 = vst [vmem:[%s1979_s2 + $0xd0] sm:$0xff] %v537_v3  ;;  %v879_v6 = vadd.f32 %v878_v61, %v537_v3  ;;  %v950_v9 = vmul.f32 %v537_v3, %v537_v3  ;;  %v539_v11 = vpop.f32.mrb[53].mxu0  ;;  %784 = vst [vmem:[%s1979_s2 + $0x1d0] sm:$0xff] %v1785_v5  ;;  %v699_v12 = vpop.f32.mrb[53].mxu1 }
 0x14b   :  { %816 = vst [vmem:[%s1980_s3 + $0xd0] sm:$0xff] %v539_v11  ;;  %v541_v13 = vpop.f32.mrb[54].mxu0  ;;  %848 = vst [vmem:[%s1980_s3 + $0x1d0] sm:$0xff] %v699_v12  ;;  %v1800_v14 = vpop.f32.mrb[54].mxu1  ;;  %v956_v11 = vmul.f32 %v1392_v42, %v1392_v42 }
 0x14c   :  { %v1013_v17 = vadd.f32 %v1012_v2, %v950_v9  ;;  %753 = vst [vmem:[%s1979_s2 + $0xd8] sm:$0xff] %v541_v13  ;;  %v880_v19 = vadd.f32 %v879_v6, %v541_v13  ;;  %v951_v20 = vmul.f32 %v541_v13, %v541_v13  ;;  %v543_v21 = vpop.f32.mrb[55].mxu0  ;;  %785 = vst [vmem:[%s1979_s2 + $0x1d8] sm:$0xff] %v1800_v14  ;;  %v703_v22 = vpop.f32.mrb[55].mxu1 }
 0x14d   :  { %817 = vst [vmem:[%s1980_s3 + $0xd8] sm:$0xff] %v543_v21  ;;  %849 = vst [vmem:[%s1980_s3 + $0x1d8] sm:$0xff] %v703_v22  ;;  %v958_v21 = vmul.f32 %v1422_v54, %v1422_v54 }
 0x14e   :  { %v1014_v25 = vadd.f32 %v1013_v17, %v951_v20  ;;  %v957_v17 = vmul.f32 %v1407_v46, %v1407_v46 }
 0x151   :  { %v547_v26 = vpop.f32.mrb[56].mxu0  ;;  %v1815_v28 = vpop.f32.mrb[56].mxu1 }
 0x152   :  { %754 = vst [vmem:[%s1979_s2 + $0xe0] sm:$0xff] %v547_v26  ;;  %v881_v29 = vadd.f32 %v880_v19, %v547_v26  ;;  %v952_v30 = vmul.f32 %v547_v26, %v547_v26  ;;  %v549_v31 = vpop.f32.mrb[57].mxu0  ;;  %786 = vst [vmem:[%s1979_s2 + $0x1e0] sm:$0xff] %v1815_v28  ;;  %v709_v34 = vpop.f32.mrb[57].mxu1  ;;  %v959_v26 = vmul.f32 %v1437_v60, %v1437_v60 }
 0x153   :  { %818 = vst [vmem:[%s1980_s3 + $0xe0] sm:$0xff] %v549_v31  ;;  %v551_v36 = vpop.f32.mrb[58].mxu0  ;;  %850 = vst [vmem:[%s1980_s3 + $0x1e0] sm:$0xff] %v709_v34  ;;  %v1830_v37 = vpop.f32.mrb[58].mxu1 }
 0x154   :  { %v1015_v39 = vadd.f32 %v1014_v25, %v952_v30  ;;  %755 = vst [vmem:[%s1979_s2 + $0xe8] sm:$0xff] %v551_v36  ;;  %v882_v41 = vadd.f32 %v881_v29, %v551_v36  ;;  %v953_v43 = vmul.f32 %v551_v36, %v551_v36  ;;  %v553_v44 = vpop.f32.mrb[59].mxu0  ;;  %787 = vst [vmem:[%s1979_s2 + $0x1e8] sm:$0xff] %v1830_v37  ;;  %v713_v45 = vpop.f32.mrb[59].mxu1 }
 0x155   :  { %819 = vst [vmem:[%s1980_s3 + $0xe8] sm:$0xff] %v553_v44  ;;  %851 = vst [vmem:[%s1980_s3 + $0x1e8] sm:$0xff] %v713_v45 }
 0x156   :  { %v1016_v49 = vadd.f32 %v1015_v39, %v953_v43 }
 0x159   :  { %v557_v50 = vpop.f32.mrb[60].mxu0  ;;  %v1845_v52 = vpop.f32.mrb[60].mxu1 }
 0x15a   :  { %756 = vst [vmem:[%s1979_s2 + $0xf0] sm:$0xff] %v557_v50  ;;  %v883_v53 = vadd.f32 %v882_v41, %v557_v50  ;;  %v954_v56 = vmul.f32 %v557_v50, %v557_v50  ;;  %v559_v58 = vpop.f32.mrb[61].mxu0  ;;  %788 = vst [vmem:[%s1979_s2 + $0x1f0] sm:$0xff] %v1845_v52  ;;  %v719_v61 = vpop.f32.mrb[61].mxu1 }
 0x15b   :  { %820 = vst [vmem:[%s1980_s3 + $0xf0] sm:$0xff] %v559_v58  ;;  %v561_v62 = vpop.f32.mrb[62].mxu0  ;;  %852 = vst [vmem:[%s1980_s3 + $0x1f0] sm:$0xff] %v719_v61  ;;  %v1860_v63 = vpop.f32.mrb[62].mxu1 }
 0x15c   :  { %v1017_v1 = vadd.f32 %v1016_v49, %v954_v56  ;;  %757 = vst [vmem:[%s1979_s2 + $0xf8] sm:$0xff] %v561_v62  ;;  %v884_v2 = vadd.f32 %v883_v53, %v561_v62  ;;  %v955_v3 = vmul.f32 %v561_v62, %v561_v62  ;;  %v563_v6 = vpop.f32.mrb[63].mxu0  ;;  %789 = vst [vmem:[%s1979_s2 + $0x1f8] sm:$0xff] %v1860_v63  ;;  %v723_v9 = vpop.f32.mrb[63].mxu1 }
 0x15d   :  { %821 = vst [vmem:[%s1980_s3 + $0xf8] sm:$0xff] %v563_v6  ;;  %853 = vst [vmem:[%s1980_s3 + $0x1f8] sm:$0xff] %v723_v9 }
 0x15e   :  { %v885_v12 = vadd.f32 %v884_v2, %v1392_v42  ;;  %v1018_v13 = vadd.f32 %v1017_v1, %v955_v3  ;;  %v960_v42 = vmul.f32 %v1452_v4, %v1452_v4 }
 0x160   :  { %v886_v19 = vadd.f32 %v885_v12, %v1407_v46  ;;  %v1019_v20 = vadd.f32 %v1018_v13, %v956_v11  ;;  %v961_v46 = vmul.f32 %v1467_v10, %v1467_v10 }
 0x162   :  { %v887_v22 = vadd.f32 %v886_v19, %v1422_v54  ;;  %v1020_v25 = vadd.f32 %v1019_v20, %v957_v17  ;;  %v962_v54 = vmul.f32 %v1482_v18, %v1482_v18  ;;  %v972_v19 = vmul.f32 %v1632_v33, %v1632_v33 }
 0x164   :  { %v888_v29 = vadd.f32 %v887_v22, %v1437_v60  ;;  %v1021_v30 = vadd.f32 %v1020_v25, %v958_v21  ;;  %v963_v60 = vmul.f32 %v1497_v24, %v1497_v24  ;;  %v973_v22 = vmul.f32 %v1647_v40, %v1647_v40 }
 0x166   :  { %v889_v31 = vadd.f32 %v888_v29, %v1452_v4  ;;  %v1022_v34 = vadd.f32 %v1021_v30, %v959_v26  ;;  %v964_v4 = vmul.f32 %v1512_v32, %v1512_v32  ;;  %v974_v26 = vmul.f32 %v1662_v51, %v1662_v51 }
 0x167   :  { %v975_v30 = vmul.f32 %v1677_v59, %v1677_v59 }
 0x168   :  { %v890_v36 = vadd.f32 %v889_v31, %v1467_v10  ;;  %v1023_v39 = vadd.f32 %v1022_v34, %v960_v42  ;;  %v965_v10 = vmul.f32 %v1527_v38, %v1527_v38  ;;  %v976_v31 = vmul.f32 %v1695_v8, %v1695_v8 }
 0x16a   :  { %v891_v41 = vadd.f32 %v890_v36, %v1482_v18  ;;  %v1024_v43 = vadd.f32 %v1023_v39, %v961_v46  ;;  %v966_v18 = vmul.f32 %v1542_v48, %v1542_v48  ;;  %v977_v46 = vmul.f32 %v1710_v15, %v1710_v15 }
 0x16b   :  { %v978_v39 = vmul.f32 %v1725_v27, %v1725_v27 }
 0x16c   :  { %v892_v44 = vadd.f32 %v891_v41, %v1497_v24  ;;  %v1025_v45 = vadd.f32 %v1024_v43, %v962_v54  ;;  %v967_v24 = vmul.f32 %v1557_v55, %v1557_v55  ;;  %v979_v41 = vmul.f32 %v1740_v35, %v1740_v35 }
 0x16e   :  { %v1026_v49 = vadd.f32 %v1025_v45, %v963_v60  ;;  %v893_v50 = vadd.f32 %v892_v44, %v1512_v32  ;;  %v968_v32 = vmul.f32 %v1572_v0, %v1572_v0  ;;  %v980_v60 = vmul.f32 %v1755_v47, %v1755_v47 }
 0x16f   :  { %v981_v45 = vmul.f32 %v1770_v57, %v1770_v57 }
 0x170   :  { %v894_v53 = vadd.f32 %v893_v50, %v1527_v38  ;;  %v1027_v56 = vadd.f32 %v1026_v49, %v964_v4  ;;  %v969_v38 = vmul.f32 %v1587_v7, %v1587_v7  ;;  %v982_v49 = vmul.f32 %v1785_v5, %v1785_v5 }
 0x172   :  { %v895_v58 = vadd.f32 %v894_v53, %v1542_v48  ;;  %v1028_v61 = vadd.f32 %v1027_v56, %v965_v10  ;;  %v970_v48 = vmul.f32 %v1602_v16, %v1602_v16  ;;  %v983_v10 = vmul.f32 %v1800_v14, %v1800_v14 }
 0x173   :  { %v984_v56 = vmul.f32 %v1815_v28, %v1815_v28 }
 0x174   :  { %v896_v62 = vadd.f32 %v895_v58, %v1557_v55  ;;  %v1029_v1 = vadd.f32 %v1028_v61, %v966_v18  ;;  %v971_v55 = vmul.f32 %v1617_v23, %v1617_v23  ;;  %v985_v58 = vmul.f32 %v1830_v37, %v1830_v37 }
 0x176   :  { %v897_v2 = vadd.f32 %v896_v62, %v1572_v0  ;;  %v1030_v3 = vadd.f32 %v1029_v1, %v967_v24  ;;  %v987_v1 = vmul.f32 %v1860_v63, %v1860_v63 }
 0x178   :  { %v898_v6 = vadd.f32 %v897_v2, %v1587_v7  ;;  %v1031_v9 = vadd.f32 %v1030_v3, %v968_v32 }
 0x17a   :  { %v899_v11 = vadd.f32 %v898_v6, %v1602_v16  ;;  %v1032_v12 = vadd.f32 %v1031_v9, %v969_v38 }
 0x17c   :  { %v900_v13 = vadd.f32 %v899_v11, %v1617_v23  ;;  %v1033_v17 = vadd.f32 %v1032_v12, %v970_v48 }
 0x17e   :  { %v901_v0 = vadd.f32 %v900_v13, %v1632_v33  ;;  %v1034_v20 = vadd.f32 %v1033_v17, %v971_v55 }
 0x180   :  { %v1035_v7 = vadd.f32 %v1034_v20, %v972_v19  ;;  %v902_v21 = vadd.f32 %v901_v0, %v1647_v40 }
 0x182   :  { %v1036_v16 = vadd.f32 %v1035_v7, %v973_v22  ;;  %v903_v25 = vadd.f32 %v902_v21, %v1662_v51 }
 0x184   :  { %v1037_v23 = vadd.f32 %v1036_v16, %v974_v26  ;;  %v904_v29 = vadd.f32 %v903_v25, %v1677_v59 }
 0x186   :  { %v1038_v33 = vadd.f32 %v1037_v23, %v975_v30  ;;  %v905_v42 = vadd.f32 %v904_v29, %v1695_v8 }
 0x188   :  { %v1039_v34 = vadd.f32 %v1038_v33, %v976_v31  ;;  %v906_v40 = vadd.f32 %v905_v42, %v1710_v15 }
 0x18a   :  { %v1040_v36 = vadd.f32 %v1039_v34, %v977_v46  ;;  %v907_v51 = vadd.f32 %v906_v40, %v1725_v27 }
 0x18c   :  { %v1041_v54 = vadd.f32 %v1040_v36, %v978_v39  ;;  %v908_v59 = vadd.f32 %v907_v51, %v1740_v35 }
 0x18e   :  { %v1042_v43 = vadd.f32 %v1041_v54, %v979_v41  ;;  %v909_v8 = vadd.f32 %v908_v59, %v1755_v47 }
 0x190   :  { %v1043_v44 = vadd.f32 %v1042_v43, %v980_v60  ;;  %v910_v15 = vadd.f32 %v909_v8, %v1770_v57 }
 0x192   :  { %v1044_v4 = vadd.f32 %v1043_v44, %v981_v45  ;;  %v911_v27 = vadd.f32 %v910_v15, %v1785_v5  ;;  %v986_v5 = vmul.f32 %v1845_v52, %v1845_v52 }
 0x194   :  { %v1045_v50 = vadd.f32 %v1044_v4, %v982_v49  ;;  %v912_v35 = vadd.f32 %v911_v27, %v1800_v14 }
 0x196   :  { %v1046_v53 = vadd.f32 %v1045_v50, %v983_v10  ;;  %v913_v47 = vadd.f32 %v912_v35, %v1815_v28 }
 0x198   :  { %v1047_v18 = vadd.f32 %v1046_v53, %v984_v56  ;;  %v914_v57 = vadd.f32 %v913_v47, %v1830_v37 }
 0x19a   :  { %v1048_v61 = vadd.f32 %v1047_v18, %v985_v58  ;;  %v915_v24 = vadd.f32 %v914_v57, %v1845_v52 }
 0x19c   :  { %v1049_v62 = vadd.f32 %v1048_v61, %v986_v5  ;;  %v916_v14 = vadd.f32 %v915_v24, %v1860_v63 }
 0x19e   :  { %v917_v32 = vrot.slane %v916_v14, 4  ;;  %v1050_v28 = vadd.f32 %v1049_v62, %v987_v1 }
 0x1a0   :  { %v918_v2 = vadd.f32 %v917_v32, %v916_v14  ;;  %v1051_v3 = vrot.slane %v1050_v28, 4 }
 0x1a2   :  { %v919_v38 = vrot.slane %v918_v2, 2  ;;  %v1052_v6 = vadd.f32 %v1051_v3, %v1050_v28 }
 0x1a4   :  { %v920_v9 = vadd.f32 %v919_v38, %v918_v2  ;;  %v1053_v37 = vrot.slane %v1052_v6, 2 }
 0x1a6   :  { %v921_v48 = vrot.slane %v920_v9, 1  ;;  %v1054_v11 = vadd.f32 %v1053_v37, %v1052_v6 }
 0x1a8   :  { %v922_v12 = vadd.f32 %v921_v48, %v920_v9  ;;  %v1055_v55 = vrot.slane %v1054_v11, 1 }
 0x1aa   :  { %923 = vst [vmem:[%s1981_s4] sm:$0x1] %v922_v12  ;;  %v1056_v52 = vadd.f32 %v1055_v55, %v1054_v11 }
 0x1ac   :  { %1057 = vst [vmem:[%s1981_s4 + $0x1] sm:$0x1] %v1056_v52 }

// kernel: conv_block_forward.7
= control target key start
LH: loop header
LB: loop body
LE: loop exit
PB: predicated region body
PF: predicated region fallthrough
CT: control target
= control target key end

     0   :  { %s1288_s0 = inlined_call_operand.vmem [shape: f32[512,128], index: 0, kind: input, shape index: {}]   ;;  %s1289_s1 = inlined_call_operand.vmem [shape: f32[1,128], index: 1, kind: input, shape index: {}]   ;;  %s1290_s2 = inlined_call_operand.vmem [shape: f32[1,128], index: 2, kind: input, shape index: {}]   ;;  %s1291_s3 = inlined_call_operand.vmem [shape: f32[512,128], index: 3, kind: input, shape index: {}]   ;;  %s1292_s4 = inlined_call_operand.vmem [shape: f32[512,128], index: 4, kind: output, shape index: {}]  }
   0x1   :  { %v17_v0 = vld [vmem:[%s1288_s0] sm:$0xff]  ;;  %v18_v4 = vld [vmem:[%s1288_s0 + $0x8] sm:$0xff]  ;;  %v19_v6 = vld [vmem:[%s1288_s0 + $0x10] sm:$0xff] }
   0x2   :  { %v580_v1 = vld [vmem:[%s1289_s1] ss:$0 sm:$0xff]  ;;  %v20_v7 = vld [vmem:[%s1288_s0 + $0x18] sm:$0xff]  ;;  %v22_v15 = vld [vmem:[%s1288_s0 + $0x28] sm:$0xff] }
   0x3   :  { %v585_v2 = vld [vmem:[%s1290_s2] ss:$0 sm:$0xff]  ;;  %v88_v3 = vmul.f32 %v580_v1, %v17_v0  ;;  %v89_v5 = vmul.f32 %v580_v1, %v18_v4  ;;  %v90_v9 = vmul.f32 %v580_v1, %v19_v6  ;;  %v91_v10 = vmul.f32 %v580_v1, %v20_v7  ;;  %v23_v16 = vld [vmem:[%s1288_s0 + $0x30] sm:$0xff]  ;;  %v288_v18 = vld [vmem:[%s1291_s3 + $0x8] sm:$0xff] }
   0x4   :  { %v21_v11 = vld [vmem:[%s1288_s0 + $0x20] sm:$0xff]  ;;  %v93_v21 = vmul.f32 %v580_v1, %v22_v15  ;;  %v24_v22 = vld [vmem:[%s1288_s0 + $0x38] sm:$0xff]  ;;  %v289_v24 = vld [vmem:[%s1291_s3 + $0x10] sm:$0xff]  ;;  %v94_v27 = vmul.f32 %v580_v1, %v23_v16 }
   0x5   :  { %v159_v8 = vadd.f32 %v585_v2, %v88_v3  ;;  %v287_v12 = vld [vmem:[%s1291_s3] sm:$0xff]  ;;  %v160_v13 = vadd.f32 %v585_v2, %v89_v5  ;;  %v92_v14 = vmul.f32 %v580_v1, %v21_v11  ;;  %v161_v19 = vadd.f32 %v585_v2, %v90_v9  ;;  %v290_v25 = vld [vmem:[%s1291_s3 + $0x18] sm:$0xff]  ;;  %v292_v36 = vld [vmem:[%s1291_s3 + $0x28] sm:$0xff] }
   0x6   :  { %v162_v20 = vadd.f32 %v585_v2, %v91_v10  ;;  %v95_v28 = vmul.f32 %v580_v1, %v24_v22  ;;  %v291_v32 = vld [vmem:[%s1291_s3 + $0x20] sm:$0xff]  ;;  %v164_v33 = vadd.f32 %v585_v2, %v93_v21  ;;  %v165_v37 = vadd.f32 %v585_v2, %v94_v27  ;;  %v293_v44 = vld [vmem:[%s1291_s3 + $0x30] sm:$0xff]  ;;  %v294_v45 = vld [vmem:[%s1291_s3 + $0x38] sm:$0xff] }
   0x7   :  { %v223_v17 = vmax.f32 %v159_v8, 0.0  ;;  %v224_v23 = vmax.f32 %v160_v13, 0.0  ;;  %v163_v26 = vadd.f32 %v585_v2, %v92_v14  ;;  %v225_v30 = vmax.f32 %v161_v19, 0.0  ;;  %v25_v39 = vld [vmem:[%s1288_s0 + $0x40] sm:$0xff]  ;;  %v26_v46 = vld [vmem:[%s1288_s0 + $0x48] sm:$0xff]  ;;  %v27_v51 = vld [vmem:[%s1288_s0 + $0x50] sm:$0xff] }
   0x8   :  { %v226_v31 = vmax.f32 %v162_v20, 0.0  ;;  %v166_v38 = vadd.f32 %v585_v2, %v95_v28  ;;  %v228_v43 = vmax.f32 %v164_v33, 0.0  ;;  %v229_v49 = vmax.f32 %v165_v37, 0.0  ;;  %v28_v52 = vld [vmem:[%s1288_s0 + $0x58] sm:$0xff]  ;;  %v29_v57 = vld [vmem:[%s1288_s0 + $0x60] sm:$0xff]  ;;  %v30_v62 = vld [vmem:[%s1288_s0 + $0x68] sm:$0xff] }
   0x9   :  { %v351_v29 = vadd.f32 %v287_v12, %v223_v17  ;;  %v352_v34 = vadd.f32 %v288_v18, %v224_v23  ;;  %v227_v35 = vmax.f32 %v163_v26, 0.0  ;;  %v353_v41 = vadd.f32 %v289_v24, %v225_v30  ;;  %v31_v5 = vld [vmem:[%s1288_s0 + $0x70] sm:$0xff]  ;;  %v32_v6 = vld [vmem:[%s1288_s0 + $0x78] sm:$0xff]  ;;  %v295_v9 = vld [vmem:[%s1291_s3 + $0x40] sm:$0xff] }
   0xa   :  { %v354_v42 = vadd.f32 %v290_v25, %v226_v31  ;;  %v230_v50 = vmax.f32 %v166_v38, 0.0  ;;  %v356_v55 = vadd.f32 %v292_v36, %v228_v43  ;;  %v96_v56 = vmul.f32 %v580_v1, %v25_v39  ;;  %v296_v13 = vld [vmem:[%s1291_s3 + $0x48] sm:$0xff]  ;;  %v297_v18 = vld [vmem:[%s1291_s3 + $0x50] sm:$0xff]  ;;  %v298_v19 = vld [vmem:[%s1291_s3 + $0x58] sm:$0xff] }
   0xb   :  { %v415_v40 = vmax.f32 %v351_v29, 0.0  ;;  %v416_v47 = vmax.f32 %v352_v34, 0.0  ;;  %v355_v48 = vadd.f32 %v291_v32, %v227_v35  ;;  %v417_v53 = vmax.f32 %v353_v41, 0.0  ;;  %v299_v26 = vld [vmem:[%s1291_s3 + $0x60] sm:$0xff]  ;;  %v300_v30 = vld [vmem:[%s1291_s3 + $0x68] sm:$0xff]  ;;  %v301_v38 = vld [vmem:[%s1291_s3 + $0x70] sm:$0xff] }
   0xc   :  { %v418_v54 = vmax.f32 %v354_v42, 0.0  ;;  %v357_v59 = vadd.f32 %v293_v44, %v229_v49  ;;  %v358_v60 = vadd.f32 %v294_v45, %v230_v50  ;;  %v97_v61 = vmul.f32 %v580_v1, %v26_v46  ;;  %v33_v33 = vld [vmem:[%s1288_s0 + $0x80] sm:$0xff]  ;;  %v302_v39 = vld [vmem:[%s1291_s3 + $0x78] sm:$0xff]  ;;  %v35_v45 = vld [vmem:[%s1288_s0 + $0x90] sm:$0xff] }
   0xd   :  { %479 = vst [vmem:[%s1292_s4] sm:$0xff] %v415_v40  ;;  %480 = vst [vmem:[%s1292_s4 + $0x8] sm:$0xff] %v416_v47  ;;  %v419_v58 = vmax.f32 %v355_v48, 0.0  ;;  %v420_v63 = vmax.f32 %v356_v55, 0.0  ;;  %v167_v0 = vadd.f32 %v585_v2, %v96_v56  ;;  %v98_v3 = vmul.f32 %v580_v1, %v27_v51  ;;  %v34_v40 = vld [vmem:[%s1288_s0 + $0x88] sm:$0xff]  ;;  %v36_v46 = vld [vmem:[%s1288_s0 + $0x98] sm:$0xff] }
   0xe   :  { %481 = vst [vmem:[%s1292_s4 + $0x10] sm:$0xff] %v417_v53  ;;  %482 = vst [vmem:[%s1292_s4 + $0x18] sm:$0xff] %v418_v54  ;;  %v99_v4 = vmul.f32 %v580_v1, %v28_v52  ;;  %v421_v7 = vmax.f32 %v357_v59, 0.0  ;;  %v422_v8 = vmax.f32 %v358_v60, 0.0  ;;  %v168_v10 = vadd.f32 %v585_v2, %v97_v61  ;;  %v37_v51 = vld [vmem:[%s1288_s0 + $0xa0] sm:$0xff]  ;;  %v38_v56 = vld [vmem:[%s1288_s0 + $0xa8] sm:$0xff] }
   0xf   :  { %483 = vst [vmem:[%s1292_s4 + $0x20] sm:$0xff] %v419_v58  ;;  %v100_v11 = vmul.f32 %v580_v1, %v29_v57  ;;  %484 = vst [vmem:[%s1292_s4 + $0x28] sm:$0xff] %v420_v63  ;;  %v231_v12 = vmax.f32 %v167_v0, 0.0  ;;  %v169_v14 = vadd.f32 %v585_v2, %v98_v3  ;;  %v101_v16 = vmul.f32 %v580_v1, %v30_v62  ;;  %v39_v61 = vld [vmem:[%s1288_s0 + $0xb0] sm:$0xff]  ;;  %v40_v62 = vld [vmem:[%s1288_s0 + $0xb8] sm:$0xff] }
  0x10   :  { %v170_v15 = vadd.f32 %v585_v2, %v99_v4  ;;  %485 = vst [vmem:[%s1292_s4 + $0x30] sm:$0xff] %v421_v7  ;;  %486 = vst [vmem:[%s1292_s4 + $0x38] sm:$0xff] %v422_v8  ;;  %v232_v17 = vmax.f32 %v168_v10, 0.0  ;;  %v102_v21 = vmul.f32 %v580_v1, %v31_v5  ;;  %v103_v22 = vmul.f32 %v580_v1, %v32_v6  ;;  %v303_v3 = vld [vmem:[%s1291_s3 + $0x80] sm:$0xff]  ;;  %v304_v7 = vld [vmem:[%s1291_s3 + $0x88] sm:$0xff] }
  0x11   :  { %v171_v20 = vadd.f32 %v585_v2, %v100_v11  ;;  %v359_v23 = vadd.f32 %v295_v9, %v231_v12  ;;  %v233_v24 = vmax.f32 %v169_v14, 0.0  ;;  %v172_v27 = vadd.f32 %v585_v2, %v101_v16  ;;  %v305_v12 = vld [vmem:[%s1291_s3 + $0x90] sm:$0xff] }
  0x12   :  { %v234_v25 = vmax.f32 %v170_v15, 0.0  ;;  %v360_v28 = vadd.f32 %v296_v13, %v232_v17  ;;  %v173_v31 = vadd.f32 %v585_v2, %v102_v21  ;;  %v174_v32 = vadd.f32 %v585_v2, %v103_v22  ;;  %v306_v13 = vld [vmem:[%s1291_s3 + $0x98] sm:$0xff] }
  0x13   :  { %v235_v29 = vmax.f32 %v171_v20, 0.0  ;;  %v423_v34 = vmax.f32 %v359_v23, 0.0  ;;  %v361_v35 = vadd.f32 %v297_v18, %v233_v24  ;;  %v236_v37 = vmax.f32 %v172_v27, 0.0  ;;  %v307_v20 = vld [vmem:[%s1291_s3 + $0xa0] sm:$0xff]  ;;  %v308_v24 = vld [vmem:[%s1291_s3 + $0xa8] sm:$0xff] }
  0x14   :  { %v362_v36 = vadd.f32 %v298_v19, %v234_v25  ;;  %v424_v41 = vmax.f32 %v360_v28, 0.0  ;;  %v237_v43 = vmax.f32 %v173_v31, 0.0  ;;  %v238_v44 = vmax.f32 %v174_v32, 0.0  ;;  %v41_v27 = vld [vmem:[%s1288_s0 + $0xc0] sm:$0xff]  ;;  %v309_v32 = vld [vmem:[%s1291_s3 + $0xb0] sm:$0xff] }
  0x15   :  { %v363_v42 = vadd.f32 %v299_v26, %v235_v29  ;;  %487 = vst [vmem:[%s1292_s4 + $0x40] sm:$0xff] %v423_v34  ;;  %v425_v47 = vmax.f32 %v361_v35, 0.0  ;;  %v364_v49 = vadd.f32 %v300_v30, %v236_v37  ;;  %v104_v50 = vmul.f32 %v580_v1, %v33_v33  ;;  %v310_v33 = vld [vmem:[%s1291_s3 + $0xb8] sm:$0xff]  ;;  %v42_v34 = vld [vmem:[%s1288_s0 + $0xc8] sm:$0xff] }
  0x16   :  { %v426_v48 = vmax.f32 %v362_v36, 0.0  ;;  %488 = vst [vmem:[%s1292_s4 + $0x48] sm:$0xff] %v424_v41  ;;  %v365_v53 = vadd.f32 %v301_v38, %v237_v43  ;;  %v366_v54 = vadd.f32 %v302_v39, %v238_v44  ;;  %v105_v55 = vmul.f32 %v580_v1, %v34_v40  ;;  %v43_v39 = vld [vmem:[%s1288_s0 + $0xd0] sm:$0xff]  ;;  %v44_v40 = vld [vmem:[%s1288_s0 + $0xd8] sm:$0xff] }
  0x17   :  { %v427_v52 = vmax.f32 %v363_v42, 0.0  ;;  %489 = vst [vmem:[%s1292_s4 + $0x50] sm:$0xff] %v425_v47  ;;  %v428_v57 = vmax.f32 %v364_v49, 0.0  ;;  %v175_v58 = vadd.f32 %v585_v2, %v104_v50  ;;  %v106_v59 = vmul.f32 %v580_v1, %v35_v45  ;;  %v45_v45 = vld [vmem:[%s1288_s0 + $0xe0] sm:$0xff]  ;;  %v46_v50 = vld [vmem:[%s1288_s0 + $0xe8] sm:$0xff] }
  0x18   :  { %490 = vst [vmem:[%s1292_s4 + $0x58] sm:$0xff] %v426_v48  ;;  %v107_v60 = vmul.f32 %v580_v1, %v36_v46  ;;  %v429_v63 = vmax.f32 %v365_v53, 0.0  ;;  %v430_v0 = vmax.f32 %v366_v54, 0.0  ;;  %v176_v4 = vadd.f32 %v585_v2, %v105_v55  ;;  %v47_v55 = vld [vmem:[%s1288_s0 + $0xf0] sm:$0xff] }
  0x19   :  { %491 = vst [vmem:[%s1292_s4 + $0x60] sm:$0xff] %v427_v52  ;;  %v108_v5 = vmul.f32 %v580_v1, %v37_v51  ;;  %492 = vst [vmem:[%s1292_s4 + $0x68] sm:$0xff] %v428_v57  ;;  %v239_v6 = vmax.f32 %v175_v58, 0.0  ;;  %v177_v8 = vadd.f32 %v585_v2, %v106_v59  ;;  %v109_v10 = vmul.f32 %v580_v1, %v38_v56  ;;  %v48_v56 = vld [vmem:[%s1288_s0 + $0xf8] sm:$0xff]  ;;  %v311_v59 = vld [vmem:[%s1291_s3 + $0xc0] sm:$0xff] }
  0x1a   :  { %v178_v9 = vadd.f32 %v585_v2, %v107_v60  ;;  %493 = vst [vmem:[%s1292_s4 + $0x70] sm:$0xff] %v429_v63  ;;  %494 = vst [vmem:[%s1292_s4 + $0x78] sm:$0xff] %v430_v0  ;;  %v240_v11 = vmax.f32 %v176_v4, 0.0  ;;  %v110_v15 = vmul.f32 %v580_v1, %v39_v61  ;;  %v111_v16 = vmul.f32 %v580_v1, %v40_v62  ;;  %v312_v63 = vld [vmem:[%s1291_s3 + $0xc8] sm:$0xff] }
  0x1b   :  { %v179_v14 = vadd.f32 %v585_v2, %v108_v5  ;;  %v367_v17 = vadd.f32 %v303_v3, %v239_v6  ;;  %v241_v18 = vmax.f32 %v177_v8, 0.0  ;;  %v180_v21 = vadd.f32 %v585_v2, %v109_v10  ;;  %v313_v6 = vld [vmem:[%s1291_s3 + $0xd0] sm:$0xff] }
  0x1c   :  { %v242_v19 = vmax.f32 %v178_v9, 0.0  ;;  %v368_v22 = vadd.f32 %v304_v7, %v240_v11  ;;  %v181_v25 = vadd.f32 %v585_v2, %v110_v15  ;;  %v182_v26 = vadd.f32 %v585_v2, %v111_v16  ;;  %v314_v7 = vld [vmem:[%s1291_s3 + $0xd8] sm:$0xff] }
  0x1d   :  { %v243_v23 = vmax.f32 %v179_v14, 0.0  ;;  %v431_v28 = vmax.f32 %v367_v17, 0.0  ;;  %v369_v29 = vadd.f32 %v305_v12, %v241_v18  ;;  %v244_v31 = vmax.f32 %v180_v21, 0.0  ;;  %v315_v14 = vld [vmem:[%s1291_s3 + $0xe0] sm:$0xff]  ;;  %v316_v18 = vld [vmem:[%s1291_s3 + $0xe8] sm:$0xff] }
  0x1e   :  { %v370_v30 = vadd.f32 %v306_v13, %v242_v19  ;;  %v432_v35 = vmax.f32 %v368_v22, 0.0  ;;  %v245_v37 = vmax.f32 %v181_v25, 0.0  ;;  %v246_v38 = vmax.f32 %v182_v26, 0.0  ;;  %v49_v21 = vld [vmem:[%s1288_s0 + $0x100] sm:$0xff]  ;;  %v317_v26 = vld [vmem:[%s1291_s3 + $0xf0] sm:$0xff] }
  0x1f   :  { %v371_v36 = vadd.f32 %v307_v20, %v243_v23  ;;  %495 = vst [vmem:[%s1292_s4 + $0x80] sm:$0xff] %v431_v28  ;;  %v433_v41 = vmax.f32 %v369_v29, 0.0  ;;  %v372_v43 = vadd.f32 %v308_v24, %v244_v31  ;;  %v112_v44 = vmul.f32 %v580_v1, %v41_v27  ;;  %v318_v27 = vld [vmem:[%s1291_s3 + $0xf8] sm:$0xff]  ;;  %v50_v28 = vld [vmem:[%s1288_s0 + $0x108] sm:$0xff] }
  0x20   :  { %v434_v42 = vmax.f32 %v370_v30, 0.0  ;;  %496 = vst [vmem:[%s1292_s4 + $0x88] sm:$0xff] %v432_v35  ;;  %v373_v47 = vadd.f32 %v309_v32, %v245_v37  ;;  %v374_v48 = vadd.f32 %v310_v33, %v246_v38  ;;  %v113_v49 = vmul.f32 %v580_v1, %v42_v34  ;;  %v51_v33 = vld [vmem:[%s1288_s0 + $0x110] sm:$0xff]  ;;  %v52_v34 = vld [vmem:[%s1288_s0 + $0x118] sm:$0xff] }
  0x21   :  { %v435_v46 = vmax.f32 %v371_v36, 0.0  ;;  %497 = vst [vmem:[%s1292_s4 + $0x90] sm:$0xff] %v433_v41  ;;  %v436_v51 = vmax.f32 %v372_v43, 0.0  ;;  %v183_v52 = vadd.f32 %v585_v2, %v112_v44  ;;  %v114_v53 = vmul.f32 %v580_v1, %v43_v39  ;;  %v53_v39 = vld [vmem:[%s1288_s0 + $0x120] sm:$0xff]  ;;  %v54_v44 = vld [vmem:[%s1288_s0 + $0x128] sm:$0xff] }
  0x22   :  { %498 = vst [vmem:[%s1292_s4 + $0x98] sm:$0xff] %v434_v42  ;;  %v115_v54 = vmul.f32 %v580_v1, %v44_v40  ;;  %v437_v57 = vmax.f32 %v373_v47, 0.0  ;;  %v438_v58 = vmax.f32 %v374_v48, 0.0  ;;  %v184_v60 = vadd.f32 %v585_v2, %v113_v49  ;;  %v55_v49 = vld [vmem:[%s1288_s0 + $0x130] sm:$0xff] }
  0x23   :  { %499 = vst [vmem:[%s1292_s4 + $0xa0] sm:$0xff] %v435_v46  ;;  %v116_v61 = vmul.f32 %v580_v1, %v45_v45  ;;  %500 = vst [vmem:[%s1292_s4 + $0xa8] sm:$0xff] %v436_v51  ;;  %v247_v62 = vmax.f32 %v183_v52, 0.0  ;;  %v185_v0 = vadd.f32 %v585_v2, %v114_v53  ;;  %v117_v4 = vmul.f32 %v580_v1, %v46_v50  ;;  %v56_v50 = vld [vmem:[%s1288_s0 + $0x138] sm:$0xff]  ;;  %v319_v53 = vld [vmem:[%s1291_s3 + $0x100] sm:$0xff] }
  0x24   :  { %v186_v3 = vadd.f32 %v585_v2, %v115_v54  ;;  %501 = vst [vmem:[%s1292_s4 + $0xb0] sm:$0xff] %v437_v57  ;;  %502 = vst [vmem:[%s1292_s4 + $0xb8] sm:$0xff] %v438_v58  ;;  %v248_v5 = vmax.f32 %v184_v60, 0.0  ;;  %v118_v9 = vmul.f32 %v580_v1, %v47_v55  ;;  %v119_v10 = vmul.f32 %v580_v1, %v48_v56  ;;  %v320_v57 = vld [vmem:[%s1291_s3 + $0x108] sm:$0xff] }
  0x25   :  { %v187_v8 = vadd.f32 %v585_v2, %v116_v61  ;;  %v375_v11 = vadd.f32 %v311_v59, %v247_v62  ;;  %v249_v12 = vmax.f32 %v185_v0, 0.0  ;;  %v188_v15 = vadd.f32 %v585_v2, %v117_v4  ;;  %v321_v62 = vld [vmem:[%s1291_s3 + $0x110] sm:$0xff] }
  0x26   :  { %v250_v13 = vmax.f32 %v186_v3, 0.0  ;;  %v376_v16 = vadd.f32 %v312_v63, %v248_v5  ;;  %v189_v19 = vadd.f32 %v585_v2, %v118_v9  ;;  %v190_v20 = vadd.f32 %v585_v2, %v119_v10  ;;  %v322_v63 = vld [vmem:[%s1291_s3 + $0x118] sm:$0xff] }
  0x27   :  { %v251_v17 = vmax.f32 %v187_v8, 0.0  ;;  %v439_v22 = vmax.f32 %v375_v11, 0.0  ;;  %v377_v23 = vadd.f32 %v313_v6, %v249_v12  ;;  %v252_v25 = vmax.f32 %v188_v15, 0.0  ;;  %v323_v8 = vld [vmem:[%s1291_s3 + $0x120] sm:$0xff]  ;;  %v324_v12 = vld [vmem:[%s1291_s3 + $0x128] sm:$0xff] }
  0x28   :  { %v378_v24 = vadd.f32 %v314_v7, %v250_v13  ;;  %v440_v29 = vmax.f32 %v376_v16, 0.0  ;;  %v253_v31 = vmax.f32 %v189_v19, 0.0  ;;  %v254_v32 = vmax.f32 %v190_v20, 0.0  ;;  %v57_v15 = vld [vmem:[%s1288_s0 + $0x140] sm:$0xff]  ;;  %v325_v20 = vld [vmem:[%s1291_s3 + $0x130] sm:$0xff] }
  0x29   :  { %v379_v30 = vadd.f32 %v315_v14, %v251_v17  ;;  %503 = vst [vmem:[%s1292_s4 + $0xc0] sm:$0xff] %v439_v22  ;;  %v441_v35 = vmax.f32 %v377_v23, 0.0  ;;  %v380_v37 = vadd.f32 %v316_v18, %v252_v25  ;;  %v120_v38 = vmul.f32 %v580_v1, %v49_v21  ;;  %v326_v21 = vld [vmem:[%s1291_s3 + $0x138] sm:$0xff]  ;;  %v58_v22 = vld [vmem:[%s1288_s0 + $0x148] sm:$0xff] }
  0x2a   :  { %v442_v36 = vmax.f32 %v378_v24, 0.0  ;;  %504 = vst [vmem:[%s1292_s4 + $0xc8] sm:$0xff] %v440_v29  ;;  %v381_v41 = vadd.f32 %v317_v26, %v253_v31  ;;  %v382_v42 = vadd.f32 %v318_v27, %v254_v32  ;;  %v121_v43 = vmul.f32 %v580_v1, %v50_v28  ;;  %v59_v27 = vld [vmem:[%s1288_s0 + $0x150] sm:$0xff]  ;;  %v60_v28 = vld [vmem:[%s1288_s0 + $0x158] sm:$0xff] }
  0x2b   :  { %v443_v40 = vmax.f32 %v379_v30, 0.0  ;;  %505 = vst [vmem:[%s1292_s4 + $0xd0] sm:$0xff] %v441_v35  ;;  %v444_v45 = vmax.f32 %v380_v37, 0.0  ;;  %v191_v46 = vadd.f32 %v585_v2, %v120_v38  ;;  %v122_v47 = vmul.f32 %v580_v1, %v51_v33  ;;  %v61_v33 = vld [vmem:[%s1288_s0 + $0x160] sm:$0xff]  ;;  %v62_v38 = vld [vmem:[%s1288_s0 + $0x168] sm:$0xff] }
  0x2c   :  { %506 = vst [vmem:[%s1292_s4 + $0xd8] sm:$0xff] %v442_v36  ;;  %v123_v48 = vmul.f32 %v580_v1, %v52_v34  ;;  %v445_v51 = vmax.f32 %v381_v41, 0.0  ;;  %v446_v52 = vmax.f32 %v382_v42, 0.0  ;;  %v192_v54 = vadd.f32 %v585_v2, %v121_v43  ;;  %v63_v43 = vld [vmem:[%s1288_s0 + $0x170] sm:$0xff] }
  0x2d   :  { %507 = vst [vmem:[%s1292_s4 + $0xe0] sm:$0xff] %v443_v40  ;;  %v124_v55 = vmul.f32 %v580_v1, %v53_v39  ;;  %508 = vst [vmem:[%s1292_s4 + $0xe8] sm:$0xff] %v444_v45  ;;  %v255_v56 = vmax.f32 %v191_v46, 0.0  ;;  %v193_v58 = vadd.f32 %v585_v2, %v122_v47  ;;  %v125_v60 = vmul.f32 %v580_v1, %v54_v44  ;;  %v64_v44 = vld [vmem:[%s1288_s0 + $0x178] sm:$0xff]  ;;  %v327_v47 = vld [vmem:[%s1291_s3 + $0x140] sm:$0xff] }
  0x2e   :  { %v194_v59 = vadd.f32 %v585_v2, %v123_v48  ;;  %509 = vst [vmem:[%s1292_s4 + $0xf0] sm:$0xff] %v445_v51  ;;  %510 = vst [vmem:[%s1292_s4 + $0xf8] sm:$0xff] %v446_v52  ;;  %v256_v61 = vmax.f32 %v192_v54, 0.0  ;;  %v126_v3 = vmul.f32 %v580_v1, %v55_v49  ;;  %v127_v4 = vmul.f32 %v580_v1, %v56_v50  ;;  %v328_v51 = vld [vmem:[%s1291_s3 + $0x148] sm:$0xff] }
  0x2f   :  { %v195_v0 = vadd.f32 %v585_v2, %v124_v55  ;;  %v383_v5 = vadd.f32 %v319_v53, %v255_v56  ;;  %v257_v6 = vmax.f32 %v193_v58, 0.0  ;;  %v196_v9 = vadd.f32 %v585_v2, %v125_v60  ;;  %v329_v56 = vld [vmem:[%s1291_s3 + $0x150] sm:$0xff] }
  0x30   :  { %v258_v7 = vmax.f32 %v194_v59, 0.0  ;;  %v384_v10 = vadd.f32 %v320_v57, %v256_v61  ;;  %v197_v13 = vadd.f32 %v585_v2, %v126_v3  ;;  %v198_v14 = vadd.f32 %v585_v2, %v127_v4  ;;  %v330_v57 = vld [vmem:[%s1291_s3 + $0x158] sm:$0xff] }
  0x31   :  { %v259_v11 = vmax.f32 %v195_v0, 0.0  ;;  %v447_v16 = vmax.f32 %v383_v5, 0.0  ;;  %v385_v17 = vadd.f32 %v321_v62, %v257_v6  ;;  %v260_v19 = vmax.f32 %v196_v9, 0.0  ;;  %v331_v0 = vld [vmem:[%s1291_s3 + $0x160] sm:$0xff]  ;;  %v332_v6 = vld [vmem:[%s1291_s3 + $0x168] sm:$0xff] }
  0x32   :  { %v386_v18 = vadd.f32 %v322_v63, %v258_v7  ;;  %v448_v23 = vmax.f32 %v384_v10, 0.0  ;;  %v261_v25 = vmax.f32 %v197_v13, 0.0  ;;  %v262_v26 = vmax.f32 %v198_v14, 0.0  ;;  %v65_v9 = vld [vmem:[%s1288_s0 + $0x180] sm:$0xff]  ;;  %v333_v14 = vld [vmem:[%s1291_s3 + $0x170] sm:$0xff] }
  0x33   :  { %v387_v24 = vadd.f32 %v323_v8, %v259_v11  ;;  %511 = vst [vmem:[%s1292_s4 + $0x100] sm:$0xff] %v447_v16  ;;  %v449_v29 = vmax.f32 %v385_v17, 0.0  ;;  %v388_v31 = vadd.f32 %v324_v12, %v260_v19  ;;  %v128_v32 = vmul.f32 %v580_v1, %v57_v15  ;;  %v334_v15 = vld [vmem:[%s1291_s3 + $0x178] sm:$0xff]  ;;  %v66_v16 = vld [vmem:[%s1288_s0 + $0x188] sm:$0xff] }
  0x34   :  { %v450_v30 = vmax.f32 %v386_v18, 0.0  ;;  %512 = vst [vmem:[%s1292_s4 + $0x108] sm:$0xff] %v448_v23  ;;  %v389_v35 = vadd.f32 %v325_v20, %v261_v25  ;;  %v390_v36 = vadd.f32 %v326_v21, %v262_v26  ;;  %v129_v37 = vmul.f32 %v580_v1, %v58_v22  ;;  %v67_v21 = vld [vmem:[%s1288_s0 + $0x190] sm:$0xff]  ;;  %v68_v22 = vld [vmem:[%s1288_s0 + $0x198] sm:$0xff] }
  0x35   :  { %v451_v34 = vmax.f32 %v387_v24, 0.0  ;;  %513 = vst [vmem:[%s1292_s4 + $0x110] sm:$0xff] %v449_v29  ;;  %v452_v39 = vmax.f32 %v388_v31, 0.0  ;;  %v199_v40 = vadd.f32 %v585_v2, %v128_v32  ;;  %v130_v41 = vmul.f32 %v580_v1, %v59_v27  ;;  %v69_v27 = vld [vmem:[%s1288_s0 + $0x1a0] sm:$0xff]  ;;  %v70_v32 = vld [vmem:[%s1288_s0 + $0x1a8] sm:$0xff] }
  0x36   :  { %514 = vst [vmem:[%s1292_s4 + $0x118] sm:$0xff] %v450_v30  ;;  %v131_v42 = vmul.f32 %v580_v1, %v60_v28  ;;  %v453_v45 = vmax.f32 %v389_v35, 0.0  ;;  %v454_v46 = vmax.f32 %v390_v36, 0.0  ;;  %v200_v48 = vadd.f32 %v585_v2, %v129_v37  ;;  %v71_v37 = vld [vmem:[%s1288_s0 + $0x1b0] sm:$0xff] }
  0x37   :  { %515 = vst [vmem:[%s1292_s4 + $0x120] sm:$0xff] %v451_v34  ;;  %v132_v49 = vmul.f32 %v580_v1, %v61_v33  ;;  %516 = vst [vmem:[%s1292_s4 + $0x128] sm:$0xff] %v452_v39  ;;  %v263_v50 = vmax.f32 %v199_v40, 0.0  ;;  %v201_v52 = vadd.f32 %v585_v2, %v130_v41  ;;  %v133_v54 = vmul.f32 %v580_v1, %v62_v38  ;;  %v72_v38 = vld [vmem:[%s1288_s0 + $0x1b8] sm:$0xff]  ;;  %v335_v41 = vld [vmem:[%s1291_s3 + $0x180] sm:$0xff] }
  0x38   :  { %v202_v53 = vadd.f32 %v585_v2, %v131_v42  ;;  %517 = vst [vmem:[%s1292_s4 + $0x130] sm:$0xff] %v453_v45  ;;  %518 = vst [vmem:[%s1292_s4 + $0x138] sm:$0xff] %v454_v46  ;;  %v264_v55 = vmax.f32 %v200_v48, 0.0  ;;  %v134_v59 = vmul.f32 %v580_v1, %v63_v43  ;;  %v135_v60 = vmul.f32 %v580_v1, %v64_v44  ;;  %v336_v45 = vld [vmem:[%s1291_s3 + $0x188] sm:$0xff] }
  0x39   :  { %v203_v58 = vadd.f32 %v585_v2, %v132_v49  ;;  %v391_v61 = vadd.f32 %v327_v47, %v263_v50  ;;  %v265_v62 = vmax.f32 %v201_v52, 0.0  ;;  %v204_v3 = vadd.f32 %v585_v2, %v133_v54  ;;  %v337_v50 = vld [vmem:[%s1291_s3 + $0x190] sm:$0xff] }
  0x3a   :  { %v266_v63 = vmax.f32 %v202_v53, 0.0  ;;  %v392_v4 = vadd.f32 %v328_v51, %v264_v55  ;;  %v205_v7 = vadd.f32 %v585_v2, %v134_v59  ;;  %v206_v8 = vadd.f32 %v585_v2, %v135_v60  ;;  %v338_v51 = vld [vmem:[%s1291_s3 + $0x198] sm:$0xff] }
  0x3b   :  { %v267_v5 = vmax.f32 %v203_v58, 0.0  ;;  %v455_v10 = vmax.f32 %v391_v61, 0.0  ;;  %v393_v11 = vadd.f32 %v329_v56, %v265_v62  ;;  %v268_v13 = vmax.f32 %v204_v3, 0.0  ;;  %v339_v58 = vld [vmem:[%s1291_s3 + $0x1a0] sm:$0xff]  ;;  %v340_v62 = vld [vmem:[%s1291_s3 + $0x1a8] sm:$0xff] }
  0x3c   :  { %v394_v12 = vadd.f32 %v330_v57, %v266_v63  ;;  %v456_v17 = vmax.f32 %v392_v4, 0.0  ;;  %v269_v19 = vmax.f32 %v205_v7, 0.0  ;;  %v270_v20 = vmax.f32 %v206_v8, 0.0  ;;  %v73_v3 = vld [vmem:[%s1288_s0 + $0x1c0] sm:$0xff]  ;;  %v341_v8 = vld [vmem:[%s1291_s3 + $0x1b0] sm:$0xff] }
  0x3d   :  { %v395_v18 = vadd.f32 %v331_v0, %v267_v5  ;;  %519 = vst [vmem:[%s1292_s4 + $0x140] sm:$0xff] %v455_v10  ;;  %v457_v23 = vmax.f32 %v393_v11, 0.0  ;;  %v396_v25 = vadd.f32 %v332_v6, %v268_v13  ;;  %v136_v26 = vmul.f32 %v580_v1, %v65_v9  ;;  %v342_v9 = vld [vmem:[%s1291_s3 + $0x1b8] sm:$0xff]  ;;  %v74_v10 = vld [vmem:[%s1288_s0 + $0x1c8] sm:$0xff] }
  0x3e   :  { %v458_v24 = vmax.f32 %v394_v12, 0.0  ;;  %520 = vst [vmem:[%s1292_s4 + $0x148] sm:$0xff] %v456_v17  ;;  %v397_v29 = vadd.f32 %v333_v14, %v269_v19  ;;  %v398_v30 = vadd.f32 %v334_v15, %v270_v20  ;;  %v137_v31 = vmul.f32 %v580_v1, %v66_v16  ;;  %v75_v15 = vld [vmem:[%s1288_s0 + $0x1d0] sm:$0xff]  ;;  %v76_v16 = vld [vmem:[%s1288_s0 + $0x1d8] sm:$0xff] }
  0x3f   :  { %v459_v28 = vmax.f32 %v395_v18, 0.0  ;;  %521 = vst [vmem:[%s1292_s4 + $0x150] sm:$0xff] %v457_v23  ;;  %v460_v33 = vmax.f32 %v396_v25, 0.0  ;;  %v207_v34 = vadd.f32 %v585_v2, %v136_v26  ;;  %v138_v35 = vmul.f32 %v580_v1, %v67_v21  ;;  %v77_v21 = vld [vmem:[%s1288_s0 + $0x1e0] sm:$0xff]  ;;  %v78_v26 = vld [vmem:[%s1288_s0 + $0x1e8] sm:$0xff] }
  0x40   :  { %522 = vst [vmem:[%s1292_s4 + $0x158] sm:$0xff] %v458_v24  ;;  %v139_v36 = vmul.f32 %v580_v1, %v68_v22  ;;  %v461_v39 = vmax.f32 %v397_v29, 0.0  ;;  %v462_v40 = vmax.f32 %v398_v30, 0.0  ;;  %v208_v42 = vadd.f32 %v585_v2, %v137_v31  ;;  %v79_v31 = vld [vmem:[%s1288_s0 + $0x1f0] sm:$0xff] }
  0x41   :  { %523 = vst [vmem:[%s1292_s4 + $0x160] sm:$0xff] %v459_v28  ;;  %v140_v43 = vmul.f32 %v580_v1, %v69_v27  ;;  %524 = vst [vmem:[%s1292_s4 + $0x168] sm:$0xff] %v460_v33  ;;  %v271_v44 = vmax.f32 %v207_v34, 0.0  ;;  %v209_v46 = vadd.f32 %v585_v2, %v138_v35  ;;  %v141_v48 = vmul.f32 %v580_v1, %v70_v32  ;;  %v80_v32 = vld [vmem:[%s1288_s0 + $0x1f8] sm:$0xff]  ;;  %v343_v35 = vld [vmem:[%s1291_s3 + $0x1c0] sm:$0xff] }
  0x42   :  { %v210_v47 = vadd.f32 %v585_v2, %v139_v36  ;;  %525 = vst [vmem:[%s1292_s4 + $0x170] sm:$0xff] %v461_v39  ;;  %526 = vst [vmem:[%s1292_s4 + $0x178] sm:$0xff] %v462_v40  ;;  %v272_v49 = vmax.f32 %v208_v42, 0.0  ;;  %v142_v53 = vmul.f32 %v580_v1, %v71_v37  ;;  %v143_v54 = vmul.f32 %v580_v1, %v72_v38  ;;  %v344_v39 = vld [vmem:[%s1291_s3 + $0x1c8] sm:$0xff] }
  0x43   :  { %v211_v52 = vadd.f32 %v585_v2, %v140_v43  ;;  %v399_v55 = vadd.f32 %v335_v41, %v271_v44  ;;  %v273_v56 = vmax.f32 %v209_v46, 0.0  ;;  %v212_v59 = vadd.f32 %v585_v2, %v141_v48  ;;  %v345_v44 = vld [vmem:[%s1291_s3 + $0x1d0] sm:$0xff] }
  0x44   :  { %v274_v57 = vmax.f32 %v210_v47, 0.0  ;;  %v400_v60 = vadd.f32 %v336_v45, %v272_v49  ;;  %v213_v63 = vadd.f32 %v585_v2, %v142_v53  ;;  %v214_v0 = vadd.f32 %v585_v2, %v143_v54  ;;  %v346_v45 = vld [vmem:[%s1291_s3 + $0x1d8] sm:$0xff] }
  0x45   :  { %v275_v61 = vmax.f32 %v211_v52, 0.0  ;;  %v463_v4 = vmax.f32 %v399_v55, 0.0  ;;  %v401_v5 = vadd.f32 %v337_v50, %v273_v56  ;;  %v276_v7 = vmax.f32 %v212_v59, 0.0  ;;  %v347_v52 = vld [vmem:[%s1291_s3 + $0x1e0] sm:$0xff]  ;;  %v348_v56 = vld [vmem:[%s1291_s3 + $0x1e8] sm:$0xff] }
  0x46   :  { %v402_v6 = vadd.f32 %v338_v51, %v274_v57  ;;  %v464_v11 = vmax.f32 %v400_v60, 0.0  ;;  %v277_v13 = vmax.f32 %v213_v63, 0.0  ;;  %v278_v14 = vmax.f32 %v214_v0, 0.0  ;;  %v350_v63 = vld [vmem:[%s1291_s3 + $0x1f8] sm:$0xff] }
  0x47   :  { %v403_v12 = vadd.f32 %v339_v58, %v275_v61  ;;  %527 = vst [vmem:[%s1292_s4 + $0x180] sm:$0xff] %v463_v4  ;;  %v465_v17 = vmax.f32 %v401_v5, 0.0  ;;  %v404_v19 = vadd.f32 %v340_v62, %v276_v7  ;;  %v144_v20 = vmul.f32 %v580_v1, %v73_v3  ;;  %v349_v62 = vld [vmem:[%s1291_s3 + $0x1f0] sm:$0xff] }
  0x48   :  { %v466_v18 = vmax.f32 %v402_v6, 0.0  ;;  %528 = vst [vmem:[%s1292_s4 + $0x188] sm:$0xff] %v464_v11  ;;  %v405_v23 = vadd.f32 %v341_v8, %v277_v13  ;;  %v406_v24 = vadd.f32 %v342_v9, %v278_v14  ;;  %v145_v25 = vmul.f32 %v580_v1, %v74_v10 }
  0x49   :  { %v467_v22 = vmax.f32 %v403_v12, 0.0  ;;  %529 = vst [vmem:[%s1292_s4 + $0x190] sm:$0xff] %v465_v17  ;;  %v468_v27 = vmax.f32 %v404_v19, 0.0  ;;  %v215_v28 = vadd.f32 %v585_v2, %v144_v20  ;;  %v146_v29 = vmul.f32 %v580_v1, %v75_v15 }
  0x4a   :  { %530 = vst [vmem:[%s1292_s4 + $0x198] sm:$0xff] %v466_v18  ;;  %v147_v30 = vmul.f32 %v580_v1, %v76_v16  ;;  %v469_v33 = vmax.f32 %v405_v23, 0.0  ;;  %v470_v34 = vmax.f32 %v406_v24, 0.0  ;;  %v216_v36 = vadd.f32 %v585_v2, %v145_v25 }
  0x4b   :  { %531 = vst [vmem:[%s1292_s4 + $0x1a0] sm:$0xff] %v467_v22  ;;  %v148_v37 = vmul.f32 %v580_v1, %v77_v21  ;;  %532 = vst [vmem:[%s1292_s4 + $0x1a8] sm:$0xff] %v468_v27  ;;  %v279_v38 = vmax.f32 %v215_v28, 0.0  ;;  %v217_v40 = vadd.f32 %v585_v2, %v146_v29  ;;  %v149_v42 = vmul.f32 %v580_v1, %v78_v26 }
  0x4c   :  { %v218_v41 = vadd.f32 %v585_v2, %v147_v30  ;;  %533 = vst [vmem:[%s1292_s4 + $0x1b0] sm:$0xff] %v469_v33  ;;  %534 = vst [vmem:[%s1292_s4 + $0x1b8] sm:$0xff] %v470_v34  ;;  %v280_v43 = vmax.f32 %v216_v36, 0.0  ;;  %v150_v47 = vmul.f32 %v580_v1, %v79_v31  ;;  %v151_v48 = vmul.f32 %v580_v1, %v80_v32 }
  0x4d   :  { %v219_v46 = vadd.f32 %v585_v2, %v148_v37  ;;  %v407_v49 = vadd.f32 %v343_v35, %v279_v38  ;;  %v281_v50 = vmax.f32 %v217_v40, 0.0  ;;  %v220_v53 = vadd.f32 %v585_v2, %v149_v42 }
  0x4e   :  { %v282_v51 = vmax.f32 %v218_v41, 0.0  ;;  %v408_v54 = vadd.f32 %v344_v39, %v280_v43  ;;  %v221_v57 = vadd.f32 %v585_v2, %v150_v47  ;;  %v222_v58 = vadd.f32 %v585_v2, %v151_v48 }
  0x4f   :  { %v283_v55 = vmax.f32 %v219_v46, 0.0  ;;  %v471_v1 = vmax.f32 %v407_v49, 0.0  ;;  %v409_v59 = vadd.f32 %v345_v44, %v281_v50  ;;  %v284_v61 = vmax.f32 %v220_v53, 0.0 }
  0x50   :  { %v410_v60 = vadd.f32 %v346_v45, %v282_v51  ;;  %v472_v0 = vmax.f32 %v408_v54, 0.0  ;;  %v285_v4 = vmax.f32 %v221_v57, 0.0  ;;  %v286_v5 = vmax.f32 %v222_v58, 0.0 }
  0x51   :  { %v411_v3 = vadd.f32 %v347_v52, %v283_v55  ;;  %535 = vst [vmem:[%s1292_s4 + $0x1c0] sm:$0xff] %v471_v1  ;;  %v473_v2 = vmax.f32 %v409_v59, 0.0  ;;  %v412_v7 = vadd.f32 %v348_v56, %v284_v61 }
  0x52   :  { %v474_v6 = vmax.f32 %v410_v60, 0.0  ;;  %536 = vst [vmem:[%s1292_s4 + $0x1c8] sm:$0xff] %v472_v0  ;;  %v413_v9 = vadd.f32 %v349_v62, %v285_v4  ;;  %v414_v10 = vadd.f32 %v350_v63, %v286_v5 }
  0x53   :  { %v475_v8 = vmax.f32 %v411_v3, 0.0  ;;  %537 = vst [vmem:[%s1292_s4 + $0x1d0] sm:$0xff] %v473_v2  ;;  %v476_v11 = vmax.f32 %v412_v7, 0.0 }
  0x54   :  { %538 = vst [vmem:[%s1292_s4 + $0x1d8] sm:$0xff] %v474_v6  ;;  %v477_v12 = vmax.f32 %v413_v9, 0.0  ;;  %v478_v13 = vmax.f32 %v414_v10, 0.0 }
  0x55   :  { %539 = vst [vmem:[%s1292_s4 + $0x1e0] sm:$0xff] %v475_v8  ;;  %540 = vst [vmem:[%s1292_s4 + $0x1e8] sm:$0xff] %v476_v11 }
  0x56   :  { %541 = vst [vmem:[%s1292_s4 + $0x1f0] sm:$0xff] %v477_v12  ;;  %542 = vst [vmem:[%s1292_s4 + $0x1f8] sm:$0xff] %v478_v13 }

// kernel: conv_block_forward.6
= control target key start
LH: loop header
LB: loop body
LE: loop exit
PB: predicated region body
PF: predicated region fallthrough
CT: control target
= control target key end

     0   :  { %vm274_vm0 = vcmask 588800   ;;  %vm371_vm1 = vcmask 1043456   ;;  %s1728_s1 = inlined_call_operand.vmem [shape: bf16[72,128], index: 1, kind: input, shape index: {}]   ;;  %s1729_s0 = inlined_call_operand.vmem [shape: bf16[512,72], index: 0, kind: input, shape index: {}]   ;;  %s1730_s2 = inlined_call_operand.vmem [shape: f32[512,128], index: 2, kind: output, shape index: {0}]   ;;  %s1731_s3 = inlined_call_operand.vmem [shape: f32[8,128], index: 3, kind: output, shape index: {1}]  }
   0x1   :  { %v1134_v0 = vld [vmem:[%s1728_s1] sm:$0xff]   ;;  %v1135_v1 = vld [vmem:[%s1728_s1 + $0x8] sm:$0xff]   ;;  %v1136_v2 = vld [vmem:[%s1728_s1 + $0x10] sm:$0xff]  }
   0x2   :  { %1047 = vmatprep.subr.bf16.mxu0 %v1134_v0  ;;  %1121 = vmatprep.subr.bf16.mxu1 %v1134_v0  ;;  %v1139_v3 = vld [vmem:[%s1729_s0] sm:$0xff]   ;;  %v1137_v4 = vld [vmem:[%s1728_s1 + $0x18] sm:$0xff]   ;;  %v1140_v7 = vld [vmem:[%s1729_s0 + $0x8] sm:$0xff]  }
   0x3   :  { %1048 = vmatpush3.bf16.msra.mxu0 %v1134_v0  ;;  %1126 = vmatpush3.bf16.msra.mxu1 %v1134_v0  ;;  %v1138_v5 = vld [vmem:[%s1728_s1 + $0x20] ss:$0 sps:$4 sm:$0xff]   ;;  %v1141_v8 = vld [vmem:[%s1729_s0 + $0x10] sm:$0xff]   ;;  %v1156_v10 = vld [vmem:[%s1729_s0 + $0x88] sm:$0xff]  }
   0x4   :  { %1049 = vmatprep.subr.bf16.mxu0 %v1135_v1  ;;  %1122 = vmatprep.subr.bf16.mxu1 %v1135_v1  ;;  %v373_v6 = vsel %vm371_vm1, %v1138_v5, 0  ;;  %v1155_v9 = vld [vmem:[%s1729_s0 + $0x80] sm:$0xff]   ;;  %v1157_v11 = vld [vmem:[%s1729_s0 + $0x90] sm:$0xff]   ;;  %v1142_v12 = vld [vmem:[%s1729_s0 + $0x18] sm:$0xff]  }
   0x5   :  { %1057 = vmatprep.mubr.msk.bf16.mxu0 %vm274_vm0, %v1139_v3  ;;  %1089 = vmatprep.mubr.msk.bf16.mxu1 %vm274_vm0, %v1155_v9  ;;  %v1143_v13 = vld [vmem:[%s1729_s0 + $0x20] sm:$0xff]   ;;  %v1158_v14 = vld [vmem:[%s1729_s0 + $0x98] sm:$0xff]   ;;  %v1144_v16 = vld [vmem:[%s1729_s0 + $0x28] sm:$0xff]  }
   0x6   :  { %v1159_v15 = vld [vmem:[%s1729_s0 + $0xa0] sm:$0xff]   ;;  %v1145_v17 = vld [vmem:[%s1729_s0 + $0x30] sm:$0xff]   ;;  %v1160_v18 = vld [vmem:[%s1729_s0 + $0xa8] sm:$0xff]  }
   0x7   :  { %1050 = vmatpush3.bf16.msra.mxu0 %v1135_v1  ;;  %1127 = vmatpush3.bf16.msra.mxu1 %v1135_v1  ;;  %v1161_v19 = vld [vmem:[%s1729_s0 + $0xb0] sm:$0xff]   ;;  %v1146_v20 = vld [vmem:[%s1729_s0 + $0x38] sm:$0xff]   ;;  %v1147_v21 = vld [vmem:[%s1729_s0 + $0x40] sm:$0xff]  }
   0x8   :  { %1051 = vmatprep.subr.bf16.mxu0 %v1136_v2  ;;  %1123 = vmatprep.subr.bf16.mxu1 %v1136_v2  ;;  %v1162_v22 = vld [vmem:[%s1729_s0 + $0xb8] sm:$0xff]   ;;  %v1163_v23 = vld [vmem:[%s1729_s0 + $0xc0] sm:$0xff]   ;;  %v1148_v24 = vld [vmem:[%s1729_s0 + $0x48] sm:$0xff]  }
   0x9   :  { %v1149_v25 = vld [vmem:[%s1729_s0 + $0x50] sm:$0xff]   ;;  %v1164_v26 = vld [vmem:[%s1729_s0 + $0xc8] sm:$0xff]   ;;  %v1150_v28 = vld [vmem:[%s1729_s0 + $0x58] sm:$0xff]  }
   0xa   :  { %v1165_v27 = vld [vmem:[%s1729_s0 + $0xd0] sm:$0xff]   ;;  %v1151_v29 = vld [vmem:[%s1729_s0 + $0x60] sm:$0xff]   ;;  %v1166_v30 = vld [vmem:[%s1729_s0 + $0xd8] sm:$0xff]  }
   0xb   :  { %1052 = vmatpush3.bf16.msra.mxu0 %v1136_v2  ;;  %1128 = vmatpush3.bf16.msra.mxu1 %v1136_v2  ;;  %v1167_v31 = vld [vmem:[%s1729_s0 + $0xe0] sm:$0xff]   ;;  %v1152_v32 = vld [vmem:[%s1729_s0 + $0x68] sm:$0xff]   ;;  %v1153_v33 = vld [vmem:[%s1729_s0 + $0x70] sm:$0xff]  }
   0xc   :  { %1053 = vmatprep.subr.bf16.mxu0 %v1137_v4  ;;  %1124 = vmatprep.subr.bf16.mxu1 %v1137_v4  ;;  %v1168_v34 = vld [vmem:[%s1729_s0 + $0xe8] sm:$0xff]   ;;  %v1169_v35 = vld [vmem:[%s1729_s0 + $0xf0] sm:$0xff]   ;;  %v1154_v36 = vld [vmem:[%s1729_s0 + $0x78] sm:$0xff]  }
   0xd   :  { %v1170_v37 = vld [vmem:[%s1729_s0 + $0xf8] sm:$0xff]  }
   0xf   :  { %1054 = vmatpush3.bf16.msra.mxu0 %v1137_v4  ;;  %1129 = vmatpush3.bf16.msra.mxu1 %v1137_v4 }
  0x10   :  { %1131 = vmatprep.subr.msk.bf16.mxu0 %vm371_vm1, %v1138_v5  ;;  %1132 = vmatprep.subr.msk.bf16.mxu1 %vm371_vm1, %v1138_v5 }
  0x13   :  { %1056 = vmatpush3.bf16.msra.mxu0 %v373_v6  ;;  %1130 = vmatpush3.bf16.msra.mxu1 %v373_v6 }
  0x16   :  { %1058 = vmatmul.mubr.msk.bf16.vlgmr.msra.gmra.mrb[0].mxu0 %vm274_vm0, %v1140_v7  ;;  %1090 = vmatmul.mubr.msk.bf16.vlgmr.msra.gmra.mrb[0].mxu1 %vm274_vm0, %v1156_v10 }
  0x17   :  { %1061 = vmatprep.mubr.msk.bf16.mxu0 %vm274_vm0, %v1141_v8  ;;  %1093 = vmatprep.mubr.msk.bf16.mxu1 %vm274_vm0, %v1157_v11 }
  0x1e   :  { %1062 = vmatmul.mubr.msk.bf16.gmra.mrb[4].mxu0 %vm274_vm0, %v1142_v12  ;;  %1094 = vmatmul.mubr.msk.bf16.gmra.mrb[4].mxu1 %vm274_vm0, %v1158_v14  ;;  %v1171_v12 = vmov 0.0  }
  0x1f   :  { %1065 = vmatprep.mubr.msk.bf16.mxu0 %vm274_vm0, %v1143_v13  ;;  %1097 = vmatprep.mubr.msk.bf16.mxu1 %vm274_vm0, %v1159_v15  ;;  %932 = vst [vmem:[%s1731_s3 + $0x2] sm:$0x3f] %v1171_v12 }
  0x26   :  { %1066 = vmatmul.mubr.msk.bf16.gmra.mrb[8].mxu0 %vm274_vm0, %v1144_v16  ;;  %1098 = vmatmul.mubr.msk.bf16.gmra.mrb[8].mxu1 %vm274_vm0, %v1160_v18 }
  0x27   :  { %1069 = vmatprep.mubr.msk.bf16.mxu0 %vm274_vm0, %v1145_v17  ;;  %1101 = vmatprep.mubr.msk.bf16.mxu1 %vm274_vm0, %v1161_v19 }
  0x2e   :  { %1070 = vmatmul.mubr.msk.bf16.gmra.mrb[12].mxu0 %vm274_vm0, %v1146_v20  ;;  %1102 = vmatmul.mubr.msk.bf16.gmra.mrb[12].mxu1 %vm274_vm0, %v1162_v22 }
  0x2f   :  { %1073 = vmatprep.mubr.msk.bf16.mxu0 %vm274_vm0, %v1147_v21  ;;  %1105 = vmatprep.mubr.msk.bf16.mxu1 %vm274_vm0, %v1163_v23 }
  0x36   :  { %1074 = vmatmul.mubr.msk.bf16.gmra.mrb[16].mxu0 %vm274_vm0, %v1148_v24  ;;  %1106 = vmatmul.mubr.msk.bf16.gmra.mrb[16].mxu1 %vm274_vm0, %v1164_v26 }
  0x37   :  { %1077 = vmatprep.mubr.msk.bf16.mxu0 %vm274_vm0, %v1149_v25  ;;  %1109 = vmatprep.mubr.msk.bf16.mxu1 %vm274_vm0, %v1165_v27 }
  0x3e   :  { %1078 = vmatmul.mubr.msk.bf16.gmra.mrb[20].mxu0 %vm274_vm0, %v1150_v28  ;;  %1110 = vmatmul.mubr.msk.bf16.gmra.mrb[20].mxu1 %vm274_vm0, %v1166_v30 }
  0x3f   :  { %1081 = vmatprep.mubr.msk.bf16.mxu0 %vm274_vm0, %v1151_v29  ;;  %1113 = vmatprep.mubr.msk.bf16.mxu1 %vm274_vm0, %v1167_v31 }
  0x46   :  { %1082 = vmatmul.mubr.msk.bf16.gmra.mrb[24].mxu0 %vm274_vm0, %v1152_v32  ;;  %1114 = vmatmul.mubr.msk.bf16.gmra.mrb[24].mxu1 %vm274_vm0, %v1168_v34 }
  0x47   :  { %1085 = vmatprep.mubr.msk.bf16.mxu0 %vm274_vm0, %v1153_v33  ;;  %1117 = vmatprep.mubr.msk.bf16.mxu1 %vm274_vm0, %v1169_v35 }
  0x4e   :  { %1086 = vmatmul.mubr.msk.bf16.gmra.mrb[28].mxu0 %vm274_vm0, %v1154_v36  ;;  %1118 = vmatmul.mubr.msk.bf16.gmra.mrb[28].mxu1 %vm274_vm0, %v1170_v37 }
  0xe9   :  { %v1059_v38 = vpop.f32.mrb[0].mxu0  ;;  %v1341_v41 = vpop.f32.mrb[0].mxu1 }
  0xea   :  { %666 = vst [vmem:[%s1730_s2 + $0x10] sm:$0xff] %v1059_v38  ;;  %v409_v39 = vpop.f32.mrb[1].mxu0  ;;  %698 = vst [vmem:[%s1730_s2 + $0x110] sm:$0xff] %v1341_v41  ;;  %v1350_v43 = vpop.f32.mrb[1].mxu1  ;;  %v800_v49 = vmul.f32 %v1059_v38, %v1059_v38 }
  0xeb   :  { %664 = vst [vmem:[%s1730_s2] sm:$0xff] %v409_v39  ;;  %v1060_v40 = vpop.f32.mrb[2].mxu0  ;;  %v798_v44 = vmul.f32 %v409_v39, %v409_v39  ;;  %696 = vst [vmem:[%s1730_s2 + $0x100] sm:$0xff] %v1350_v43  ;;  %v1359_v47 = vpop.f32.mrb[2].mxu1 }
  0xec   :  { %667 = vst [vmem:[%s1730_s2 + $0x18] sm:$0xff] %v1060_v40  ;;  %v412_v42 = vpop.f32.mrb[3].mxu0  ;;  %699 = vst [vmem:[%s1730_s2 + $0x118] sm:$0xff] %v1359_v47  ;;  %v1365_v48 = vpop.f32.mrb[3].mxu1  ;;  %v801_v52 = vmul.f32 %v1060_v40, %v1060_v40 }
  0xed   :  { %665 = vst [vmem:[%s1730_s2 + $0x8] sm:$0xff] %v412_v42  ;;  %v728_v45 = vadd.f32 %v412_v42, %v409_v39  ;;  %v799_v46 = vmul.f32 %v412_v42, %v412_v42  ;;  %697 = vst [vmem:[%s1730_s2 + $0x108] sm:$0xff] %v1365_v48 }
  0xef   :  { %v729_v50 = vadd.f32 %v1059_v38, %v728_v45  ;;  %v862_v51 = vadd.f32 %v799_v46, %v798_v44 }
  0xf1   :  { %v863_v53 = vadd.f32 %v862_v51, %v800_v49  ;;  %v1063_v54 = vpop.f32.mrb[4].mxu0  ;;  %v730_v55 = vadd.f32 %v1060_v40, %v729_v50  ;;  %v1377_v61 = vpop.f32.mrb[4].mxu1 }
  0xf2   :  { %670 = vst [vmem:[%s1730_s2 + $0x30] sm:$0xff] %v1063_v54  ;;  %v425_v56 = vpop.f32.mrb[5].mxu0  ;;  %702 = vst [vmem:[%s1730_s2 + $0x130] sm:$0xff] %v1377_v61  ;;  %v1386_v63 = vpop.f32.mrb[5].mxu1  ;;  %v804_v5 = vmul.f32 %v1063_v54, %v1063_v54 }
  0xf3   :  { %668 = vst [vmem:[%s1730_s2 + $0x20] sm:$0xff] %v425_v56  ;;  %v731_v57 = vadd.f32 %v730_v55, %v425_v56  ;;  %v802_v58 = vmul.f32 %v425_v56, %v425_v56  ;;  %v864_v59 = vadd.f32 %v863_v53, %v801_v52  ;;  %v1064_v60 = vpop.f32.mrb[6].mxu0  ;;  %700 = vst [vmem:[%s1730_s2 + $0x120] sm:$0xff] %v1386_v63  ;;  %v1395_v3 = vpop.f32.mrb[6].mxu1 }
  0xf4   :  { %671 = vst [vmem:[%s1730_s2 + $0x38] sm:$0xff] %v1064_v60  ;;  %v428_v62 = vpop.f32.mrb[7].mxu0  ;;  %703 = vst [vmem:[%s1730_s2 + $0x138] sm:$0xff] %v1395_v3  ;;  %v1401_v4 = vpop.f32.mrb[7].mxu1  ;;  %v805_v8 = vmul.f32 %v1064_v60, %v1064_v60 }
  0xf5   :  { %v865_v0 = vadd.f32 %v864_v59, %v802_v58  ;;  %669 = vst [vmem:[%s1730_s2 + $0x28] sm:$0xff] %v428_v62  ;;  %v732_v1 = vadd.f32 %v731_v57, %v428_v62  ;;  %v803_v2 = vmul.f32 %v428_v62, %v428_v62  ;;  %701 = vst [vmem:[%s1730_s2 + $0x128] sm:$0xff] %v1401_v4 }
  0xf7   :  { %v733_v6 = vadd.f32 %v1063_v54, %v732_v1  ;;  %v866_v7 = vadd.f32 %v865_v0, %v803_v2 }
  0xf9   :  { %v867_v9 = vadd.f32 %v866_v7, %v804_v5  ;;  %v1067_v10 = vpop.f32.mrb[8].mxu0  ;;  %v734_v11 = vadd.f32 %v1064_v60, %v733_v6  ;;  %v1416_v18 = vpop.f32.mrb[8].mxu1 }
  0xfa   :  { %674 = vst [vmem:[%s1730_s2 + $0x50] sm:$0xff] %v1067_v10  ;;  %v441_v13 = vpop.f32.mrb[9].mxu0  ;;  %706 = vst [vmem:[%s1730_s2 + $0x150] sm:$0xff] %v1416_v18  ;;  %v1425_v20 = vpop.f32.mrb[9].mxu1  ;;  %v808_v26 = vmul.f32 %v1067_v10, %v1067_v10 }
  0xfb   :  { %672 = vst [vmem:[%s1730_s2 + $0x40] sm:$0xff] %v441_v13  ;;  %v735_v14 = vadd.f32 %v734_v11, %v441_v13  ;;  %v806_v15 = vmul.f32 %v441_v13, %v441_v13  ;;  %v868_v16 = vadd.f32 %v867_v9, %v805_v8  ;;  %v1068_v17 = vpop.f32.mrb[10].mxu0  ;;  %704 = vst [vmem:[%s1730_s2 + $0x140] sm:$0xff] %v1425_v20  ;;  %v1434_v24 = vpop.f32.mrb[10].mxu1 }
  0xfc   :  { %675 = vst [vmem:[%s1730_s2 + $0x58] sm:$0xff] %v1068_v17  ;;  %v444_v19 = vpop.f32.mrb[11].mxu0  ;;  %707 = vst [vmem:[%s1730_s2 + $0x158] sm:$0xff] %v1434_v24  ;;  %v1440_v25 = vpop.f32.mrb[11].mxu1  ;;  %v809_v29 = vmul.f32 %v1068_v17, %v1068_v17 }
  0xfd   :  { %v869_v21 = vadd.f32 %v868_v16, %v806_v15  ;;  %673 = vst [vmem:[%s1730_s2 + $0x48] sm:$0xff] %v444_v19  ;;  %v736_v22 = vadd.f32 %v735_v14, %v444_v19  ;;  %v807_v23 = vmul.f32 %v444_v19, %v444_v19  ;;  %705 = vst [vmem:[%s1730_s2 + $0x148] sm:$0xff] %v1440_v25 }
  0xff   :  { %v737_v27 = vadd.f32 %v1067_v10, %v736_v22  ;;  %v870_v28 = vadd.f32 %v869_v21, %v807_v23 }
 0x101   :  { %v871_v30 = vadd.f32 %v870_v28, %v808_v26  ;;  %v1071_v31 = vpop.f32.mrb[12].mxu0  ;;  %v738_v32 = vadd.f32 %v1068_v17, %v737_v27  ;;  %v1452_v38 = vpop.f32.mrb[12].mxu1 }
 0x102   :  { %678 = vst [vmem:[%s1730_s2 + $0x70] sm:$0xff] %v1071_v31  ;;  %v457_v33 = vpop.f32.mrb[13].mxu0  ;;  %710 = vst [vmem:[%s1730_s2 + $0x170] sm:$0xff] %v1452_v38  ;;  %v1461_v40 = vpop.f32.mrb[13].mxu1  ;;  %v812_v50 = vmul.f32 %v1071_v31, %v1071_v31 }
 0x103   :  { %676 = vst [vmem:[%s1730_s2 + $0x60] sm:$0xff] %v457_v33  ;;  %v739_v34 = vadd.f32 %v738_v32, %v457_v33  ;;  %v810_v35 = vmul.f32 %v457_v33, %v457_v33  ;;  %v872_v36 = vadd.f32 %v871_v30, %v809_v29  ;;  %v1072_v37 = vpop.f32.mrb[14].mxu0  ;;  %708 = vst [vmem:[%s1730_s2 + $0x160] sm:$0xff] %v1461_v40  ;;  %v1470_v46 = vpop.f32.mrb[14].mxu1 }
 0x104   :  { %679 = vst [vmem:[%s1730_s2 + $0x78] sm:$0xff] %v1072_v37  ;;  %v460_v39 = vpop.f32.mrb[15].mxu0  ;;  %711 = vst [vmem:[%s1730_s2 + $0x178] sm:$0xff] %v1470_v46  ;;  %v1476_v49 = vpop.f32.mrb[15].mxu1  ;;  %v813_v53 = vmul.f32 %v1072_v37, %v1072_v37 }
 0x105   :  { %v873_v42 = vadd.f32 %v872_v36, %v810_v35  ;;  %677 = vst [vmem:[%s1730_s2 + $0x68] sm:$0xff] %v460_v39  ;;  %v740_v44 = vadd.f32 %v739_v34, %v460_v39  ;;  %v811_v45 = vmul.f32 %v460_v39, %v460_v39  ;;  %709 = vst [vmem:[%s1730_s2 + $0x168] sm:$0xff] %v1476_v49 }
 0x107   :  { %v741_v51 = vadd.f32 %v1071_v31, %v740_v44  ;;  %v874_v52 = vadd.f32 %v873_v42, %v811_v45 }
 0x109   :  { %v875_v54 = vadd.f32 %v874_v52, %v812_v50  ;;  %v1075_v55 = vpop.f32.mrb[16].mxu0  ;;  %v742_v56 = vadd.f32 %v1072_v37, %v741_v51  ;;  %v1488_v0 = vpop.f32.mrb[16].mxu1 }
 0x10a   :  { %682 = vst [vmem:[%s1730_s2 + $0x90] sm:$0xff] %v1075_v55  ;;  %v473_v57 = vpop.f32.mrb[17].mxu0  ;;  %714 = vst [vmem:[%s1730_s2 + $0x190] sm:$0xff] %v1488_v0  ;;  %v1497_v2 = vpop.f32.mrb[17].mxu1  ;;  %v816_v10 = vmul.f32 %v1075_v55, %v1075_v55 }
 0x10b   :  { %680 = vst [vmem:[%s1730_s2 + $0x80] sm:$0xff] %v473_v57  ;;  %v743_v58 = vadd.f32 %v742_v56, %v473_v57  ;;  %v814_v59 = vmul.f32 %v473_v57, %v473_v57  ;;  %v876_v60 = vadd.f32 %v875_v54, %v813_v53  ;;  %v1076_v62 = vpop.f32.mrb[18].mxu0  ;;  %712 = vst [vmem:[%s1730_s2 + $0x180] sm:$0xff] %v1497_v2  ;;  %v1506_v8 = vpop.f32.mrb[18].mxu1 }
 0x10c   :  { %683 = vst [vmem:[%s1730_s2 + $0x98] sm:$0xff] %v1076_v62  ;;  %v476_v1 = vpop.f32.mrb[19].mxu0  ;;  %715 = vst [vmem:[%s1730_s2 + $0x198] sm:$0xff] %v1506_v8  ;;  %v1512_v9 = vpop.f32.mrb[19].mxu1  ;;  %v817_v13 = vmul.f32 %v1076_v62, %v1076_v62 }
 0x10d   :  { %v877_v5 = vadd.f32 %v876_v60, %v814_v59  ;;  %681 = vst [vmem:[%s1730_s2 + $0x88] sm:$0xff] %v476_v1  ;;  %v744_v6 = vadd.f32 %v743_v58, %v476_v1  ;;  %v815_v7 = vmul.f32 %v476_v1, %v476_v1  ;;  %713 = vst [vmem:[%s1730_s2 + $0x188] sm:$0xff] %v1512_v9 }
 0x10f   :  { %v745_v11 = vadd.f32 %v1075_v55, %v744_v6  ;;  %v878_v12 = vadd.f32 %v877_v5, %v815_v7 }
 0x111   :  { %v879_v14 = vadd.f32 %v878_v12, %v816_v10  ;;  %v1079_v15 = vpop.f32.mrb[20].mxu0  ;;  %v746_v16 = vadd.f32 %v1076_v62, %v745_v11  ;;  %v1524_v26 = vpop.f32.mrb[20].mxu1 }
 0x112   :  { %686 = vst [vmem:[%s1730_s2 + $0xb0] sm:$0xff] %v1079_v15  ;;  %v489_v17 = vpop.f32.mrb[21].mxu0  ;;  %718 = vst [vmem:[%s1730_s2 + $0x1b0] sm:$0xff] %v1524_v26  ;;  %v1533_v28 = vpop.f32.mrb[21].mxu1  ;;  %v820_v34 = vmul.f32 %v1079_v15, %v1079_v15 }
 0x113   :  { %684 = vst [vmem:[%s1730_s2 + $0xa0] sm:$0xff] %v489_v17  ;;  %v747_v19 = vadd.f32 %v746_v16, %v489_v17  ;;  %v818_v21 = vmul.f32 %v489_v17, %v489_v17  ;;  %v880_v22 = vadd.f32 %v879_v14, %v817_v13  ;;  %v1080_v23 = vpop.f32.mrb[22].mxu0  ;;  %716 = vst [vmem:[%s1730_s2 + $0x1a0] sm:$0xff] %v1533_v28  ;;  %v1542_v32 = vpop.f32.mrb[22].mxu1 }
 0x114   :  { %687 = vst [vmem:[%s1730_s2 + $0xb8] sm:$0xff] %v1080_v23  ;;  %v492_v27 = vpop.f32.mrb[23].mxu0  ;;  %719 = vst [vmem:[%s1730_s2 + $0x1b8] sm:$0xff] %v1542_v32  ;;  %v1548_v33 = vpop.f32.mrb[23].mxu1  ;;  %v821_v37 = vmul.f32 %v1080_v23, %v1080_v23 }
 0x115   :  { %v881_v29 = vadd.f32 %v880_v22, %v818_v21  ;;  %685 = vst [vmem:[%s1730_s2 + $0xa8] sm:$0xff] %v492_v27  ;;  %v748_v30 = vadd.f32 %v747_v19, %v492_v27  ;;  %v819_v31 = vmul.f32 %v492_v27, %v492_v27  ;;  %717 = vst [vmem:[%s1730_s2 + $0x1a8] sm:$0xff] %v1548_v33 }
 0x117   :  { %v749_v35 = vadd.f32 %v1079_v15, %v748_v30  ;;  %v882_v36 = vadd.f32 %v881_v29, %v819_v31 }
 0x119   :  { %v883_v39 = vadd.f32 %v882_v36, %v820_v34  ;;  %v1083_v42 = vpop.f32.mrb[24].mxu0  ;;  %v750_v44 = vadd.f32 %v1080_v23, %v749_v35  ;;  %v1560_v54 = vpop.f32.mrb[24].mxu1 }
 0x11a   :  { %690 = vst [vmem:[%s1730_s2 + $0xd0] sm:$0xff] %v1083_v42  ;;  %v505_v45 = vpop.f32.mrb[25].mxu0  ;;  %722 = vst [vmem:[%s1730_s2 + $0x1d0] sm:$0xff] %v1560_v54  ;;  %v1569_v56 = vpop.f32.mrb[25].mxu1  ;;  %v824_v1 = vmul.f32 %v1083_v42, %v1083_v42 }
 0x11b   :  { %688 = vst [vmem:[%s1730_s2 + $0xc0] sm:$0xff] %v505_v45  ;;  %v751_v50 = vadd.f32 %v750_v44, %v505_v45  ;;  %v822_v51 = vmul.f32 %v505_v45, %v505_v45  ;;  %v884_v52 = vadd.f32 %v883_v39, %v821_v37  ;;  %v1084_v53 = vpop.f32.mrb[26].mxu0  ;;  %720 = vst [vmem:[%s1730_s2 + $0x1c0] sm:$0xff] %v1569_v56  ;;  %v1578_v60 = vpop.f32.mrb[26].mxu1 }
 0x11c   :  { %691 = vst [vmem:[%s1730_s2 + $0xd8] sm:$0xff] %v1084_v53  ;;  %v508_v55 = vpop.f32.mrb[27].mxu0  ;;  %723 = vst [vmem:[%s1730_s2 + $0x1d8] sm:$0xff] %v1578_v60  ;;  %v1584_v62 = vpop.f32.mrb[27].mxu1  ;;  %v825_v7 = vmul.f32 %v1084_v53, %v1084_v53  ;;  %v830_v44 = vmul.f32 %v1350_v43, %v1350_v43 }
 0x11d   :  { %v885_v57 = vadd.f32 %v884_v52, %v822_v51  ;;  %689 = vst [vmem:[%s1730_s2 + $0xc8] sm:$0xff] %v508_v55  ;;  %v752_v58 = vadd.f32 %v751_v50, %v508_v55  ;;  %v823_v59 = vmul.f32 %v508_v55, %v508_v55  ;;  %721 = vst [vmem:[%s1730_s2 + $0x1c8] sm:$0xff] %v1584_v62 }
 0x11e   :  { %v832_v55 = vmul.f32 %v1341_v41, %v1341_v41 }
 0x11f   :  { %v753_v5 = vadd.f32 %v1083_v42, %v752_v58  ;;  %v886_v6 = vadd.f32 %v885_v57, %v823_v59  ;;  %v833_v59 = vmul.f32 %v1359_v47, %v1359_v47 }
 0x121   :  { %v887_v10 = vadd.f32 %v886_v6, %v824_v1  ;;  %v1087_v11 = vpop.f32.mrb[28].mxu0  ;;  %v754_v12 = vadd.f32 %v1084_v53, %v753_v5  ;;  %v1596_v19 = vpop.f32.mrb[28].mxu1  ;;  %v831_v53 = vmul.f32 %v1365_v48, %v1365_v48 }
 0x122   :  { %694 = vst [vmem:[%s1730_s2 + $0xf0] sm:$0xff] %v1087_v11  ;;  %v521_v13 = vpop.f32.mrb[29].mxu0  ;;  %726 = vst [vmem:[%s1730_s2 + $0x1f0] sm:$0xff] %v1596_v19  ;;  %v1605_v22 = vpop.f32.mrb[29].mxu1  ;;  %v828_v34 = vmul.f32 %v1087_v11, %v1087_v11 }
 0x123   :  { %692 = vst [vmem:[%s1730_s2 + $0xe0] sm:$0xff] %v521_v13  ;;  %v755_v14 = vadd.f32 %v754_v12, %v521_v13  ;;  %v826_v15 = vmul.f32 %v521_v13, %v521_v13  ;;  %v888_v16 = vadd.f32 %v887_v10, %v825_v7  ;;  %v1088_v17 = vpop.f32.mrb[30].mxu0  ;;  %724 = vst [vmem:[%s1730_s2 + $0x1e0] sm:$0xff] %v1605_v22  ;;  %v1614_v30 = vpop.f32.mrb[30].mxu1 }
 0x124   :  { %695 = vst [vmem:[%s1730_s2 + $0xf8] sm:$0xff] %v1088_v17  ;;  %v524_v21 = vpop.f32.mrb[31].mxu0  ;;  %727 = vst [vmem:[%s1730_s2 + $0x1f8] sm:$0xff] %v1614_v30  ;;  %v1620_v31 = vpop.f32.mrb[31].mxu1  ;;  %v829_v37 = vmul.f32 %v1088_v17, %v1088_v17 }
 0x125   :  { %v889_v23 = vadd.f32 %v888_v16, %v826_v15  ;;  %693 = vst [vmem:[%s1730_s2 + $0xe8] sm:$0xff] %v524_v21  ;;  %v756_v27 = vadd.f32 %v755_v14, %v524_v21  ;;  %v827_v29 = vmul.f32 %v524_v21, %v524_v21  ;;  %725 = vst [vmem:[%s1730_s2 + $0x1e8] sm:$0xff] %v1620_v31 }
 0x127   :  { %v757_v35 = vadd.f32 %v1087_v11, %v756_v27  ;;  %v890_v36 = vadd.f32 %v889_v23, %v827_v29  ;;  %v835_v11 = vmul.f32 %v1401_v4, %v1401_v4  ;;  %v839_v23 = vmul.f32 %v1440_v25, %v1440_v25 }
 0x129   :  { %v891_v39 = vadd.f32 %v890_v36, %v828_v34  ;;  %v758_v42 = vadd.f32 %v1088_v17, %v757_v35 }
 0x12b   :  { %v759_v45 = vadd.f32 %v758_v42, %v1350_v43  ;;  %v892_v50 = vadd.f32 %v891_v39, %v829_v37  ;;  %v834_v43 = vmul.f32 %v1386_v63, %v1386_v63  ;;  %v843_v42 = vmul.f32 %v1476_v49, %v1476_v49 }
 0x12d   :  { %v893_v51 = vadd.f32 %v892_v50, %v830_v44  ;;  %v760_v52 = vadd.f32 %v759_v45, %v1365_v48 }
 0x12f   :  { %v761_v57 = vadd.f32 %v1341_v41, %v760_v52  ;;  %v894_v58 = vadd.f32 %v893_v51, %v831_v53  ;;  %v836_v41 = vmul.f32 %v1377_v61, %v1377_v61 }
 0x131   :  { %v895_v1 = vadd.f32 %v894_v58, %v832_v55  ;;  %v762_v5 = vadd.f32 %v1359_v47, %v761_v57  ;;  %v837_v47 = vmul.f32 %v1395_v3, %v1395_v3  ;;  %v847_v57 = vmul.f32 %v1512_v9, %v1512_v9 }
 0x133   :  { %v763_v6 = vadd.f32 %v762_v5, %v1386_v63  ;;  %v896_v7 = vadd.f32 %v895_v1, %v833_v59  ;;  %v838_v63 = vmul.f32 %v1425_v20, %v1425_v20 }
 0x135   :  { %v897_v10 = vadd.f32 %v896_v7, %v834_v43  ;;  %v764_v48 = vadd.f32 %v763_v6, %v1401_v4 }
 0x137   :  { %v765_v12 = vadd.f32 %v1377_v61, %v764_v48  ;;  %v898_v13 = vadd.f32 %v897_v10, %v835_v11  ;;  %v840_v61 = vmul.f32 %v1416_v18, %v1416_v18  ;;  %v851_v10 = vmul.f32 %v1548_v33, %v1548_v33 }
 0x139   :  { %v899_v14 = vadd.f32 %v898_v13, %v836_v41  ;;  %v766_v15 = vadd.f32 %v1395_v3, %v765_v12  ;;  %v841_v3 = vmul.f32 %v1434_v24, %v1434_v24 }
 0x13b   :  { %v767_v16 = vadd.f32 %v766_v15, %v1425_v20  ;;  %v900_v17 = vadd.f32 %v899_v14, %v837_v47  ;;  %v842_v20 = vmul.f32 %v1461_v40, %v1461_v40  ;;  %v855_v15 = vmul.f32 %v1584_v62, %v1584_v62 }
 0x13d   :  { %v901_v21 = vadd.f32 %v900_v17, %v838_v63  ;;  %v768_v4 = vadd.f32 %v767_v16, %v1440_v25 }
 0x13f   :  { %v769_v27 = vadd.f32 %v1416_v18, %v768_v4  ;;  %v902_v29 = vadd.f32 %v901_v21, %v839_v23  ;;  %v844_v18 = vmul.f32 %v1452_v38, %v1452_v38 }
 0x141   :  { %v903_v34 = vadd.f32 %v902_v29, %v840_v61  ;;  %v770_v35 = vadd.f32 %v1434_v24, %v769_v27  ;;  %v845_v24 = vmul.f32 %v1470_v46, %v1470_v46  ;;  %v859_v27 = vmul.f32 %v1620_v31, %v1620_v31 }
 0x143   :  { %v771_v36 = vadd.f32 %v770_v35, %v1461_v40  ;;  %v904_v37 = vadd.f32 %v903_v34, %v841_v3  ;;  %v846_v40 = vmul.f32 %v1497_v2, %v1497_v2 }
 0x145   :  { %v905_v39 = vadd.f32 %v904_v37, %v842_v20  ;;  %v772_v25 = vadd.f32 %v771_v36, %v1476_v49 }
 0x147   :  { %v773_v44 = vadd.f32 %v1452_v38, %v772_v25  ;;  %v906_v45 = vadd.f32 %v905_v39, %v843_v42  ;;  %v848_v38 = vmul.f32 %v1488_v0, %v1488_v0 }
 0x149   :  { %v907_v50 = vadd.f32 %v906_v45, %v844_v18  ;;  %v774_v51 = vadd.f32 %v1470_v46, %v773_v44  ;;  %v849_v46 = vmul.f32 %v1506_v8, %v1506_v8 }
 0x14b   :  { %v775_v52 = vadd.f32 %v774_v51, %v1497_v2  ;;  %v908_v53 = vadd.f32 %v907_v50, %v845_v24  ;;  %v850_v2 = vmul.f32 %v1533_v28, %v1533_v28 }
 0x14d   :  { %v909_v55 = vadd.f32 %v908_v53, %v846_v40  ;;  %v776_v49 = vadd.f32 %v775_v52, %v1512_v9 }
 0x14f   :  { %v777_v58 = vadd.f32 %v1488_v0, %v776_v49  ;;  %v910_v59 = vadd.f32 %v909_v55, %v847_v57  ;;  %v852_v0 = vmul.f32 %v1524_v26, %v1524_v26 }
 0x151   :  { %v911_v1 = vadd.f32 %v910_v59, %v848_v38  ;;  %v778_v5 = vadd.f32 %v1506_v8, %v777_v58  ;;  %v853_v8 = vmul.f32 %v1542_v32, %v1542_v32 }
 0x153   :  { %v779_v43 = vadd.f32 %v778_v5, %v1533_v28  ;;  %v912_v6 = vadd.f32 %v911_v1, %v849_v46  ;;  %v854_v28 = vmul.f32 %v1569_v56, %v1569_v56 }
 0x155   :  { %v913_v7 = vadd.f32 %v912_v6, %v850_v2  ;;  %v780_v9 = vadd.f32 %v779_v43, %v1548_v33 }
 0x157   :  { %v781_v48 = vadd.f32 %v1524_v26, %v780_v9  ;;  %v914_v11 = vadd.f32 %v913_v7, %v851_v10  ;;  %v856_v26 = vmul.f32 %v1560_v54, %v1560_v54 }
 0x159   :  { %v915_v41 = vadd.f32 %v914_v11, %v852_v0  ;;  %v782_v12 = vadd.f32 %v1542_v32, %v781_v48  ;;  %v857_v32 = vmul.f32 %v1578_v60, %v1578_v60 }
 0x15b   :  { %v783_v13 = vadd.f32 %v782_v12, %v1569_v56  ;;  %v916_v47 = vadd.f32 %v915_v41, %v853_v8  ;;  %v858_v56 = vmul.f32 %v1605_v22, %v1605_v22 }
 0x15d   :  { %v917_v14 = vadd.f32 %v916_v47, %v854_v28  ;;  %v784_v33 = vadd.f32 %v783_v13, %v1584_v62 }
 0x15f   :  { %v785_v63 = vadd.f32 %v1560_v54, %v784_v33  ;;  %v918_v16 = vadd.f32 %v917_v14, %v855_v15  ;;  %v860_v54 = vmul.f32 %v1596_v19, %v1596_v19 }
 0x161   :  { %v919_v17 = vadd.f32 %v918_v16, %v856_v26  ;;  %v786_v21 = vadd.f32 %v1578_v60, %v785_v63  ;;  %v861_v60 = vmul.f32 %v1614_v30, %v1614_v30 }
 0x163   :  { %v787_v4 = vadd.f32 %v786_v21, %v1605_v22  ;;  %v920_v23 = vadd.f32 %v919_v17, %v857_v32 }
 0x165   :  { %v921_v61 = vadd.f32 %v920_v23, %v858_v56  ;;  %v788_v62 = vadd.f32 %v787_v4, %v1620_v31 }
 0x167   :  { %v789_v29 = vadd.f32 %v1596_v19, %v788_v62  ;;  %v922_v3 = vadd.f32 %v921_v61, %v859_v27 }
 0x169   :  { %v790_v34 = vadd.f32 %v1614_v30, %v789_v29  ;;  %v923_v35 = vadd.f32 %v922_v3, %v860_v54 }
 0x16b   :  { %v791_v22 = vrot.slane %v790_v34, 4  ;;  %v924_v20 = vadd.f32 %v923_v35, %v861_v60 }
 0x16d   :  { %v792_v36 = vadd.f32 %v791_v22, %v790_v34  ;;  %v925_v37 = vrot.slane %v924_v20, 4 }
 0x16f   :  { %v793_v39 = vrot.slane %v792_v36, 2  ;;  %v926_v25 = vadd.f32 %v925_v37, %v924_v20 }
 0x171   :  { %v794_v42 = vadd.f32 %v793_v39, %v792_v36  ;;  %v927_v31 = vrot.slane %v926_v25, 2 }
 0x173   :  { %v795_v18 = vrot.slane %v794_v42, 1  ;;  %v928_v44 = vadd.f32 %v927_v31, %v926_v25 }
 0x175   :  { %v796_v45 = vadd.f32 %v795_v18, %v794_v42  ;;  %v929_v24 = vrot.slane %v928_v44, 1 }
 0x177   :  { %797 = vst [vmem:[%s1731_s3] sm:$0x1] %v796_v45  ;;  %v930_v19 = vadd.f32 %v929_v24, %v928_v44 }
 0x179   :  { %931 = vst [vmem:[%s1731_s3 + $0x1] sm:$0x1] %v930_v19 }

</bundles_post_ra>
